<compile_context>
chip_gen: v7x
topology: tpu7x:2x2x1
jax: 0.10.0
libtpu: 0.0.40
codegen_flags: <defaults>
</compile_context>

<pallas_src>
import jax
import jax.numpy as jnp
from jax.experimental import pallas as pl
from jax.experimental.pallas import tpu as pltpu

_BN_EPS = 1e-5
_HIDDEN = 1024


def _round_up(x, m):
    return (x + m - 1) // m * m


# ----------------------------------------------------------------------------
# Fused kernel body: one (tm, tn) output tile per grid step.
# ----------------------------------------------------------------------------
def _fused_kernel(x_ref, w1_ref, b1_ref, w2_ref, b2_ref, o_ref):
    # fc1 (+ folded BN) + LeakyReLU(0.1).  Recomputed per N tile of fc2 -- the
    # extra MACs are negligible and w1's block index is constant, so it is only
    # DMA'd once for the whole grid.
    x = x_ref[...].astype(jnp.bfloat16)                      # in-kernel cast (VPU slack)
    h = jnp.dot(x, w1_ref[...], preferred_element_type=jnp.float32) + b1_ref[...]
    h = jnp.where(h > 0.0, h, 0.1 * h)
    # fc2 for this output tile; h stays on-chip (never written to HBM).
    # NOTE: h is fed to the MXU as bf16 (weights are stored bf16 in HBM anyway).
    y = jnp.dot(h.astype(jnp.bfloat16), w2_ref[...],
                preferred_element_type=jnp.float32)
    o_ref[...] = y + b2_ref[...]


def fused_forward_padded(x_pad, w1, b1, w2, b2, *, tm, tn):
    """y = fc2(leaky(fc1(x_pad))) on pre-padded operands.

    x_pad: (Mp, K1p) f32, w1: (K1p, 1024) bf16 (BN folded), b1: (1, 1024) f32,
    w2: (1024, 1024) bf16, b2: (1, 1024) f32.
    """
    Mp, K1p = x_pad.shape
    N1 = w1.shape[1]
    N2 = w2.shape[1]
    assert Mp % tm == 0 and N2 % tn == 0 and w2.shape[0] == N1

    n_tiles = N2 // tn
    flops = 2 * Mp * K1p * N1 * n_tiles + 2 * Mp * N1 * N2
    bytes_accessed = (x_pad.size * 4 + w1.size * 2 + b1.size * 4
                      + w2.size * 2 + b2.size * 4 + Mp * N2 * 4)

    return pl.pallas_call(
        _fused_kernel,
        out_shape=jax.ShapeDtypeStruct((Mp, N2), jnp.float32),
        grid_spec=pltpu.PrefetchScalarGridSpec(
            num_scalar_prefetch=0,
            grid=(Mp // tm, N2 // tn),
            in_specs=[
                pl.BlockSpec((tm, K1p), lambda i, j: (i, 0)),   # x   (f32 activations)
                pl.BlockSpec((K1p, N1), lambda i, j: (0, 0)),   # w1  (bf16, BN folded)
                pl.BlockSpec((1, N1),   lambda i, j: (0, 0)),   # b1  (f32, BN folded)
                pl.BlockSpec((N1, tn),  lambda i, j: (0, j)),   # w2  (bf16)
                pl.BlockSpec((1, tn),   lambda i, j: (0, j)),   # b2  (f32)
            ],
            out_specs=pl.BlockSpec((tm, tn), lambda i, j: (i, j)),
        ),
        compiler_params=pltpu.CompilerParams(
            dimension_semantics=("parallel", "parallel")),
        cost_estimate=pl.CostEstimate(
            flops=flops, transcendentals=0, bytes_accessed=bytes_accessed),
    )(x_pad, w1, b1, w2, b2)


# ----------------------------------------------------------------------------
# Parameters (deterministic, matching the PyTorch init scheme)
# ----------------------------------------------------------------------------
def make_params(input_dim, seed=0):
    k1, k2, k3 = jax.random.split(jax.random.PRNGKey(seed), 3)
    # add_block: Linear(input_dim, 1024), kaiming_normal fan_out (std=sqrt(2/1024)), bias=0
    w1 = jax.random.normal(k1, (input_dim, _HIDDEN), jnp.float32) * jnp.sqrt(2.0 / _HIDDEN)
    b1 = jnp.zeros((_HIDDEN,), jnp.float32)
    # BatchNorm1d(1024): weight ~ N(1.0, 0.02), bias=0; eval-mode running stats
    gamma = 1.0 + 0.02 * jax.random.normal(k2, (_HIDDEN,), jnp.float32)
    beta = jnp.zeros((_HIDDEN,), jnp.float32)
    mean = jnp.zeros((_HIDDEN,), jnp.float32)
    var = jnp.ones((_HIDDEN,), jnp.float32)
    # distance: Linear(1024, 1024), weight std=0.001, bias=0
    w2 = 0.001 * jax.random.normal(k3, (_HIDDEN, _HIDDEN), jnp.float32)
    b2 = jnp.zeros((_HIDDEN,), jnp.float32)
    return dict(w1=w1, b1=b1, gamma=gamma, beta=beta, mean=mean, var=var,
                w2=w2, b2=b2)


def prepare_params(params):
    """Fold eval-mode BN into fc1, pad K, cast weights to bf16 (done once)."""
    # TODO(synk): BatchNorm1d is folded with eval-mode running statistics;
    # training-mode batch statistics are not implemented.
    scale = params["gamma"] / jnp.sqrt(params["var"] + _BN_EPS)
    shift = params["beta"] - params["mean"] * scale
    w1f = params["w1"] * scale[None, :]
    b1f = params["b1"] * scale + shift

    K1, N1 = params["w1"].shape
    K1p = _round_up(max(K1, 128), 128)

    w1p = jnp.zeros((K1p, N1), jnp.bfloat16).at[:K1, :].set(w1f.astype(jnp.bfloat16))
    b1p = b1f.astype(jnp.float32).reshape(1, N1)
    w2p = params["w2"].astype(jnp.bfloat16)
    b2p = params["b2"].astype(jnp.float32).reshape(1, -1)

    return dict(w1=w1p, b1=b1p, w2=w2p, b2=b2p, input_dim=K1)


# ----------------------------------------------------------------------------
# Forward
# ----------------------------------------------------------------------------
def make_forward(prep):
    w1, b1, w2, b2 = prep["w1"], prep["b1"], prep["w2"], prep["b2"]
    K1 = prep["input_dim"]
    K1p = w1.shape[0]
    N2 = w2.shape[1]
    # 2 output-N tiles -> both v7x TensorCores get a "parallel" tile; on
    # single-TC v5e/v6e this only adds one cheap serial grid step.
    tn = min(512, N2)

    @jax.jit
    def forward(x):
        # x: (B, input_dim) float32  (DistanceBlock.forward input)
        M = x.shape[0]
        tm = min(128, _round_up(max(M, 16), 16))   # bf16 packs (16, 128) per vreg
        Mp = _round_up(M, tm)
        if (Mp, K1p) != (M, K1):
            xp = jnp.zeros((Mp, K1p), x.dtype).at[:M, :K1].set(x)
        else:
            xp = x
        y = fused_forward_padded(xp, w1, b1, w2, b2, tm=tm, tn=tn)
        return y[:M, :N2]

    return forward


# ----------------------------------------------------------------------------
if __name__ == "__main__":
    B, input_dim = 8, 512
    x = jax.random.normal(jax.random.PRNGKey(0), (B, input_dim), jnp.float32)

    params = make_params(input_dim, seed=0)
    prep = prepare_params(params)
    forward = make_forward(prep)

    out = jax.block_until_ready(forward(x))
    assert out.shape == (B, _HIDDEN), out.shape
    assert bool(jnp.all(jnp.isfinite(out)))

    # Reference (emulating the kernel's bf16-operand / f32-accumulate arithmetic).
    scale = params["gamma"] / jnp.sqrt(params["var"] + _BN_EPS)
    shift = params["beta"] - params["mean"] * scale
    xb = x.astype(jnp.bfloat16).astype(jnp.float32)
    w1b = (params["w1"] * scale[None, :]).astype(jnp.bfloat16).astype(jnp.float32)
    h_ref = xb @ w1b + (params["b1"] * scale + shift)
    h_ref = jnp.where(h_ref > 0, h_ref, 0.1 * h_ref)
    hb = h_ref.astype(jnp.bfloat16).astype(jnp.float32)
    w2b = params["w2"].astype(jnp.bfloat16).astype(jnp.float32)
    out_ref = hb @ w2b + params["b2"]
    assert bool(jnp.allclose(out, out_ref, rtol=1e-2, atol=1e-2)), \
        float(jnp.max(jnp.abs(out - out_ref)))

    print("KERNEL_OK")
</pallas_src>

<mosaic_0001>
module attributes {stable_mosaic.version = 11 : i64} {
  func.func @_fused_kernel(%arg0: i32, %arg1: i32, %arg2: memref<16x512xf32, #tpu.memory_space<vmem>>, %arg3: memref<512x1024xbf16, #tpu.memory_space<vmem>>, %arg4: memref<1x1024xf32, #tpu.memory_space<vmem>>, %arg5: memref<1024x512xbf16, #tpu.memory_space<vmem>>, %arg6: memref<1x512xf32, #tpu.memory_space<vmem>>, %arg7: memref<16x512xf32, #tpu.memory_space<vmem>>) attributes {dimension_semantics = [#tpu.dimension_semantics<parallel>, #tpu.dimension_semantics<parallel>], iteration_bounds = array<i64: 1, 2>, scalar_prefetch = 0 : i64, scratch_operands = 0 : i64, tpu.core_type = #tpu.core_type<tc>, window_params = [{transform_indices = @transform_0, window_bounds = array<i64: 16, 512>}, {pipeline_mode = #tpu.pipeline_mode<synchronous>, transform_indices = @transform_1, window_bounds = array<i64: 512, 1024>}, {pipeline_mode = #tpu.pipeline_mode<synchronous>, transform_indices = @transform_2, window_bounds = array<i64: 1, 1024>}, {transform_indices = @transform_3, window_bounds = array<i64: 1024, 512>}, {transform_indices = @transform_4, window_bounds = array<i64: 1, 512>}, {transform_indices = @transform_5, window_bounds = array<i64: 16, 512>}]} {
    %c0 = arith.constant 0 : index
    %c0_0 = arith.constant 0 : index
    %0 = vector.load %arg2[%c0, %c0_0] : memref<16x512xf32, #tpu.memory_space<vmem>>, vector<16x512xf32>
    %1 = arith.truncf %0 : vector<16x512xf32> to vector<16x512xbf16>
    %c0_1 = arith.constant 0 : index
    %c0_2 = arith.constant 0 : index
    %2 = vector.load %arg3[%c0_1, %c0_2] : memref<512x1024xbf16, #tpu.memory_space<vmem>>, vector<512x1024xbf16>
    %cst = arith.constant dense<0.000000e+00> : vector<16x1024xf32>
    %3 = tpu.matmul %1, %2, %cst {dimension_numbers = #tpu.dot_dimension_numbers<[1], [0], [0], [1], [0, 0, 1, 1], [], []>} : vector<16x512xbf16>, vector<512x1024xbf16>, vector<16x1024xf32> -> vector<16x1024xf32>
    %c0_3 = arith.constant 0 : index
    %c0_4 = arith.constant 0 : index
    %4 = vector.load %arg4[%c0_3, %c0_4] : memref<1x1024xf32, #tpu.memory_space<vmem>>, vector<1x1024xf32>
    %5 = vector.broadcast %4 : vector<1x1024xf32> to vector<16x1024xf32>
    %6 = arith.addf %3, %5 : vector<16x1024xf32>
    %cst_5 = arith.constant 0.000000e+00 : f32
    %7 = vector.broadcast %cst_5 : f32 to vector<16x1024xf32>
    %8 = arith.cmpf ogt, %6, %7 : vector<16x1024xf32>
    %cst_6 = arith.constant 1.000000e-01 : f32
    %9 = vector.broadcast %cst_6 : f32 to vector<16x1024xf32>
    %10 = arith.mulf %9, %6 : vector<16x1024xf32>
    %11 = arith.select %8, %6, %10 : vector<16x1024xi1>, vector<16x1024xf32>
    %12 = arith.truncf %11 : vector<16x1024xf32> to vector<16x1024xbf16>
    %c0_7 = arith.constant 0 : index
    %c0_8 = arith.constant 0 : index
    %13 = vector.load %arg5[%c0_7, %c0_8] : memref<1024x512xbf16, #tpu.memory_space<vmem>>, vector<1024x512xbf16>
    %cst_9 = arith.constant dense<0.000000e+00> : vector<16x512xf32>
    %14 = tpu.matmul %12, %13, %cst_9 {dimension_numbers = #tpu.dot_dimension_numbers<[1], [0], [0], [1], [0, 0, 1, 1], [], []>} : vector<16x1024xbf16>, vector<1024x512xbf16>, vector<16x512xf32> -> vector<16x512xf32>
    %c0_10 = arith.constant 0 : index
    %c0_11 = arith.constant 0 : index
    %15 = vector.load %arg6[%c0_10, %c0_11] : memref<1x512xf32, #tpu.memory_space<vmem>>, vector<1x512xf32>
    %16 = vector.broadcast %15 : vector<1x512xf32> to vector<16x512xf32>
    %17 = arith.addf %14, %16 : vector<16x512xf32>
    %c0_12 = arith.constant 0 : index
    %c0_13 = arith.constant 0 : index
    %18 = vector.load %arg7[%c0_12, %c0_13] : memref<16x512xf32, #tpu.memory_space<vmem>>, vector<16x512xf32>
    tpu.vector_store %arg7[%c0_12, %c0_13], %17 {strides = array<i32>} : memref<16x512xf32, #tpu.memory_space<vmem>>, vector<16x512xf32>,
    return
  }
  func.func @transform_0(%arg0: i32, %arg1: i32) -> (i32, i32) {
    %c0_i32 = arith.constant 0 : i32
    %c0_i32_0 = arith.constant 0 : i32
    return %arg0, %c0_i32 : i32, i32
  }
  func.func @transform_1(%arg0: i32, %arg1: i32) -> (i32, i32) {
    %c0_i32 = arith.constant 0 : i32
    %c0_i32_0 = arith.constant 0 : i32
    %c0_i32_1 = arith.constant 0 : i32
    return %c0_i32, %c0_i32_0 : i32, i32
  }
  func.func @transform_2(%arg0: i32, %arg1: i32) -> (i32, i32) {
    %c0_i32 = arith.constant 0 : i32
    %c0_i32_0 = arith.constant 0 : i32
    %c0_i32_1 = arith.constant 0 : i32
    return %c0_i32, %c0_i32_0 : i32, i32
  }
  func.func @transform_3(%arg0: i32, %arg1: i32) -> (i32, i32) {
    %c0_i32 = arith.constant 0 : i32
    %c0_i32_0 = arith.constant 0 : i32
    return %c0_i32, %arg1 : i32, i32
  }
  func.func @transform_4(%arg0: i32, %arg1: i32) -> (i32, i32) {
    %c0_i32 = arith.constant 0 : i32
    %c0_i32_0 = arith.constant 0 : i32
    return %c0_i32, %arg1 : i32, i32
  }
  func.func @transform_5(%arg0: i32, %arg1: i32) -> (i32, i32) {
    %c0_i32 = arith.constant 0 : i32
    return %arg0, %arg1 : i32, i32
  }
}

</mosaic_0001>

<bundles_post_ra>
// kernel: forward.1
= control target key start
LH: loop header
LB: loop body
LE: loop exit
PB: predicated region body
PF: predicated region fallthrough
CT: control target
= control target key end

     0   :  { %s5935_s18 = smov 0   ;;  %s5937_s19 = smov 0   ;;  %s7677_s0 = inlined_call_operand.vmem [shape: f32[16,512], index: 0, kind: input, shape index: {}]   ;;  %s7678_s1 = inlined_call_operand.vmem [shape: bf16[512,1024], index: 1, kind: input, shape index: {}]   ;;  %s7679_s2 = inlined_call_operand.vmem [shape: f32[1,1024], index: 2, kind: input, shape index: {}, may-alias: {2,4}]   ;;  %s7680_s3 = inlined_call_operand.vmem [shape: bf16[1024,1024], index: 3, kind: input, shape index: {}]   ;;  %s7681_s4 = inlined_call_operand.vmem [shape: f32[1,1024], index: 4, kind: input, shape index: {}, may-alias: {2,4}]   ;;  %s7682_s5 = inlined_call_operand.vmem [shape: f32[16,1024], index: 5, kind: output, shape index: {}]  }
   0x1   :  { %s5939_s20 = smov 0   ;;  %s5941_s21 = smov 0  }
   0x2   :  { %s5943_s22 = smov 0  }
   0x3 LB: > { %s24_s23 = sadd.s32 1, %s5899_s21  ;;  %s4846_s24 = sadd.s32 4294967295, %s5903_s22   ;;  %s5903_s22 = sphi %s5943_s22, %s15_s22   ;;  %s5899_s21 = sphi %s5941_s21, %s7687_s21   ;;  %s5895_s20 = sphi %s5939_s20, %s7686_s20   ;;  %s5891_s19 = sphi %s5937_s19, %s7685_s19   ;;  %s5887_s18 = sphi %s5935_s18, %s7684_s18  }
   0x4   : > { %p25_p0 = scmp.ge.s32.totalorder %s24_s23, 2  ;;  %p109_p1 = scmp.ne.s32.totalorder %s5891_s19, %s5887_s18 }
   0x5   : > { %p110_p2 = scmp.eq.s32.totalorder %s5903_s22, 0  ;;  %p167_p4 = scmp.eq.s32.totalorder %s4846_s24, 1 }
   0x6   : > { %s7689_s23 = smov (%p25_p0, %s24_s23), 0  ;;  %s102_s26 = sadd.s32 1, %s5891_s19 }
   0x7   : > { %p111_p3 = por %p110_p2, %p109_p1  ;;  %s99_s25 = ssub.s32 %s5899_s21, %s7689_s23 }
   0x8   : > { %p100_p5 = scmp.eq.s32.totalorder %s99_s25, 0  ;;  %p5970_p6 = por %p167_p4, %p109_p1 }
   0x9   : > { %p4850_p7 = scmp.ge.s32.totalorder %s5903_s22, 2 }
   0xa   : > { %s5975_s28 = scalar_select %p100_p5, %s5891_s19, %s102_s26  }
   0xb   : > { %205 = sbr.rel (%p4850_p7) target bundleno = 150 (0x96), region = 28 }
  0x12   : > { %208 = sbr.rel (!%p111_p3) target bundleno = 150 (0x96), region = 32  ;;  %s210_s29 = sand.u32 (%p111_p3), 1, %s5891_s19  }
  0x13   : > { %s5375_s30 = sshll.u32 (%p111_p3), %s5899_s21, 4  ;;  %s4851_s6 = sshll.u32 (%p111_p3), %s210_s29, 11 }
  0x14   : > { %s5983_s9 = scalar_lea.vmem (%p111_p3), %s7680_s3, %s5375_s30  ;;  %s5988_s10 = scalar_lea.vmem (%p111_p3), [#allocation2], %s4851_s6 }
  0x15   : > { %v228_v0 = vld [vmem:[%s5983_s9] sm:$0xff] (%p111_p3)  ;;  %v230_v1 = vld [vmem:[%s5983_s9 + $0x8] sm:$0xff] (%p111_p3) }
  0x16   : > { %v232_v2 = vld [vmem:[%s5983_s9 + $0x20] sm:$0xff] (%p111_p3)  ;;  %229 = vst [vmem:[%s5988_s10] sm:$0xff] (%p111_p3), %v228_v0  ;;  %231 = vst [vmem:[%s5988_s10 + $0x8] sm:$0xff] (%p111_p3), %v230_v1  ;;  %v234_v3 = vld [vmem:[%s5983_s9 + $0x28] sm:$0xff] (%p111_p3) }
  0x17   : > { %233 = vst [vmem:[%s5988_s10 + $0x10] sm:$0xff] (%p111_p3), %v232_v2  ;;  %v236_v4 = vld [vmem:[%s5983_s9 + $0x40] sm:$0xff] (%p111_p3)  ;;  %v238_v5 = vld [vmem:[%s5983_s9 + $0x48] sm:$0xff] (%p111_p3)  ;;  %235 = vst [vmem:[%s5988_s10 + $0x18] sm:$0xff] (%p111_p3), %v234_v3 }
  0x18   : > { %237 = vst [vmem:[%s5988_s10 + $0x20] sm:$0xff] (%p111_p3), %v236_v4  ;;  %239 = vst [vmem:[%s5988_s10 + $0x28] sm:$0xff] (%p111_p3), %v238_v5  ;;  %v240_v6 = vld [vmem:[%s5983_s9 + $0x60] sm:$0xff] (%p111_p3)  ;;  %v242_v7 = vld [vmem:[%s5983_s9 + $0x68] sm:$0xff] (%p111_p3) }
  0x19   : > { %v244_v8 = vld [vmem:[%s5983_s9 + $0x80] sm:$0xff]  ;;  %241 = vst [vmem:[%s5988_s10 + $0x30] sm:$0xff] %v240_v6  ;;  %243 = vst [vmem:[%s5988_s10 + $0x38] sm:$0xff] %v242_v7  ;;  %v246_v9 = vld [vmem:[%s5983_s9 + $0x88] sm:$0xff] }
  0x1a   : > { %245 = vst [vmem:[%s5988_s10 + $0x40] sm:$0xff] %v244_v8  ;;  %v248_v10 = vld [vmem:[%s5983_s9 + $0xa0] sm:$0xff]  ;;  %v250_v11 = vld [vmem:[%s5983_s9 + $0xa8] sm:$0xff]  ;;  %247 = vst [vmem:[%s5988_s10 + $0x48] sm:$0xff] %v246_v9 }
  0x1b   : > { %249 = vst [vmem:[%s5988_s10 + $0x50] sm:$0xff] %v248_v10  ;;  %251 = vst [vmem:[%s5988_s10 + $0x58] sm:$0xff] %v250_v11  ;;  %v252_v12 = vld [vmem:[%s5983_s9 + $0xc0] sm:$0xff]  ;;  %v254_v13 = vld [vmem:[%s5983_s9 + $0xc8] sm:$0xff] }
  0x1c   : > { %v256_v14 = vld [vmem:[%s5983_s9 + $0xe0] sm:$0xff]  ;;  %253 = vst [vmem:[%s5988_s10 + $0x60] sm:$0xff] %v252_v12  ;;  %255 = vst [vmem:[%s5988_s10 + $0x68] sm:$0xff] %v254_v13  ;;  %v258_v15 = vld [vmem:[%s5983_s9 + $0xe8] sm:$0xff] }
  0x1d   : > { %257 = vst [vmem:[%s5988_s10 + $0x70] sm:$0xff] %v256_v14  ;;  %v260_v16 = vld [vmem:[%s5983_s9 + $0x100] sm:$0xff]  ;;  %v262_v17 = vld [vmem:[%s5983_s9 + $0x108] sm:$0xff]  ;;  %259 = vst [vmem:[%s5988_s10 + $0x78] sm:$0xff] %v258_v15 }
  0x1e   : > { %261 = vst [vmem:[%s5988_s10 + $0x80] sm:$0xff] %v260_v16  ;;  %263 = vst [vmem:[%s5988_s10 + $0x88] sm:$0xff] %v262_v17  ;;  %v264_v18 = vld [vmem:[%s5983_s9 + $0x120] sm:$0xff]  ;;  %v266_v19 = vld [vmem:[%s5983_s9 + $0x128] sm:$0xff] }
  0x1f   : > { %v268_v20 = vld [vmem:[%s5983_s9 + $0x140] sm:$0xff]  ;;  %265 = vst [vmem:[%s5988_s10 + $0x90] sm:$0xff] %v264_v18  ;;  %267 = vst [vmem:[%s5988_s10 + $0x98] sm:$0xff] %v266_v19  ;;  %v270_v21 = vld [vmem:[%s5983_s9 + $0x148] sm:$0xff] }
  0x20   : > { %269 = vst [vmem:[%s5988_s10 + $0xa0] sm:$0xff] %v268_v20  ;;  %v272_v22 = vld [vmem:[%s5983_s9 + $0x160] sm:$0xff]  ;;  %v274_v23 = vld [vmem:[%s5983_s9 + $0x168] sm:$0xff]  ;;  %271 = vst [vmem:[%s5988_s10 + $0xa8] sm:$0xff] %v270_v21 }
  0x21   : > { %273 = vst [vmem:[%s5988_s10 + $0xb0] sm:$0xff] %v272_v22  ;;  %275 = vst [vmem:[%s5988_s10 + $0xb8] sm:$0xff] %v274_v23  ;;  %v276_v24 = vld [vmem:[%s5983_s9 + $0x180] sm:$0xff]  ;;  %v278_v25 = vld [vmem:[%s5983_s9 + $0x188] sm:$0xff] }
  0x22   : > { %v280_v26 = vld [vmem:[%s5983_s9 + $0x1a0] sm:$0xff]  ;;  %277 = vst [vmem:[%s5988_s10 + $0xc0] sm:$0xff] %v276_v24  ;;  %279 = vst [vmem:[%s5988_s10 + $0xc8] sm:$0xff] %v278_v25  ;;  %v282_v27 = vld [vmem:[%s5983_s9 + $0x1a8] sm:$0xff] }
  0x23   : > { %281 = vst [vmem:[%s5988_s10 + $0xd0] sm:$0xff] %v280_v26  ;;  %v284_v28 = vld [vmem:[%s5983_s9 + $0x1c0] sm:$0xff]  ;;  %v286_v29 = vld [vmem:[%s5983_s9 + $0x1c8] sm:$0xff]  ;;  %283 = vst [vmem:[%s5988_s10 + $0xd8] sm:$0xff] %v282_v27 }
  0x24   : > { %285 = vst [vmem:[%s5988_s10 + $0xe0] sm:$0xff] %v284_v28  ;;  %287 = vst [vmem:[%s5988_s10 + $0xe8] sm:$0xff] %v286_v29  ;;  %v288_v30 = vld [vmem:[%s5983_s9 + $0x1e0] sm:$0xff]  ;;  %v290_v31 = vld [vmem:[%s5983_s9 + $0x1e8] sm:$0xff] }
  0x25   : > { %v292_v32 = vld [vmem:[%s5983_s9 + $0x200] sm:$0xff]  ;;  %289 = vst [vmem:[%s5988_s10 + $0xf0] sm:$0xff] %v288_v30  ;;  %291 = vst [vmem:[%s5988_s10 + $0xf8] sm:$0xff] %v290_v31  ;;  %v294_v33 = vld [vmem:[%s5983_s9 + $0x208] sm:$0xff] }
  0x26   : > { %293 = vst [vmem:[%s5988_s10 + $0x100] sm:$0xff] %v292_v32  ;;  %v296_v34 = vld [vmem:[%s5983_s9 + $0x220] sm:$0xff]  ;;  %v298_v35 = vld [vmem:[%s5983_s9 + $0x228] sm:$0xff]  ;;  %295 = vst [vmem:[%s5988_s10 + $0x108] sm:$0xff] %v294_v33 }
  0x27   : > { %297 = vst [vmem:[%s5988_s10 + $0x110] sm:$0xff] %v296_v34  ;;  %299 = vst [vmem:[%s5988_s10 + $0x118] sm:$0xff] %v298_v35  ;;  %v300_v36 = vld [vmem:[%s5983_s9 + $0x240] sm:$0xff]  ;;  %v302_v37 = vld [vmem:[%s5983_s9 + $0x248] sm:$0xff] }
  0x28   : > { %v304_v38 = vld [vmem:[%s5983_s9 + $0x260] sm:$0xff]  ;;  %301 = vst [vmem:[%s5988_s10 + $0x120] sm:$0xff] %v300_v36  ;;  %303 = vst [vmem:[%s5988_s10 + $0x128] sm:$0xff] %v302_v37  ;;  %v306_v39 = vld [vmem:[%s5983_s9 + $0x268] sm:$0xff] }
  0x29   : > { %305 = vst [vmem:[%s5988_s10 + $0x130] sm:$0xff] %v304_v38  ;;  %v308_v40 = vld [vmem:[%s5983_s9 + $0x280] sm:$0xff]  ;;  %v310_v41 = vld [vmem:[%s5983_s9 + $0x288] sm:$0xff]  ;;  %307 = vst [vmem:[%s5988_s10 + $0x138] sm:$0xff] %v306_v39 }
  0x2a   : > { %309 = vst [vmem:[%s5988_s10 + $0x140] sm:$0xff] %v308_v40  ;;  %311 = vst [vmem:[%s5988_s10 + $0x148] sm:$0xff] %v310_v41  ;;  %v312_v42 = vld [vmem:[%s5983_s9 + $0x2a0] sm:$0xff]  ;;  %v314_v43 = vld [vmem:[%s5983_s9 + $0x2a8] sm:$0xff] }
  0x2b   : > { %v316_v44 = vld [vmem:[%s5983_s9 + $0x2c0] sm:$0xff]  ;;  %313 = vst [vmem:[%s5988_s10 + $0x150] sm:$0xff] %v312_v42  ;;  %315 = vst [vmem:[%s5988_s10 + $0x158] sm:$0xff] %v314_v43  ;;  %v318_v45 = vld [vmem:[%s5983_s9 + $0x2c8] sm:$0xff] }
  0x2c   : > { %317 = vst [vmem:[%s5988_s10 + $0x160] sm:$0xff] %v316_v44  ;;  %v320_v46 = vld [vmem:[%s5983_s9 + $0x2e0] sm:$0xff]  ;;  %v322_v47 = vld [vmem:[%s5983_s9 + $0x2e8] sm:$0xff]  ;;  %319 = vst [vmem:[%s5988_s10 + $0x168] sm:$0xff] %v318_v45 }
  0x2d   : > { %321 = vst [vmem:[%s5988_s10 + $0x170] sm:$0xff] %v320_v46  ;;  %323 = vst [vmem:[%s5988_s10 + $0x178] sm:$0xff] %v322_v47  ;;  %v324_v48 = vld [vmem:[%s5983_s9 + $0x300] sm:$0xff]  ;;  %v326_v49 = vld [vmem:[%s5983_s9 + $0x308] sm:$0xff] }
  0x2e   : > { %v328_v50 = vld [vmem:[%s5983_s9 + $0x320] sm:$0xff]  ;;  %325 = vst [vmem:[%s5988_s10 + $0x180] sm:$0xff] %v324_v48  ;;  %327 = vst [vmem:[%s5988_s10 + $0x188] sm:$0xff] %v326_v49  ;;  %v330_v51 = vld [vmem:[%s5983_s9 + $0x328] sm:$0xff] }
  0x2f   : > { %329 = vst [vmem:[%s5988_s10 + $0x190] sm:$0xff] %v328_v50  ;;  %v332_v52 = vld [vmem:[%s5983_s9 + $0x340] sm:$0xff]  ;;  %v334_v53 = vld [vmem:[%s5983_s9 + $0x348] sm:$0xff]  ;;  %331 = vst [vmem:[%s5988_s10 + $0x198] sm:$0xff] %v330_v51 }
  0x30   : > { %333 = vst [vmem:[%s5988_s10 + $0x1a0] sm:$0xff] %v332_v52  ;;  %335 = vst [vmem:[%s5988_s10 + $0x1a8] sm:$0xff] %v334_v53  ;;  %v336_v54 = vld [vmem:[%s5983_s9 + $0x360] sm:$0xff]  ;;  %v338_v55 = vld [vmem:[%s5983_s9 + $0x368] sm:$0xff] }
  0x31   : > { %v340_v56 = vld [vmem:[%s5983_s9 + $0x380] sm:$0xff]  ;;  %337 = vst [vmem:[%s5988_s10 + $0x1b0] sm:$0xff] %v336_v54  ;;  %339 = vst [vmem:[%s5988_s10 + $0x1b8] sm:$0xff] %v338_v55  ;;  %v342_v57 = vld [vmem:[%s5983_s9 + $0x388] sm:$0xff] }
  0x32   : > { %341 = vst [vmem:[%s5988_s10 + $0x1c0] sm:$0xff] %v340_v56  ;;  %v344_v58 = vld [vmem:[%s5983_s9 + $0x3a0] sm:$0xff]  ;;  %v346_v59 = vld [vmem:[%s5983_s9 + $0x3a8] sm:$0xff]  ;;  %343 = vst [vmem:[%s5988_s10 + $0x1c8] sm:$0xff] %v342_v57 }
  0x33   : > { %345 = vst [vmem:[%s5988_s10 + $0x1d0] sm:$0xff] %v344_v58  ;;  %347 = vst [vmem:[%s5988_s10 + $0x1d8] sm:$0xff] %v346_v59  ;;  %v348_v60 = vld [vmem:[%s5983_s9 + $0x3c0] sm:$0xff]  ;;  %v350_v61 = vld [vmem:[%s5983_s9 + $0x3c8] sm:$0xff] }
  0x34   : > { %v352_v62 = vld [vmem:[%s5983_s9 + $0x3e0] sm:$0xff]  ;;  %349 = vst [vmem:[%s5988_s10 + $0x1e0] sm:$0xff] %v348_v60  ;;  %351 = vst [vmem:[%s5988_s10 + $0x1e8] sm:$0xff] %v350_v61  ;;  %v354_v63 = vld [vmem:[%s5983_s9 + $0x3e8] sm:$0xff] }
  0x35   : > { %353 = vst [vmem:[%s5988_s10 + $0x1f0] sm:$0xff] %v352_v62  ;;  %v356_v0 = vld [vmem:[%s5983_s9 + $0x400] sm:$0xff]  ;;  %v358_v1 = vld [vmem:[%s5983_s9 + $0x408] sm:$0xff]  ;;  %355 = vst [vmem:[%s5988_s10 + $0x1f8] sm:$0xff] %v354_v63 }
  0x36   : > { %357 = vst [vmem:[%s5988_s10 + $0x200] sm:$0xff] %v356_v0  ;;  %359 = vst [vmem:[%s5988_s10 + $0x208] sm:$0xff] %v358_v1  ;;  %v360_v2 = vld [vmem:[%s5983_s9 + $0x420] sm:$0xff]  ;;  %v362_v3 = vld [vmem:[%s5983_s9 + $0x428] sm:$0xff] }
  0x37   : > { %v364_v4 = vld [vmem:[%s5983_s9 + $0x440] sm:$0xff]  ;;  %361 = vst [vmem:[%s5988_s10 + $0x210] sm:$0xff] %v360_v2  ;;  %363 = vst [vmem:[%s5988_s10 + $0x218] sm:$0xff] %v362_v3  ;;  %v366_v5 = vld [vmem:[%s5983_s9 + $0x448] sm:$0xff] }
  0x38   : > { %365 = vst [vmem:[%s5988_s10 + $0x220] sm:$0xff] %v364_v4  ;;  %v368_v6 = vld [vmem:[%s5983_s9 + $0x460] sm:$0xff]  ;;  %v370_v7 = vld [vmem:[%s5983_s9 + $0x468] sm:$0xff]  ;;  %367 = vst [vmem:[%s5988_s10 + $0x228] sm:$0xff] %v366_v5 }
  0x39   : > { %369 = vst [vmem:[%s5988_s10 + $0x230] sm:$0xff] %v368_v6  ;;  %371 = vst [vmem:[%s5988_s10 + $0x238] sm:$0xff] %v370_v7  ;;  %v372_v8 = vld [vmem:[%s5983_s9 + $0x480] sm:$0xff]  ;;  %v374_v9 = vld [vmem:[%s5983_s9 + $0x488] sm:$0xff] }
  0x3a   : > { %v376_v10 = vld [vmem:[%s5983_s9 + $0x4a0] sm:$0xff]  ;;  %373 = vst [vmem:[%s5988_s10 + $0x240] sm:$0xff] %v372_v8  ;;  %375 = vst [vmem:[%s5988_s10 + $0x248] sm:$0xff] %v374_v9  ;;  %v378_v11 = vld [vmem:[%s5983_s9 + $0x4a8] sm:$0xff] }
  0x3b   : > { %377 = vst [vmem:[%s5988_s10 + $0x250] sm:$0xff] %v376_v10  ;;  %v380_v12 = vld [vmem:[%s5983_s9 + $0x4c0] sm:$0xff]  ;;  %v382_v13 = vld [vmem:[%s5983_s9 + $0x4c8] sm:$0xff]  ;;  %379 = vst [vmem:[%s5988_s10 + $0x258] sm:$0xff] %v378_v11 }
  0x3c   : > { %381 = vst [vmem:[%s5988_s10 + $0x260] sm:$0xff] %v380_v12  ;;  %383 = vst [vmem:[%s5988_s10 + $0x268] sm:$0xff] %v382_v13  ;;  %v384_v14 = vld [vmem:[%s5983_s9 + $0x4e0] sm:$0xff]  ;;  %v386_v15 = vld [vmem:[%s5983_s9 + $0x4e8] sm:$0xff] }
  0x3d   : > { %v388_v16 = vld [vmem:[%s5983_s9 + $0x500] sm:$0xff]  ;;  %385 = vst [vmem:[%s5988_s10 + $0x270] sm:$0xff] %v384_v14  ;;  %387 = vst [vmem:[%s5988_s10 + $0x278] sm:$0xff] %v386_v15  ;;  %v390_v17 = vld [vmem:[%s5983_s9 + $0x508] sm:$0xff] }
  0x3e   : > { %389 = vst [vmem:[%s5988_s10 + $0x280] sm:$0xff] %v388_v16  ;;  %v392_v18 = vld [vmem:[%s5983_s9 + $0x520] sm:$0xff]  ;;  %v394_v19 = vld [vmem:[%s5983_s9 + $0x528] sm:$0xff]  ;;  %391 = vst [vmem:[%s5988_s10 + $0x288] sm:$0xff] %v390_v17 }
  0x3f   : > { %393 = vst [vmem:[%s5988_s10 + $0x290] sm:$0xff] %v392_v18  ;;  %395 = vst [vmem:[%s5988_s10 + $0x298] sm:$0xff] %v394_v19  ;;  %v396_v20 = vld [vmem:[%s5983_s9 + $0x540] sm:$0xff]  ;;  %v398_v21 = vld [vmem:[%s5983_s9 + $0x548] sm:$0xff] }
  0x40   : > { %v400_v22 = vld [vmem:[%s5983_s9 + $0x560] sm:$0xff]  ;;  %397 = vst [vmem:[%s5988_s10 + $0x2a0] sm:$0xff] %v396_v20  ;;  %399 = vst [vmem:[%s5988_s10 + $0x2a8] sm:$0xff] %v398_v21  ;;  %v402_v23 = vld [vmem:[%s5983_s9 + $0x568] sm:$0xff] }
  0x41   : > { %401 = vst [vmem:[%s5988_s10 + $0x2b0] sm:$0xff] %v400_v22  ;;  %v404_v24 = vld [vmem:[%s5983_s9 + $0x580] sm:$0xff]  ;;  %v406_v25 = vld [vmem:[%s5983_s9 + $0x588] sm:$0xff]  ;;  %403 = vst [vmem:[%s5988_s10 + $0x2b8] sm:$0xff] %v402_v23 }
  0x42   : > { %405 = vst [vmem:[%s5988_s10 + $0x2c0] sm:$0xff] %v404_v24  ;;  %407 = vst [vmem:[%s5988_s10 + $0x2c8] sm:$0xff] %v406_v25  ;;  %v408_v26 = vld [vmem:[%s5983_s9 + $0x5a0] sm:$0xff]  ;;  %v410_v27 = vld [vmem:[%s5983_s9 + $0x5a8] sm:$0xff] }
  0x43   : > { %v412_v28 = vld [vmem:[%s5983_s9 + $0x5c0] sm:$0xff]  ;;  %409 = vst [vmem:[%s5988_s10 + $0x2d0] sm:$0xff] %v408_v26  ;;  %411 = vst [vmem:[%s5988_s10 + $0x2d8] sm:$0xff] %v410_v27  ;;  %v414_v29 = vld [vmem:[%s5983_s9 + $0x5c8] sm:$0xff] }
  0x44   : > { %413 = vst [vmem:[%s5988_s10 + $0x2e0] sm:$0xff] %v412_v28  ;;  %v416_v30 = vld [vmem:[%s5983_s9 + $0x5e0] sm:$0xff]  ;;  %v418_v31 = vld [vmem:[%s5983_s9 + $0x5e8] sm:$0xff]  ;;  %415 = vst [vmem:[%s5988_s10 + $0x2e8] sm:$0xff] %v414_v29 }
  0x45   : > { %417 = vst [vmem:[%s5988_s10 + $0x2f0] sm:$0xff] %v416_v30  ;;  %419 = vst [vmem:[%s5988_s10 + $0x2f8] sm:$0xff] %v418_v31  ;;  %v420_v32 = vld [vmem:[%s5983_s9 + $0x600] sm:$0xff]  ;;  %v422_v33 = vld [vmem:[%s5983_s9 + $0x608] sm:$0xff] }
  0x46   : > { %v424_v34 = vld [vmem:[%s5983_s9 + $0x620] sm:$0xff]  ;;  %421 = vst [vmem:[%s5988_s10 + $0x300] sm:$0xff] %v420_v32  ;;  %423 = vst [vmem:[%s5988_s10 + $0x308] sm:$0xff] %v422_v33  ;;  %v426_v35 = vld [vmem:[%s5983_s9 + $0x628] sm:$0xff] }
  0x47   : > { %425 = vst [vmem:[%s5988_s10 + $0x310] sm:$0xff] %v424_v34  ;;  %v428_v36 = vld [vmem:[%s5983_s9 + $0x640] sm:$0xff]  ;;  %v430_v37 = vld [vmem:[%s5983_s9 + $0x648] sm:$0xff]  ;;  %427 = vst [vmem:[%s5988_s10 + $0x318] sm:$0xff] %v426_v35 }
  0x48   : > { %429 = vst [vmem:[%s5988_s10 + $0x320] sm:$0xff] %v428_v36  ;;  %431 = vst [vmem:[%s5988_s10 + $0x328] sm:$0xff] %v430_v37  ;;  %v432_v38 = vld [vmem:[%s5983_s9 + $0x660] sm:$0xff]  ;;  %v434_v39 = vld [vmem:[%s5983_s9 + $0x668] sm:$0xff] }
  0x49   : > { %v436_v40 = vld [vmem:[%s5983_s9 + $0x680] sm:$0xff]  ;;  %433 = vst [vmem:[%s5988_s10 + $0x330] sm:$0xff] %v432_v38  ;;  %435 = vst [vmem:[%s5988_s10 + $0x338] sm:$0xff] %v434_v39  ;;  %v438_v41 = vld [vmem:[%s5983_s9 + $0x688] sm:$0xff] }
  0x4a   : > { %437 = vst [vmem:[%s5988_s10 + $0x340] sm:$0xff] %v436_v40  ;;  %v440_v42 = vld [vmem:[%s5983_s9 + $0x6a0] sm:$0xff]  ;;  %v442_v43 = vld [vmem:[%s5983_s9 + $0x6a8] sm:$0xff]  ;;  %439 = vst [vmem:[%s5988_s10 + $0x348] sm:$0xff] %v438_v41 }
  0x4b   : > { %441 = vst [vmem:[%s5988_s10 + $0x350] sm:$0xff] %v440_v42  ;;  %443 = vst [vmem:[%s5988_s10 + $0x358] sm:$0xff] %v442_v43  ;;  %v444_v44 = vld [vmem:[%s5983_s9 + $0x6c0] sm:$0xff]  ;;  %v446_v45 = vld [vmem:[%s5983_s9 + $0x6c8] sm:$0xff] }
  0x4c   : > { %v448_v46 = vld [vmem:[%s5983_s9 + $0x6e0] sm:$0xff]  ;;  %445 = vst [vmem:[%s5988_s10 + $0x360] sm:$0xff] %v444_v44  ;;  %447 = vst [vmem:[%s5988_s10 + $0x368] sm:$0xff] %v446_v45  ;;  %v450_v47 = vld [vmem:[%s5983_s9 + $0x6e8] sm:$0xff] }
  0x4d   : > { %449 = vst [vmem:[%s5988_s10 + $0x370] sm:$0xff] %v448_v46  ;;  %v452_v48 = vld [vmem:[%s5983_s9 + $0x700] sm:$0xff]  ;;  %v454_v49 = vld [vmem:[%s5983_s9 + $0x708] sm:$0xff]  ;;  %451 = vst [vmem:[%s5988_s10 + $0x378] sm:$0xff] %v450_v47 }
  0x4e   : > { %453 = vst [vmem:[%s5988_s10 + $0x380] sm:$0xff] %v452_v48  ;;  %455 = vst [vmem:[%s5988_s10 + $0x388] sm:$0xff] %v454_v49  ;;  %v456_v50 = vld [vmem:[%s5983_s9 + $0x720] sm:$0xff]  ;;  %v458_v51 = vld [vmem:[%s5983_s9 + $0x728] sm:$0xff] }
  0x4f   : > { %v460_v52 = vld [vmem:[%s5983_s9 + $0x740] sm:$0xff]  ;;  %457 = vst [vmem:[%s5988_s10 + $0x390] sm:$0xff] %v456_v50  ;;  %459 = vst [vmem:[%s5988_s10 + $0x398] sm:$0xff] %v458_v51  ;;  %v462_v53 = vld [vmem:[%s5983_s9 + $0x748] sm:$0xff] }
  0x50   : > { %461 = vst [vmem:[%s5988_s10 + $0x3a0] sm:$0xff] %v460_v52  ;;  %v464_v54 = vld [vmem:[%s5983_s9 + $0x760] sm:$0xff]  ;;  %v466_v55 = vld [vmem:[%s5983_s9 + $0x768] sm:$0xff]  ;;  %463 = vst [vmem:[%s5988_s10 + $0x3a8] sm:$0xff] %v462_v53 }
  0x51   : > { %465 = vst [vmem:[%s5988_s10 + $0x3b0] sm:$0xff] %v464_v54  ;;  %467 = vst [vmem:[%s5988_s10 + $0x3b8] sm:$0xff] %v466_v55  ;;  %v468_v56 = vld [vmem:[%s5983_s9 + $0x780] sm:$0xff]  ;;  %v470_v57 = vld [vmem:[%s5983_s9 + $0x788] sm:$0xff] }
  0x52   : > { %v472_v58 = vld [vmem:[%s5983_s9 + $0x7a0] sm:$0xff]  ;;  %469 = vst [vmem:[%s5988_s10 + $0x3c0] sm:$0xff] %v468_v56  ;;  %471 = vst [vmem:[%s5988_s10 + $0x3c8] sm:$0xff] %v470_v57  ;;  %v474_v59 = vld [vmem:[%s5983_s9 + $0x7a8] sm:$0xff] }
  0x53   : > { %473 = vst [vmem:[%s5988_s10 + $0x3d0] sm:$0xff] %v472_v58  ;;  %v476_v60 = vld [vmem:[%s5983_s9 + $0x7c0] sm:$0xff]  ;;  %v478_v61 = vld [vmem:[%s5983_s9 + $0x7c8] sm:$0xff]  ;;  %475 = vst [vmem:[%s5988_s10 + $0x3d8] sm:$0xff] %v474_v59 }
  0x54   : > { %477 = vst [vmem:[%s5988_s10 + $0x3e0] sm:$0xff] %v476_v60  ;;  %479 = vst [vmem:[%s5988_s10 + $0x3e8] sm:$0xff] %v478_v61  ;;  %v480_v62 = vld [vmem:[%s5983_s9 + $0x7e0] sm:$0xff]  ;;  %v482_v63 = vld [vmem:[%s5983_s9 + $0x7e8] sm:$0xff] }
  0x55   : > { %v484_v0 = vld [vmem:[%s5983_s9 + $0x800] sm:$0xff]  ;;  %481 = vst [vmem:[%s5988_s10 + $0x3f0] sm:$0xff] %v480_v62  ;;  %483 = vst [vmem:[%s5988_s10 + $0x3f8] sm:$0xff] %v482_v63  ;;  %v486_v1 = vld [vmem:[%s5983_s9 + $0x808] sm:$0xff] }
  0x56   : > { %485 = vst [vmem:[%s5988_s10 + $0x400] sm:$0xff] %v484_v0  ;;  %v488_v2 = vld [vmem:[%s5983_s9 + $0x820] sm:$0xff]  ;;  %v490_v3 = vld [vmem:[%s5983_s9 + $0x828] sm:$0xff]  ;;  %487 = vst [vmem:[%s5988_s10 + $0x408] sm:$0xff] %v486_v1 }
  0x57   : > { %489 = vst [vmem:[%s5988_s10 + $0x410] sm:$0xff] %v488_v2  ;;  %491 = vst [vmem:[%s5988_s10 + $0x418] sm:$0xff] %v490_v3  ;;  %v492_v4 = vld [vmem:[%s5983_s9 + $0x840] sm:$0xff]  ;;  %v494_v5 = vld [vmem:[%s5983_s9 + $0x848] sm:$0xff] }
  0x58   : > { %v496_v6 = vld [vmem:[%s5983_s9 + $0x860] sm:$0xff]  ;;  %493 = vst [vmem:[%s5988_s10 + $0x420] sm:$0xff] %v492_v4  ;;  %495 = vst [vmem:[%s5988_s10 + $0x428] sm:$0xff] %v494_v5  ;;  %v498_v7 = vld [vmem:[%s5983_s9 + $0x868] sm:$0xff] }
  0x59   : > { %497 = vst [vmem:[%s5988_s10 + $0x430] sm:$0xff] %v496_v6  ;;  %v500_v8 = vld [vmem:[%s5983_s9 + $0x880] sm:$0xff]  ;;  %v502_v9 = vld [vmem:[%s5983_s9 + $0x888] sm:$0xff]  ;;  %499 = vst [vmem:[%s5988_s10 + $0x438] sm:$0xff] %v498_v7 }
  0x5a   : > { %501 = vst [vmem:[%s5988_s10 + $0x440] sm:$0xff] %v500_v8  ;;  %503 = vst [vmem:[%s5988_s10 + $0x448] sm:$0xff] %v502_v9  ;;  %v504_v10 = vld [vmem:[%s5983_s9 + $0x8a0] sm:$0xff]  ;;  %v506_v11 = vld [vmem:[%s5983_s9 + $0x8a8] sm:$0xff] }
  0x5b   : > { %v508_v12 = vld [vmem:[%s5983_s9 + $0x8c0] sm:$0xff]  ;;  %505 = vst [vmem:[%s5988_s10 + $0x450] sm:$0xff] %v504_v10  ;;  %507 = vst [vmem:[%s5988_s10 + $0x458] sm:$0xff] %v506_v11  ;;  %v510_v13 = vld [vmem:[%s5983_s9 + $0x8c8] sm:$0xff] }
  0x5c   : > { %509 = vst [vmem:[%s5988_s10 + $0x460] sm:$0xff] %v508_v12  ;;  %v512_v14 = vld [vmem:[%s5983_s9 + $0x8e0] sm:$0xff]  ;;  %v514_v15 = vld [vmem:[%s5983_s9 + $0x8e8] sm:$0xff]  ;;  %511 = vst [vmem:[%s5988_s10 + $0x468] sm:$0xff] %v510_v13 }
  0x5d   : > { %513 = vst [vmem:[%s5988_s10 + $0x470] sm:$0xff] %v512_v14  ;;  %515 = vst [vmem:[%s5988_s10 + $0x478] sm:$0xff] %v514_v15  ;;  %v516_v16 = vld [vmem:[%s5983_s9 + $0x900] sm:$0xff]  ;;  %v518_v17 = vld [vmem:[%s5983_s9 + $0x908] sm:$0xff] }
  0x5e   : > { %v520_v18 = vld [vmem:[%s5983_s9 + $0x920] sm:$0xff]  ;;  %517 = vst [vmem:[%s5988_s10 + $0x480] sm:$0xff] %v516_v16  ;;  %519 = vst [vmem:[%s5988_s10 + $0x488] sm:$0xff] %v518_v17  ;;  %v522_v19 = vld [vmem:[%s5983_s9 + $0x928] sm:$0xff] }
  0x5f   : > { %521 = vst [vmem:[%s5988_s10 + $0x490] sm:$0xff] %v520_v18  ;;  %v524_v20 = vld [vmem:[%s5983_s9 + $0x940] sm:$0xff]  ;;  %v526_v21 = vld [vmem:[%s5983_s9 + $0x948] sm:$0xff]  ;;  %523 = vst [vmem:[%s5988_s10 + $0x498] sm:$0xff] %v522_v19 }
  0x60   : > { %525 = vst [vmem:[%s5988_s10 + $0x4a0] sm:$0xff] %v524_v20  ;;  %527 = vst [vmem:[%s5988_s10 + $0x4a8] sm:$0xff] %v526_v21  ;;  %v528_v22 = vld [vmem:[%s5983_s9 + $0x960] sm:$0xff]  ;;  %v530_v23 = vld [vmem:[%s5983_s9 + $0x968] sm:$0xff] }
  0x61   : > { %v532_v24 = vld [vmem:[%s5983_s9 + $0x980] sm:$0xff]  ;;  %529 = vst [vmem:[%s5988_s10 + $0x4b0] sm:$0xff] %v528_v22  ;;  %531 = vst [vmem:[%s5988_s10 + $0x4b8] sm:$0xff] %v530_v23  ;;  %v534_v25 = vld [vmem:[%s5983_s9 + $0x988] sm:$0xff] }
  0x62   : > { %533 = vst [vmem:[%s5988_s10 + $0x4c0] sm:$0xff] %v532_v24  ;;  %v536_v26 = vld [vmem:[%s5983_s9 + $0x9a0] sm:$0xff]  ;;  %v538_v27 = vld [vmem:[%s5983_s9 + $0x9a8] sm:$0xff]  ;;  %535 = vst [vmem:[%s5988_s10 + $0x4c8] sm:$0xff] %v534_v25 }
  0x63   : > { %537 = vst [vmem:[%s5988_s10 + $0x4d0] sm:$0xff] %v536_v26  ;;  %539 = vst [vmem:[%s5988_s10 + $0x4d8] sm:$0xff] %v538_v27  ;;  %v540_v28 = vld [vmem:[%s5983_s9 + $0x9c0] sm:$0xff]  ;;  %v542_v29 = vld [vmem:[%s5983_s9 + $0x9c8] sm:$0xff] }
  0x64   : > { %v544_v30 = vld [vmem:[%s5983_s9 + $0x9e0] sm:$0xff]  ;;  %541 = vst [vmem:[%s5988_s10 + $0x4e0] sm:$0xff] %v540_v28  ;;  %543 = vst [vmem:[%s5988_s10 + $0x4e8] sm:$0xff] %v542_v29  ;;  %v546_v31 = vld [vmem:[%s5983_s9 + $0x9e8] sm:$0xff] }
  0x65   : > { %545 = vst [vmem:[%s5988_s10 + $0x4f0] sm:$0xff] %v544_v30  ;;  %v548_v32 = vld [vmem:[%s5983_s9 + $0xa00] sm:$0xff]  ;;  %v550_v33 = vld [vmem:[%s5983_s9 + $0xa08] sm:$0xff]  ;;  %547 = vst [vmem:[%s5988_s10 + $0x4f8] sm:$0xff] %v546_v31 }
  0x66   : > { %549 = vst [vmem:[%s5988_s10 + $0x500] sm:$0xff] %v548_v32  ;;  %551 = vst [vmem:[%s5988_s10 + $0x508] sm:$0xff] %v550_v33  ;;  %v552_v34 = vld [vmem:[%s5983_s9 + $0xa20] sm:$0xff]  ;;  %v554_v35 = vld [vmem:[%s5983_s9 + $0xa28] sm:$0xff] }
  0x67   : > { %v556_v36 = vld [vmem:[%s5983_s9 + $0xa40] sm:$0xff]  ;;  %553 = vst [vmem:[%s5988_s10 + $0x510] sm:$0xff] %v552_v34  ;;  %555 = vst [vmem:[%s5988_s10 + $0x518] sm:$0xff] %v554_v35  ;;  %v558_v37 = vld [vmem:[%s5983_s9 + $0xa48] sm:$0xff] }
  0x68   : > { %557 = vst [vmem:[%s5988_s10 + $0x520] sm:$0xff] %v556_v36  ;;  %v560_v38 = vld [vmem:[%s5983_s9 + $0xa60] sm:$0xff]  ;;  %v562_v39 = vld [vmem:[%s5983_s9 + $0xa68] sm:$0xff]  ;;  %559 = vst [vmem:[%s5988_s10 + $0x528] sm:$0xff] %v558_v37 }
  0x69   : > { %561 = vst [vmem:[%s5988_s10 + $0x530] sm:$0xff] %v560_v38  ;;  %563 = vst [vmem:[%s5988_s10 + $0x538] sm:$0xff] %v562_v39  ;;  %v564_v40 = vld [vmem:[%s5983_s9 + $0xa80] sm:$0xff]  ;;  %v566_v41 = vld [vmem:[%s5983_s9 + $0xa88] sm:$0xff] }
  0x6a   : > { %v568_v42 = vld [vmem:[%s5983_s9 + $0xaa0] sm:$0xff]  ;;  %565 = vst [vmem:[%s5988_s10 + $0x540] sm:$0xff] %v564_v40  ;;  %567 = vst [vmem:[%s5988_s10 + $0x548] sm:$0xff] %v566_v41  ;;  %v570_v43 = vld [vmem:[%s5983_s9 + $0xaa8] sm:$0xff] }
  0x6b   : > { %569 = vst [vmem:[%s5988_s10 + $0x550] sm:$0xff] %v568_v42  ;;  %v572_v44 = vld [vmem:[%s5983_s9 + $0xac0] sm:$0xff]  ;;  %v574_v45 = vld [vmem:[%s5983_s9 + $0xac8] sm:$0xff]  ;;  %571 = vst [vmem:[%s5988_s10 + $0x558] sm:$0xff] %v570_v43 }
  0x6c   : > { %573 = vst [vmem:[%s5988_s10 + $0x560] sm:$0xff] %v572_v44  ;;  %575 = vst [vmem:[%s5988_s10 + $0x568] sm:$0xff] %v574_v45  ;;  %v576_v46 = vld [vmem:[%s5983_s9 + $0xae0] sm:$0xff]  ;;  %v578_v47 = vld [vmem:[%s5983_s9 + $0xae8] sm:$0xff] }
  0x6d   : > { %v580_v48 = vld [vmem:[%s5983_s9 + $0xb00] sm:$0xff]  ;;  %577 = vst [vmem:[%s5988_s10 + $0x570] sm:$0xff] %v576_v46  ;;  %579 = vst [vmem:[%s5988_s10 + $0x578] sm:$0xff] %v578_v47  ;;  %v582_v49 = vld [vmem:[%s5983_s9 + $0xb08] sm:$0xff] }
  0x6e   : > { %581 = vst [vmem:[%s5988_s10 + $0x580] sm:$0xff] %v580_v48  ;;  %v584_v50 = vld [vmem:[%s5983_s9 + $0xb20] sm:$0xff]  ;;  %v586_v51 = vld [vmem:[%s5983_s9 + $0xb28] sm:$0xff]  ;;  %583 = vst [vmem:[%s5988_s10 + $0x588] sm:$0xff] %v582_v49 }
  0x6f   : > { %585 = vst [vmem:[%s5988_s10 + $0x590] sm:$0xff] %v584_v50  ;;  %587 = vst [vmem:[%s5988_s10 + $0x598] sm:$0xff] %v586_v51  ;;  %v588_v52 = vld [vmem:[%s5983_s9 + $0xb40] sm:$0xff]  ;;  %v590_v53 = vld [vmem:[%s5983_s9 + $0xb48] sm:$0xff] }
  0x70   : > { %v592_v54 = vld [vmem:[%s5983_s9 + $0xb60] sm:$0xff]  ;;  %589 = vst [vmem:[%s5988_s10 + $0x5a0] sm:$0xff] %v588_v52  ;;  %591 = vst [vmem:[%s5988_s10 + $0x5a8] sm:$0xff] %v590_v53  ;;  %v594_v55 = vld [vmem:[%s5983_s9 + $0xb68] sm:$0xff] }
  0x71   : > { %593 = vst [vmem:[%s5988_s10 + $0x5b0] sm:$0xff] %v592_v54  ;;  %v596_v56 = vld [vmem:[%s5983_s9 + $0xb80] sm:$0xff]  ;;  %v598_v57 = vld [vmem:[%s5983_s9 + $0xb88] sm:$0xff]  ;;  %595 = vst [vmem:[%s5988_s10 + $0x5b8] sm:$0xff] %v594_v55 }
  0x72   : > { %597 = vst [vmem:[%s5988_s10 + $0x5c0] sm:$0xff] %v596_v56  ;;  %599 = vst [vmem:[%s5988_s10 + $0x5c8] sm:$0xff] %v598_v57  ;;  %v600_v58 = vld [vmem:[%s5983_s9 + $0xba0] sm:$0xff]  ;;  %v602_v59 = vld [vmem:[%s5983_s9 + $0xba8] sm:$0xff] }
  0x73   : > { %v604_v60 = vld [vmem:[%s5983_s9 + $0xbc0] sm:$0xff]  ;;  %601 = vst [vmem:[%s5988_s10 + $0x5d0] sm:$0xff] %v600_v58  ;;  %603 = vst [vmem:[%s5988_s10 + $0x5d8] sm:$0xff] %v602_v59  ;;  %v606_v61 = vld [vmem:[%s5983_s9 + $0xbc8] sm:$0xff] }
  0x74   : > { %605 = vst [vmem:[%s5988_s10 + $0x5e0] sm:$0xff] %v604_v60  ;;  %v608_v62 = vld [vmem:[%s5983_s9 + $0xbe0] sm:$0xff]  ;;  %v610_v63 = vld [vmem:[%s5983_s9 + $0xbe8] sm:$0xff]  ;;  %607 = vst [vmem:[%s5988_s10 + $0x5e8] sm:$0xff] %v606_v61 }
  0x75   : > { %609 = vst [vmem:[%s5988_s10 + $0x5f0] sm:$0xff] %v608_v62  ;;  %611 = vst [vmem:[%s5988_s10 + $0x5f8] sm:$0xff] %v610_v63  ;;  %v612_v0 = vld [vmem:[%s5983_s9 + $0xc00] sm:$0xff]  ;;  %v614_v1 = vld [vmem:[%s5983_s9 + $0xc08] sm:$0xff] }
  0x76   : > { %v616_v2 = vld [vmem:[%s5983_s9 + $0xc20] sm:$0xff]  ;;  %613 = vst [vmem:[%s5988_s10 + $0x600] sm:$0xff] %v612_v0  ;;  %615 = vst [vmem:[%s5988_s10 + $0x608] sm:$0xff] %v614_v1  ;;  %v618_v3 = vld [vmem:[%s5983_s9 + $0xc28] sm:$0xff] }
  0x77   : > { %617 = vst [vmem:[%s5988_s10 + $0x610] sm:$0xff] %v616_v2  ;;  %v620_v4 = vld [vmem:[%s5983_s9 + $0xc40] sm:$0xff]  ;;  %v622_v5 = vld [vmem:[%s5983_s9 + $0xc48] sm:$0xff]  ;;  %619 = vst [vmem:[%s5988_s10 + $0x618] sm:$0xff] %v618_v3 }
  0x78   : > { %621 = vst [vmem:[%s5988_s10 + $0x620] sm:$0xff] %v620_v4  ;;  %623 = vst [vmem:[%s5988_s10 + $0x628] sm:$0xff] %v622_v5  ;;  %v624_v6 = vld [vmem:[%s5983_s9 + $0xc60] sm:$0xff]  ;;  %v626_v7 = vld [vmem:[%s5983_s9 + $0xc68] sm:$0xff] }
  0x79   : > { %v628_v8 = vld [vmem:[%s5983_s9 + $0xc80] sm:$0xff]  ;;  %625 = vst [vmem:[%s5988_s10 + $0x630] sm:$0xff] %v624_v6  ;;  %627 = vst [vmem:[%s5988_s10 + $0x638] sm:$0xff] %v626_v7  ;;  %v630_v9 = vld [vmem:[%s5983_s9 + $0xc88] sm:$0xff] }
  0x7a   : > { %629 = vst [vmem:[%s5988_s10 + $0x640] sm:$0xff] %v628_v8  ;;  %v632_v10 = vld [vmem:[%s5983_s9 + $0xca0] sm:$0xff]  ;;  %v634_v11 = vld [vmem:[%s5983_s9 + $0xca8] sm:$0xff]  ;;  %631 = vst [vmem:[%s5988_s10 + $0x648] sm:$0xff] %v630_v9 }
  0x7b   : > { %633 = vst [vmem:[%s5988_s10 + $0x650] sm:$0xff] %v632_v10  ;;  %635 = vst [vmem:[%s5988_s10 + $0x658] sm:$0xff] %v634_v11  ;;  %v636_v12 = vld [vmem:[%s5983_s9 + $0xcc0] sm:$0xff]  ;;  %v638_v13 = vld [vmem:[%s5983_s9 + $0xcc8] sm:$0xff] }
  0x7c   : > { %v640_v14 = vld [vmem:[%s5983_s9 + $0xce0] sm:$0xff]  ;;  %637 = vst [vmem:[%s5988_s10 + $0x660] sm:$0xff] %v636_v12  ;;  %639 = vst [vmem:[%s5988_s10 + $0x668] sm:$0xff] %v638_v13  ;;  %v642_v15 = vld [vmem:[%s5983_s9 + $0xce8] sm:$0xff] }
  0x7d   : > { %641 = vst [vmem:[%s5988_s10 + $0x670] sm:$0xff] %v640_v14  ;;  %v644_v16 = vld [vmem:[%s5983_s9 + $0xd00] sm:$0xff]  ;;  %v646_v17 = vld [vmem:[%s5983_s9 + $0xd08] sm:$0xff]  ;;  %643 = vst [vmem:[%s5988_s10 + $0x678] sm:$0xff] %v642_v15 }
  0x7e   : > { %645 = vst [vmem:[%s5988_s10 + $0x680] sm:$0xff] %v644_v16  ;;  %647 = vst [vmem:[%s5988_s10 + $0x688] sm:$0xff] %v646_v17  ;;  %v648_v18 = vld [vmem:[%s5983_s9 + $0xd20] sm:$0xff]  ;;  %v650_v19 = vld [vmem:[%s5983_s9 + $0xd28] sm:$0xff] }
  0x7f   : > { %v652_v20 = vld [vmem:[%s5983_s9 + $0xd40] sm:$0xff]  ;;  %649 = vst [vmem:[%s5988_s10 + $0x690] sm:$0xff] %v648_v18  ;;  %651 = vst [vmem:[%s5988_s10 + $0x698] sm:$0xff] %v650_v19  ;;  %v654_v21 = vld [vmem:[%s5983_s9 + $0xd48] sm:$0xff] }
  0x80   : > { %653 = vst [vmem:[%s5988_s10 + $0x6a0] sm:$0xff] %v652_v20  ;;  %v656_v22 = vld [vmem:[%s5983_s9 + $0xd60] sm:$0xff]  ;;  %v658_v23 = vld [vmem:[%s5983_s9 + $0xd68] sm:$0xff]  ;;  %655 = vst [vmem:[%s5988_s10 + $0x6a8] sm:$0xff] %v654_v21 }
  0x81   : > { %657 = vst [vmem:[%s5988_s10 + $0x6b0] sm:$0xff] %v656_v22  ;;  %659 = vst [vmem:[%s5988_s10 + $0x6b8] sm:$0xff] %v658_v23  ;;  %v660_v24 = vld [vmem:[%s5983_s9 + $0xd80] sm:$0xff]  ;;  %v662_v25 = vld [vmem:[%s5983_s9 + $0xd88] sm:$0xff] }
  0x82   : > { %v664_v26 = vld [vmem:[%s5983_s9 + $0xda0] sm:$0xff]  ;;  %661 = vst [vmem:[%s5988_s10 + $0x6c0] sm:$0xff] %v660_v24  ;;  %663 = vst [vmem:[%s5988_s10 + $0x6c8] sm:$0xff] %v662_v25  ;;  %v666_v27 = vld [vmem:[%s5983_s9 + $0xda8] sm:$0xff] }
  0x83   : > { %665 = vst [vmem:[%s5988_s10 + $0x6d0] sm:$0xff] %v664_v26  ;;  %v668_v28 = vld [vmem:[%s5983_s9 + $0xdc0] sm:$0xff]  ;;  %v670_v29 = vld [vmem:[%s5983_s9 + $0xdc8] sm:$0xff]  ;;  %667 = vst [vmem:[%s5988_s10 + $0x6d8] sm:$0xff] %v666_v27 }
  0x84   : > { %669 = vst [vmem:[%s5988_s10 + $0x6e0] sm:$0xff] %v668_v28  ;;  %671 = vst [vmem:[%s5988_s10 + $0x6e8] sm:$0xff] %v670_v29  ;;  %v672_v30 = vld [vmem:[%s5983_s9 + $0xde0] sm:$0xff]  ;;  %v674_v31 = vld [vmem:[%s5983_s9 + $0xde8] sm:$0xff] }
  0x85   : > { %v676_v32 = vld [vmem:[%s5983_s9 + $0xe00] sm:$0xff]  ;;  %673 = vst [vmem:[%s5988_s10 + $0x6f0] sm:$0xff] %v672_v30  ;;  %675 = vst [vmem:[%s5988_s10 + $0x6f8] sm:$0xff] %v674_v31  ;;  %v678_v33 = vld [vmem:[%s5983_s9 + $0xe08] sm:$0xff] }
  0x86   : > { %677 = vst [vmem:[%s5988_s10 + $0x700] sm:$0xff] %v676_v32  ;;  %v680_v34 = vld [vmem:[%s5983_s9 + $0xe20] sm:$0xff]  ;;  %v682_v35 = vld [vmem:[%s5983_s9 + $0xe28] sm:$0xff]  ;;  %679 = vst [vmem:[%s5988_s10 + $0x708] sm:$0xff] %v678_v33 }
  0x87   : > { %681 = vst [vmem:[%s5988_s10 + $0x710] sm:$0xff] %v680_v34  ;;  %683 = vst [vmem:[%s5988_s10 + $0x718] sm:$0xff] %v682_v35  ;;  %v684_v36 = vld [vmem:[%s5983_s9 + $0xe40] sm:$0xff]  ;;  %v686_v37 = vld [vmem:[%s5983_s9 + $0xe48] sm:$0xff] }
  0x88   : > { %v688_v38 = vld [vmem:[%s5983_s9 + $0xe60] sm:$0xff]  ;;  %685 = vst [vmem:[%s5988_s10 + $0x720] sm:$0xff] %v684_v36  ;;  %687 = vst [vmem:[%s5988_s10 + $0x728] sm:$0xff] %v686_v37  ;;  %v690_v39 = vld [vmem:[%s5983_s9 + $0xe68] sm:$0xff] }
  0x89   : > { %689 = vst [vmem:[%s5988_s10 + $0x730] sm:$0xff] %v688_v38  ;;  %v692_v40 = vld [vmem:[%s5983_s9 + $0xe80] sm:$0xff]  ;;  %v694_v41 = vld [vmem:[%s5983_s9 + $0xe88] sm:$0xff]  ;;  %691 = vst [vmem:[%s5988_s10 + $0x738] sm:$0xff] %v690_v39 }
  0x8a   : > { %693 = vst [vmem:[%s5988_s10 + $0x740] sm:$0xff] %v692_v40  ;;  %695 = vst [vmem:[%s5988_s10 + $0x748] sm:$0xff] %v694_v41  ;;  %v696_v42 = vld [vmem:[%s5983_s9 + $0xea0] sm:$0xff]  ;;  %v698_v43 = vld [vmem:[%s5983_s9 + $0xea8] sm:$0xff] }
  0x8b   : > { %v700_v44 = vld [vmem:[%s5983_s9 + $0xec0] sm:$0xff]  ;;  %697 = vst [vmem:[%s5988_s10 + $0x750] sm:$0xff] %v696_v42  ;;  %699 = vst [vmem:[%s5988_s10 + $0x758] sm:$0xff] %v698_v43  ;;  %v702_v45 = vld [vmem:[%s5983_s9 + $0xec8] sm:$0xff] }
  0x8c   : > { %701 = vst [vmem:[%s5988_s10 + $0x760] sm:$0xff] %v700_v44  ;;  %v704_v46 = vld [vmem:[%s5983_s9 + $0xee0] sm:$0xff]  ;;  %v706_v47 = vld [vmem:[%s5983_s9 + $0xee8] sm:$0xff]  ;;  %703 = vst [vmem:[%s5988_s10 + $0x768] sm:$0xff] %v702_v45 }
  0x8d   : > { %705 = vst [vmem:[%s5988_s10 + $0x770] sm:$0xff] %v704_v46  ;;  %707 = vst [vmem:[%s5988_s10 + $0x778] sm:$0xff] %v706_v47  ;;  %v708_v48 = vld [vmem:[%s5983_s9 + $0xf00] sm:$0xff]  ;;  %v710_v49 = vld [vmem:[%s5983_s9 + $0xf08] sm:$0xff] }
  0x8e   : > { %v712_v50 = vld [vmem:[%s5983_s9 + $0xf20] sm:$0xff]  ;;  %709 = vst [vmem:[%s5988_s10 + $0x780] sm:$0xff] %v708_v48  ;;  %711 = vst [vmem:[%s5988_s10 + $0x788] sm:$0xff] %v710_v49  ;;  %v714_v51 = vld [vmem:[%s5983_s9 + $0xf28] sm:$0xff] }
  0x8f   : > { %713 = vst [vmem:[%s5988_s10 + $0x790] sm:$0xff] %v712_v50  ;;  %v716_v52 = vld [vmem:[%s5983_s9 + $0xf40] sm:$0xff]  ;;  %v718_v53 = vld [vmem:[%s5983_s9 + $0xf48] sm:$0xff]  ;;  %715 = vst [vmem:[%s5988_s10 + $0x798] sm:$0xff] %v714_v51 }
  0x90   : > { %717 = vst [vmem:[%s5988_s10 + $0x7a0] sm:$0xff] %v716_v52  ;;  %719 = vst [vmem:[%s5988_s10 + $0x7a8] sm:$0xff] %v718_v53  ;;  %v720_v54 = vld [vmem:[%s5983_s9 + $0xf60] sm:$0xff]  ;;  %v722_v55 = vld [vmem:[%s5983_s9 + $0xf68] sm:$0xff] }
  0x91   : > { %v724_v56 = vld [vmem:[%s5983_s9 + $0xf80] sm:$0xff]  ;;  %721 = vst [vmem:[%s5988_s10 + $0x7b0] sm:$0xff] %v720_v54  ;;  %723 = vst [vmem:[%s5988_s10 + $0x7b8] sm:$0xff] %v722_v55  ;;  %v726_v57 = vld [vmem:[%s5983_s9 + $0xf88] sm:$0xff] }
  0x92   : > { %725 = vst [vmem:[%s5988_s10 + $0x7c0] sm:$0xff] %v724_v56  ;;  %v728_v58 = vld [vmem:[%s5983_s9 + $0xfa0] sm:$0xff]  ;;  %v730_v59 = vld [vmem:[%s5983_s9 + $0xfa8] sm:$0xff]  ;;  %727 = vst [vmem:[%s5988_s10 + $0x7c8] sm:$0xff] %v726_v57 }
  0x93   : > { %729 = vst [vmem:[%s5988_s10 + $0x7d0] sm:$0xff] %v728_v58  ;;  %731 = vst [vmem:[%s5988_s10 + $0x7d8] sm:$0xff] %v730_v59  ;;  %v732_v60 = vld [vmem:[%s5983_s9 + $0xfc0] sm:$0xff]  ;;  %v734_v61 = vld [vmem:[%s5983_s9 + $0xfc8] sm:$0xff] }
  0x94   : > { %v736_v62 = vld [vmem:[%s5983_s9 + $0xfe0] sm:$0xff]  ;;  %733 = vst [vmem:[%s5988_s10 + $0x7e0] sm:$0xff] %v732_v60  ;;  %735 = vst [vmem:[%s5988_s10 + $0x7e8] sm:$0xff] %v734_v61  ;;  %v738_v63 = vld [vmem:[%s5983_s9 + $0xfe8] sm:$0xff] }
  0x95   : > { %737 = vst [vmem:[%s5988_s10 + $0x7f0] sm:$0xff] %v736_v62  ;;  %739 = vst [vmem:[%s5988_s10 + $0x7f8] sm:$0xff] %v738_v63 }
  0x96 PF: > { %p4854_p8 = scmp.ge.s32.totalorder %s5903_s22, 1  ;;  %p752_p9 = scmp.lt.s32.totalorder %s5903_s22, 3 }
  0x98   : > { %p753_p10 = pnand %p4854_p8, %p752_p9 }
  0x99   : > { %v822_v0 = vld [vmem:[%s7678_s1] sm:$0xff] (!%p753_p10)  ;;  %v823_v2 = vld [vmem:[%s7678_s1 + $0x8] sm:$0xff] (!%p753_p10)  ;;  %s759_s24 = sand.u32 (!%p753_p10), 1, %s5887_s18   ;;  %s4857_s13 = sshll.u32 (!%p753_p10), %s5895_s20, 2 }
  0x9a   : > { %756 = sbr.rel (%p753_p10) target bundleno = 927 (0x39f), region = 59  ;;  %v826_v1 = vld [vmem:[%s7678_s1 + $0x20] sm:$0xff] (!%p753_p10)  ;;  %v827_v4 = vld [vmem:[%s7678_s1 + $0x28] sm:$0xff] (!%p753_p10)  ;;  %s4855_s25 = sshll.u32 (!%p753_p10), %s759_s24, 11 }
  0x9b   : > { %v4859_v3 = vcombine.high (!%p753_p10), %v822_v0, %v826_v1  ;;  %v4858_v5 = vcombine.low (!%p753_p10), %v822_v0, %v826_v1  ;;  %v830_v6 = vld [vmem:[%s7678_s1 + $0x40] sm:$0xff] (!%p753_p10)  ;;  %v4861_v8 = vcombine.high (!%p753_p10), %v823_v2, %v827_v4  ;;  %v4860_v9 = vcombine.low (!%p753_p10), %v823_v2, %v827_v4  ;;  %v831_v11 = vld [vmem:[%s7678_s1 + $0x48] sm:$0xff] (!%p753_p10)  ;;  %s6978_s11 = scalar_lea.vmem (!%p753_p10), [#allocation2], %s4855_s25  ;;  %p804_p11 = scmp.lt.s32.totalorder (!%p753_p10), %s4857_s13, 7 }
  0x9c   : > { %v834_v7 = vld [vmem:[%s7678_s1 + $0x60] sm:$0xff] (!%p753_p10)  ;;  %v835_v12 = vld [vmem:[%s7678_s1 + $0x68] sm:$0xff] (!%p753_p10)  ;;  %s4856_s17 = sshll.u32 (!%p753_p10), %s759_s24, 6 }
  0x9d   : > { %v4867_v10 = vcombine.high (!%p753_p10), %v830_v6, %v834_v7  ;;  %v838_v13 = vld [vmem:[%s7678_s1 + $0x80] sm:$0xff] (!%p753_p10)  ;;  %2400 = vmatprep.subr.bf16.mxu0 (!%p753_p10), %v4859_v3  ;;  %v4869_v14 = vcombine.high (!%p753_p10), %v831_v11, %v835_v12  ;;  %v839_v16 = vld [vmem:[%s7678_s1 + $0x88] sm:$0xff] (!%p753_p10)  ;;  %2486 = vmatprep.subr.bf16.mxu1 (!%p753_p10), %v4861_v8  ;;  %v4866_v18 = vcombine.low (!%p753_p10), %v830_v6, %v834_v7  ;;  %s7638_s18 = scalar_lea.vmem (!%p753_p10), [#allocation3], %s4856_s17 }
  0x9e   : > { %v842_v15 = vld [vmem:[%s7678_s1 + $0xa0] sm:$0xff] (!%p753_p10)  ;;  %v843_v17 = vld [vmem:[%s7678_s1 + $0xa8] sm:$0xff] (!%p753_p10)  ;;  %2401 = vmatpush1.bf16.msra.mxu0 (!%p753_p10), %v4858_v5  ;;  %2487 = vmatpush1.bf16.msra.mxu1 (!%p753_p10), %v4860_v9  ;;  %v4868_v19 = vcombine.low (!%p753_p10), %v831_v11, %v835_v12 }
  0x9f   : > { %2402 = vmatprep.subr.bf16.mxu0 (!%p753_p10), %v4867_v10  ;;  %v4875_v20 = vcombine.high (!%p753_p10), %v838_v13, %v842_v15  ;;  %2488 = vmatprep.subr.bf16.mxu1 (!%p753_p10), %v4869_v14  ;;  %v4877_v21 = vcombine.high (!%p753_p10), %v839_v16, %v843_v17  ;;  %v846_v22 = vld [vmem:[%s7678_s1 + $0xc0] sm:$0xff] (!%p753_p10)  ;;  %v847_v24 = vld [vmem:[%s7678_s1 + $0xc8] sm:$0xff] (!%p753_p10)  ;;  %v4874_v26 = vcombine.low (!%p753_p10), %v838_v13, %v842_v15 }
  0xa0   : > { %v850_v23 = vld [vmem:[%s7678_s1 + $0xe0] sm:$0xff] (!%p753_p10)  ;;  %v851_v25 = vld [vmem:[%s7678_s1 + $0xe8] sm:$0xff] (!%p753_p10)  ;;  %v4876_v27 = vcombine.low (!%p753_p10), %v839_v16, %v843_v17 }
  0xa1   : > { %v4883_v28 = vcombine.high %v846_v22, %v850_v23  ;;  %v4885_v29 = vcombine.high %v847_v24, %v851_v25  ;;  %v854_v30 = vld [vmem:[%s7678_s1 + $0x100] sm:$0xff]  ;;  %v855_v32 = vld [vmem:[%s7678_s1 + $0x108] sm:$0xff]  ;;  %v4882_v34 = vcombine.low %v846_v22, %v850_v23  ;;  %v4884_v35 = vcombine.low %v847_v24, %v851_v25  ;;  %s7691_s13 = smov (!%p804_p11, %s4857_s13), 7  ;;  %s5376_s24 = sshll.u32 (%p5970_p6), %s5895_s20, 5 }
  0xa2   : > { %2403 = vmatpush1.bf16.msra.mxu0 %v4866_v18  ;;  %2489 = vmatpush1.bf16.msra.mxu1 %v4868_v19  ;;  %v858_v31 = vld [vmem:[%s7678_s1 + $0x120] sm:$0xff]  ;;  %v859_v33 = vld [vmem:[%s7678_s1 + $0x128] sm:$0xff]  ;;  %s806_s16 = scalar_lea.vmem %s7681_s4, %s7691_s13  ;;  %s4722_s26 = scalar_lea.vmem (%p5970_p6), %s7682_s5, %s5376_s24 }
  0xa3   : > { %2404 = vmatprep.subr.bf16.mxu0 %v4875_v20  ;;  %2490 = vmatprep.subr.bf16.mxu1 %v4877_v21  ;;  %v4891_v36 = vcombine.high %v854_v30, %v858_v31  ;;  %v4893_v37 = vcombine.high %v855_v32, %v859_v33  ;;  %v862_v38 = vld [vmem:[%s7678_s1 + $0x140] sm:$0xff]  ;;  %v863_v40 = vld [vmem:[%s7678_s1 + $0x148] sm:$0xff]  ;;  %v4890_v42 = vcombine.low %v854_v30, %v858_v31 }
  0xa4   : > { %v866_v39 = vld [vmem:[%s7678_s1 + $0x160] sm:$0xff]  ;;  %v867_v41 = vld [vmem:[%s7678_s1 + $0x168] sm:$0xff]  ;;  %v4892_v43 = vcombine.low %v855_v32, %v859_v33 }
  0xa5   : > { %v4899_v44 = vcombine.high %v862_v38, %v866_v39  ;;  %v4901_v45 = vcombine.high %v863_v40, %v867_v41  ;;  %v870_v46 = vld [vmem:[%s7678_s1 + $0x180] sm:$0xff]  ;;  %v871_v48 = vld [vmem:[%s7678_s1 + $0x188] sm:$0xff]  ;;  %v4898_v50 = vcombine.low %v862_v38, %v866_v39  ;;  %v4900_v51 = vcombine.low %v863_v40, %v867_v41 }
  0xa6   : > { %2405 = vmatpush1.bf16.msra.mxu0 %v4874_v26  ;;  %2491 = vmatpush1.bf16.msra.mxu1 %v4876_v27  ;;  %v874_v47 = vld [vmem:[%s7678_s1 + $0x1a0] sm:$0xff]  ;;  %v875_v49 = vld [vmem:[%s7678_s1 + $0x1a8] sm:$0xff] }
  0xa7   : > { %2406 = vmatprep.subr.bf16.mxu0 %v4883_v28  ;;  %2492 = vmatprep.subr.bf16.mxu1 %v4885_v29  ;;  %v4907_v52 = vcombine.high %v870_v46, %v874_v47  ;;  %v811_v53 = vld [vmem:[%s7677_s0 + $0x8] sm:$0xff]  ;;  %v4909_v55 = vcombine.high %v871_v48, %v875_v49  ;;  %v878_v56 = vld [vmem:[%s7678_s1 + $0x1c0] sm:$0xff]  ;;  %v4906_v61 = vcombine.low %v870_v46, %v874_v47 }
  0xa8   : > { %v815_v54 = vld [vmem:[%s7677_s0 + $0x28] sm:$0xff]  ;;  %v882_v57 = vld [vmem:[%s7678_s1 + $0x1e0] sm:$0xff]  ;;  %v4908_v62 = vcombine.low %v871_v48, %v875_v49 }
  0xa9   : > { %v6597_v58 = vpack.c.bf16 %v815_v54, %v811_v53  ;;  %v879_v59 = vld [vmem:[%s7678_s1 + $0x1c8] sm:$0xff]  ;;  %v4915_v63 = vcombine.high %v878_v56, %v882_v57  ;;  %v886_v1 = vld [vmem:[%s7678_s1 + $0x200] sm:$0xff]  ;;  %v4914_v5 = vcombine.low %v878_v56, %v882_v57 }
  0xaa   : > { %2407 = vmatpush1.bf16.msra.mxu0 %v4882_v34  ;;  %2493 = vmatpush1.bf16.msra.mxu1 %v4884_v35  ;;  %v883_v60 = vld [vmem:[%s7678_s1 + $0x1e8] sm:$0xff]  ;;  %v890_v2 = vld [vmem:[%s7678_s1 + $0x220] sm:$0xff] }
  0xab   : > { %2408 = vmatprep.subr.bf16.mxu0 %v4891_v36  ;;  %2494 = vmatprep.subr.bf16.mxu1 %v4893_v37  ;;  %v4917_v0 = vcombine.high %v879_v59, %v883_v60  ;;  %v887_v3 = vld [vmem:[%s7678_s1 + $0x208] sm:$0xff]  ;;  %v4916_v6 = vcombine.low %v879_v59, %v883_v60  ;;  %v4923_v7 = vcombine.high %v886_v1, %v890_v2  ;;  %v894_v9 = vld [vmem:[%s7678_s1 + $0x240] sm:$0xff] }
  0xac   : > { %2432 = vmatprep.mubr.bf16.mxu0 %v6597_v58  ;;  %2518 = vmatprep.mubr.bf16.mxu1 %v6597_v58  ;;  %v891_v4 = vld [vmem:[%s7678_s1 + $0x228] sm:$0xff]  ;;  %v898_v10 = vld [vmem:[%s7678_s1 + $0x260] sm:$0xff]  ;;  %v4922_v13 = vcombine.low %v886_v1, %v890_v2 }
  0xad   : > { %v4925_v8 = vcombine.high %v887_v3, %v891_v4  ;;  %v895_v11 = vld [vmem:[%s7678_s1 + $0x248] sm:$0xff]  ;;  %v4924_v14 = vcombine.low %v887_v3, %v891_v4  ;;  %v4931_v15 = vcombine.high %v894_v9, %v898_v10  ;;  %v902_v17 = vld [vmem:[%s7678_s1 + $0x280] sm:$0xff]  ;;  %v4930_v21 = vcombine.low %v894_v9, %v898_v10 }
  0xae   : > { %2409 = vmatpush1.bf16.msra.mxu0 %v4890_v42  ;;  %2495 = vmatpush1.bf16.msra.mxu1 %v4892_v43  ;;  %v899_v12 = vld [vmem:[%s7678_s1 + $0x268] sm:$0xff]  ;;  %v906_v18 = vld [vmem:[%s7678_s1 + $0x2a0] sm:$0xff] }
  0xaf   : > { %2410 = vmatprep.subr.bf16.mxu0 %v4899_v44  ;;  %2496 = vmatprep.subr.bf16.mxu1 %v4901_v45  ;;  %v4933_v16 = vcombine.high %v895_v11, %v899_v12  ;;  %v903_v19 = vld [vmem:[%s7678_s1 + $0x288] sm:$0xff]  ;;  %v4932_v22 = vcombine.low %v895_v11, %v899_v12  ;;  %v4939_v23 = vcombine.high %v902_v17, %v906_v18  ;;  %v910_v25 = vld [vmem:[%s7678_s1 + $0x2c0] sm:$0xff] }
  0xb0   : > { %v907_v20 = vld [vmem:[%s7678_s1 + $0x2a8] sm:$0xff]  ;;  %v914_v26 = vld [vmem:[%s7678_s1 + $0x2e0] sm:$0xff]  ;;  %v4938_v29 = vcombine.low %v902_v17, %v906_v18  ;;  %v813_v17 = vld [vmem:[%s7677_s0 + $0x18] sm:$0xff] }
  0xb1   : > { %v4941_v24 = vcombine.high %v903_v19, %v907_v20  ;;  %v911_v27 = vld [vmem:[%s7678_s1 + $0x2c8] sm:$0xff]  ;;  %v4940_v30 = vcombine.low %v903_v19, %v907_v20  ;;  %v4947_v31 = vcombine.high %v910_v25, %v914_v26  ;;  %v918_v33 = vld [vmem:[%s7678_s1 + $0x300] sm:$0xff]  ;;  %v4946_v37 = vcombine.low %v910_v25, %v914_v26  ;;  %v817_v18 = vld [vmem:[%s7677_s0 + $0x38] sm:$0xff] }
  0xb2   : > { %2411 = vmatpush1.bf16.msra.mxu0 %v4898_v50  ;;  %2497 = vmatpush1.bf16.msra.mxu1 %v4900_v51  ;;  %v915_v28 = vld [vmem:[%s7678_s1 + $0x2e8] sm:$0xff]  ;;  %v922_v34 = vld [vmem:[%s7678_s1 + $0x320] sm:$0xff]  ;;  %v6747_v25 = vpack.c.bf16 %v817_v18, %v813_v17 }
  0xb3   : > { %2412 = vmatprep.subr.bf16.mxu0 %v4907_v52  ;;  %2498 = vmatprep.subr.bf16.mxu1 %v4909_v55  ;;  %v4949_v32 = vcombine.high %v911_v27, %v915_v28  ;;  %v919_v35 = vld [vmem:[%s7678_s1 + $0x308] sm:$0xff]  ;;  %v4948_v38 = vcombine.low %v911_v27, %v915_v28  ;;  %v4955_v39 = vcombine.high %v918_v33, %v922_v34  ;;  %v926_v41 = vld [vmem:[%s7678_s1 + $0x340] sm:$0xff] }
  0xb4   : > { %v923_v36 = vld [vmem:[%s7678_s1 + $0x328] sm:$0xff]  ;;  %v930_v42 = vld [vmem:[%s7678_s1 + $0x360] sm:$0xff]  ;;  %v4954_v45 = vcombine.low %v918_v33, %v922_v34 }
  0xb5   : > { %v4957_v40 = vcombine.high %v919_v35, %v923_v36  ;;  %v927_v43 = vld [vmem:[%s7678_s1 + $0x348] sm:$0xff]  ;;  %v4956_v46 = vcombine.low %v919_v35, %v923_v36  ;;  %v4963_v47 = vcombine.high %v926_v41, %v930_v42  ;;  %v934_v49 = vld [vmem:[%s7678_s1 + $0x380] sm:$0xff]  ;;  %v4962_v53 = vcombine.low %v926_v41, %v930_v42 }
  0xb6   : > { %2413 = vmatpush1.bf16.msra.mxu0 %v4906_v61  ;;  %2499 = vmatpush1.bf16.msra.mxu1 %v4908_v62  ;;  %v931_v44 = vld [vmem:[%s7678_s1 + $0x368] sm:$0xff]  ;;  %v938_v50 = vld [vmem:[%s7678_s1 + $0x3a0] sm:$0xff] }
  0xb7   : > { %2414 = vmatprep.subr.bf16.mxu0 %v4915_v63  ;;  %2500 = vmatprep.subr.bf16.mxu1 %v4917_v0  ;;  %v4965_v48 = vcombine.high %v927_v43, %v931_v44  ;;  %v935_v51 = vld [vmem:[%s7678_s1 + $0x388] sm:$0xff]  ;;  %v4964_v54 = vcombine.low %v927_v43, %v931_v44  ;;  %v4971_v55 = vcombine.high %v934_v49, %v938_v50  ;;  %v942_v57 = vld [vmem:[%s7678_s1 + $0x3c0] sm:$0xff] }
  0xb8   : > { %v939_v52 = vld [vmem:[%s7678_s1 + $0x3a8] sm:$0xff]  ;;  %v946_v59 = vld [vmem:[%s7678_s1 + $0x3e0] sm:$0xff]  ;;  %v4970_v62 = vcombine.low %v934_v49, %v938_v50 }
  0xb9   : > { %v4973_v56 = vcombine.high %v935_v51, %v939_v52  ;;  %v943_v60 = vld [vmem:[%s7678_s1 + $0x3c8] sm:$0xff]  ;;  %v4972_v63 = vcombine.low %v935_v51, %v939_v52  ;;  %v4979_v0 = vcombine.high %v942_v57, %v946_v59  ;;  %v950_v2 = vld [vmem:[%s7678_s1 + $0x400] sm:$0xff] }
  0xba   : > { %2415 = vmatpush1.bf16.msra.mxu0 %v4914_v5  ;;  %2501 = vmatpush1.bf16.msra.mxu1 %v4916_v6  ;;  %v947_v61 = vld [vmem:[%s7678_s1 + $0x3e8] sm:$0xff]  ;;  %v954_v3 = vld [vmem:[%s7678_s1 + $0x420] sm:$0xff]  ;;  %v4978_v6 = vcombine.low %v942_v57, %v946_v59 }
  0xbb   : > { %2416 = vmatprep.subr.bf16.mxu0 %v4923_v7  ;;  %2502 = vmatprep.subr.bf16.mxu1 %v4925_v8  ;;  %v4981_v1 = vcombine.high %v943_v60, %v947_v61  ;;  %v951_v4 = vld [vmem:[%s7678_s1 + $0x408] sm:$0xff]  ;;  %v810_v7 = vld [vmem:[%s7677_s0] sm:$0xff]  ;;  %v4980_v9 = vcombine.low %v943_v60, %v947_v61  ;;  %v4987_v10 = vcombine.high %v950_v2, %v954_v3 }
  0xbc   : > { %v955_v5 = vld [vmem:[%s7678_s1 + $0x428] sm:$0xff]  ;;  %v814_v8 = vld [vmem:[%s7677_s0 + $0x20] sm:$0xff]  ;;  %v4986_v19 = vcombine.low %v950_v2, %v954_v3 }
  0xbd   : > { %v4989_v11 = vcombine.high %v951_v4, %v955_v5  ;;  %v958_v12 = vld [vmem:[%s7678_s1 + $0x440] sm:$0xff]  ;;  %v4988_v20 = vcombine.low %v951_v4, %v955_v5  ;;  %v967_v26 = vld [vmem:[%s7678_s1 + $0x488] sm:$0xff] }
  0xbe   : > { %2417 = vmatpush1.bf16.msra.mxu0 %v4922_v13  ;;  %2503 = vmatpush1.bf16.msra.mxu1 %v4924_v14  ;;  %v962_v13 = vld [vmem:[%s7678_s1 + $0x460] sm:$0xff]  ;;  %v959_v14 = vld [vmem:[%s7678_s1 + $0x448] sm:$0xff] }
  0xbf   : > { %2418 = vmatprep.subr.bf16.mxu0 %v4931_v15  ;;  %2504 = vmatprep.subr.bf16.mxu1 %v4933_v16  ;;  %v6730_v15 = vpack.c.bf16 %v814_v8, %v810_v7  ;;  %v963_v16 = vld [vmem:[%s7678_s1 + $0x468] sm:$0xff]  ;;  %v4994_v28 = vcombine.low %v958_v12, %v962_v13  ;;  %v978_v33 = vld [vmem:[%s7678_s1 + $0x4e0] sm:$0xff] }
  0xc0   : > { %v971_v27 = vld [vmem:[%s7678_s1 + $0x4a8] sm:$0xff]  ;;  %v986_v41 = vld [vmem:[%s7678_s1 + $0x520] sm:$0xff] }
  0xc1   : > { %v975_v34 = vld [vmem:[%s7678_s1 + $0x4c8] sm:$0xff]  ;;  %v994_v49 = vld [vmem:[%s7678_s1 + $0x560] sm:$0xff] }
  0xc2   : > { %2419 = vmatpush1.bf16.msra.mxu0 %v4930_v21  ;;  %2505 = vmatpush1.bf16.msra.mxu1 %v4932_v22  ;;  %v4995_v21 = vcombine.high %v958_v12, %v962_v13  ;;  %v4997_v22 = vcombine.high %v959_v14, %v963_v16  ;;  %v979_v35 = vld [vmem:[%s7678_s1 + $0x4e8] sm:$0xff]  ;;  %v1002_v57 = vld [vmem:[%s7678_s1 + $0x5a0] sm:$0xff] }
  0xc3   : > { %2420 = vmatprep.subr.bf16.mxu0 %v4939_v23  ;;  %2506 = vmatprep.subr.bf16.mxu1 %v4941_v24  ;;  %v966_v23 = vld [vmem:[%s7678_s1 + $0x480] sm:$0xff]  ;;  %v983_v42 = vld [vmem:[%s7678_s1 + $0x508] sm:$0xff] }
  0xc4   : > { %v970_v24 = vld [vmem:[%s7678_s1 + $0x4a0] sm:$0xff]  ;;  %v987_v43 = vld [vmem:[%s7678_s1 + $0x528] sm:$0xff] }
  0xc5   : > { %v5002_v36 = vcombine.low %v966_v23, %v970_v24  ;;  %v991_v50 = vld [vmem:[%s7678_s1 + $0x548] sm:$0xff]  ;;  %v1010_v2 = vld [vmem:[%s7678_s1 + $0x5e0] sm:$0xff] }
  0xc6   : > { %2421 = vmatpush1.bf16.msra.mxu0 %v4938_v29  ;;  %2507 = vmatpush1.bf16.msra.mxu1 %v4940_v30  ;;  %v4996_v29 = vcombine.low %v959_v14, %v963_v16  ;;  %v5003_v30 = vcombine.high %v966_v23, %v970_v24  ;;  %v995_v51 = vld [vmem:[%s7678_s1 + $0x568] sm:$0xff]  ;;  %v1022_v18 = vld [vmem:[%s7678_s1 + $0x640] sm:$0xff] }
  0xc7   : > { %2422 = vmatprep.subr.bf16.mxu0 %v4947_v31  ;;  %2508 = vmatprep.subr.bf16.mxu1 %v4949_v32  ;;  %v5005_v31 = vcombine.high %v967_v26, %v971_v27  ;;  %v974_v32 = vld [vmem:[%s7678_s1 + $0x4c0] sm:$0xff]  ;;  %v999_v59 = vld [vmem:[%s7678_s1 + $0x588] sm:$0xff] }
  0xc8   : > { %v5010_v44 = vcombine.low %v974_v32, %v978_v33  ;;  %v1003_v60 = vld [vmem:[%s7678_s1 + $0x5a8] sm:$0xff] }
  0xc9   : > { %v1007_v3 = vld [vmem:[%s7678_s1 + $0x5c8] sm:$0xff] }
  0xca   : > { %2423 = vmatpush1.bf16.msra.mxu0 %v4946_v37  ;;  %2509 = vmatpush1.bf16.msra.mxu1 %v4948_v38  ;;  %v5004_v37 = vcombine.low %v967_v26, %v971_v27  ;;  %v5011_v38 = vcombine.high %v974_v32, %v978_v33  ;;  %v1011_v4 = vld [vmem:[%s7678_s1 + $0x5e8] sm:$0xff]  ;;  %v1030_v27 = vld [vmem:[%s7678_s1 + $0x680] sm:$0xff] }
  0xcb   : > { %2424 = vmatprep.subr.bf16.mxu0 %v4955_v39  ;;  %2510 = vmatprep.subr.bf16.mxu1 %v4957_v40  ;;  %v5013_v39 = vcombine.high %v975_v34, %v979_v35  ;;  %v982_v40 = vld [vmem:[%s7678_s1 + $0x500] sm:$0xff]  ;;  %v5045_v8 = vcombine.high %v1007_v3, %v1011_v4  ;;  %v1019_v12 = vld [vmem:[%s7678_s1 + $0x628] sm:$0xff]  ;;  %v5044_v14 = vcombine.low %v1007_v3, %v1011_v4 }
  0xcc   : > { %v5018_v52 = vcombine.low %v982_v40, %v986_v41  ;;  %v1070_v4 = vld [vmem:[%s7678_s1 + $0x7c0] sm:$0xff] }
  0xce   : > { %2425 = vmatpush1.bf16.msra.mxu0 %v4954_v45  ;;  %2511 = vmatpush1.bf16.msra.mxu1 %v4956_v46  ;;  %v5012_v45 = vcombine.low %v975_v34, %v979_v35  ;;  %v5019_v46 = vcombine.high %v982_v40, %v986_v41  ;;  %v1038_v35 = vld [vmem:[%s7678_s1 + $0x6c0] sm:$0xff] }
  0xcf   : > { %2426 = vmatprep.subr.bf16.mxu0 %v4963_v47  ;;  %2512 = vmatprep.subr.bf16.mxu1 %v4965_v48  ;;  %v5021_v47 = vcombine.high %v983_v42, %v987_v43  ;;  %v990_v48 = vld [vmem:[%s7678_s1 + $0x540] sm:$0xff] }
  0xd0   : > { %v5026_v61 = vcombine.low %v990_v48, %v994_v49 }
  0xd2   : > { %2427 = vmatpush1.bf16.msra.mxu0 %v4962_v53  ;;  %2513 = vmatpush1.bf16.msra.mxu1 %v4964_v54  ;;  %v5020_v53 = vcombine.low %v983_v42, %v987_v43  ;;  %v5027_v54 = vcombine.high %v990_v48, %v994_v49  ;;  %v1046_v43 = vld [vmem:[%s7678_s1 + $0x700] sm:$0xff] }
  0xd3   : > { %2428 = vmatprep.subr.bf16.mxu0 %v4971_v55  ;;  %2514 = vmatprep.subr.bf16.mxu1 %v4973_v56  ;;  %v5029_v55 = vcombine.high %v991_v50, %v995_v51  ;;  %v998_v56 = vld [vmem:[%s7678_s1 + $0x580] sm:$0xff] }
  0xd4   : > { %v5034_v5 = vcombine.low %v998_v56, %v1002_v57 }
  0xd6   : > { %2429 = vmatpush1.bf16.msra.mxu0 %v4970_v62  ;;  %2515 = vmatpush1.bf16.msra.mxu1 %v4972_v63  ;;  %v5028_v62 = vcombine.low %v991_v50, %v995_v51  ;;  %v5035_v63 = vcombine.high %v998_v56, %v1002_v57  ;;  %v1054_v51 = vld [vmem:[%s7678_s1 + $0x740] sm:$0xff] }
  0xd7   : > { %2430 = vmatprep.subr.bf16.mxu0 %v4979_v0  ;;  %2516 = vmatprep.subr.bf16.mxu1 %v4981_v1  ;;  %v5037_v0 = vcombine.high %v999_v59, %v1003_v60  ;;  %v1006_v1 = vld [vmem:[%s7678_s1 + $0x5c0] sm:$0xff] }
  0xd8   : > { %v5043_v7 = vcombine.high %v1006_v1, %v1010_v2  ;;  %v5042_v13 = vcombine.low %v1006_v1, %v1010_v2 }
  0xda   : > { %2431 = vmatpush1.bf16.msra.mxu0 %v4978_v6  ;;  %2517 = vmatpush1.bf16.msra.mxu1 %v4980_v9  ;;  %v5036_v6 = vcombine.low %v999_v59, %v1003_v60  ;;  %v1014_v9 = vld [vmem:[%s7678_s1 + $0x600] sm:$0xff] }
  0xdb   : > { %2443 = vmatprep.subr.bf16.mxu0 %v4987_v10  ;;  %2529 = vmatprep.subr.bf16.mxu1 %v4989_v11  ;;  %v1018_v10 = vld [vmem:[%s7678_s1 + $0x620] sm:$0xff]  ;;  %v1015_v11 = vld [vmem:[%s7678_s1 + $0x608] sm:$0xff] }
  0xdc   : > { %v5051_v16 = vcombine.high %v1014_v9, %v1018_v10  ;;  %v5053_v17 = vcombine.high %v1015_v11, %v1019_v12  ;;  %v5052_v23 = vcombine.low %v1015_v11, %v1019_v12  ;;  %v1062_v60 = vld [vmem:[%s7678_s1 + $0x780] sm:$0xff]  ;;  %v824_v12 = vld [vmem:[%s7678_s1 + $0x10] sm:$0xff] }
  0xdd   : > { %2433 = vmatmul.mubr.bf16.vlgmr.msra.gmra.mrb[0].mxu0 %v6730_v15  ;;  %2519 = vmatmul.mubr.bf16.vlgmr.msra.gmra.mrb[0].mxu1 %v6730_v15 }
  0xde   : > { %2444 = vmatpush1.bf16.msra.mxu0 %v4986_v19  ;;  %2530 = vmatpush1.bf16.msra.mxu1 %v4988_v20  ;;  %v1026_v19 = vld [vmem:[%s7678_s1 + $0x660] sm:$0xff]  ;;  %v1023_v20 = vld [vmem:[%s7678_s1 + $0x648] sm:$0xff] }
  0xdf   : > { %2445 = vmatprep.subr.bf16.mxu0 %v4995_v21  ;;  %2531 = vmatprep.subr.bf16.mxu1 %v4997_v22  ;;  %v1027_v21 = vld [vmem:[%s7678_s1 + $0x668] sm:$0xff]  ;;  %v5050_v22 = vcombine.low %v1014_v9, %v1018_v10  ;;  %v5059_v24 = vcombine.high %v1022_v18, %v1026_v19 }
  0xe0   : > { %2475 = vmatprep.mubr.bf16.mxu0 %v6747_v25  ;;  %2561 = vmatprep.mubr.bf16.mxu1 %v6747_v25  ;;  %v5061_v26 = vcombine.high %v1023_v20, %v1027_v21  ;;  %v5060_v32 = vcombine.low %v1023_v20, %v1027_v21 }
  0xe2   : > { %2446 = vmatpush1.bf16.msra.mxu0 %v4994_v28  ;;  %2532 = vmatpush1.bf16.msra.mxu1 %v4996_v29  ;;  %v1034_v28 = vld [vmem:[%s7678_s1 + $0x6a0] sm:$0xff]  ;;  %v1031_v29 = vld [vmem:[%s7678_s1 + $0x688] sm:$0xff] }
  0xe3   : > { %2447 = vmatprep.subr.bf16.mxu0 %v5003_v30  ;;  %2533 = vmatprep.subr.bf16.mxu1 %v5005_v31  ;;  %v1035_v30 = vld [vmem:[%s7678_s1 + $0x6a8] sm:$0xff]  ;;  %v5058_v31 = vcombine.low %v1022_v18, %v1026_v19  ;;  %v5067_v33 = vcombine.high %v1030_v27, %v1034_v28  ;;  %v812_v18 = vld [vmem:[%s7677_s0 + $0x10] sm:$0xff] }
  0xe4   : > { %v5069_v34 = vcombine.high %v1031_v29, %v1035_v30  ;;  %v5068_v40 = vcombine.low %v1031_v29, %v1035_v30  ;;  %v816_v19 = vld [vmem:[%s7677_s0 + $0x30] sm:$0xff] }
  0xe6   : > { %2448 = vmatpush1.bf16.msra.mxu0 %v5002_v36  ;;  %2534 = vmatpush1.bf16.msra.mxu1 %v5004_v37  ;;  %v1042_v36 = vld [vmem:[%s7678_s1 + $0x6e0] sm:$0xff]  ;;  %v1039_v37 = vld [vmem:[%s7678_s1 + $0x6c8] sm:$0xff] }
  0xe7   : > { %2449 = vmatprep.subr.bf16.mxu0 %v5011_v38  ;;  %2535 = vmatprep.subr.bf16.mxu1 %v5013_v39  ;;  %v1043_v38 = vld [vmem:[%s7678_s1 + $0x6e8] sm:$0xff]  ;;  %v5066_v39 = vcombine.low %v1030_v27, %v1034_v28  ;;  %v5075_v41 = vcombine.high %v1038_v35, %v1042_v36  ;;  %v833_v27 = vld [vmem:[%s7678_s1 + $0x58] sm:$0xff] }
  0xe8   : > { %v5077_v42 = vcombine.high %v1039_v37, %v1043_v38  ;;  %v5076_v48 = vcombine.low %v1039_v37, %v1043_v38  ;;  %v837_v28 = vld [vmem:[%s7678_s1 + $0x78] sm:$0xff] }
  0xe9   : > { %v4872_v38 = vcombine.low %v833_v27, %v837_v28 }
  0xea   : > { %2450 = vmatpush1.bf16.msra.mxu0 %v5010_v44  ;;  %2536 = vmatpush1.bf16.msra.mxu1 %v5012_v45  ;;  %v1050_v44 = vld [vmem:[%s7678_s1 + $0x720] sm:$0xff]  ;;  %v1047_v45 = vld [vmem:[%s7678_s1 + $0x708] sm:$0xff] }
  0xeb   : > { %2451 = vmatprep.subr.bf16.mxu0 %v5019_v46  ;;  %2537 = vmatprep.subr.bf16.mxu1 %v5021_v47  ;;  %v1051_v46 = vld [vmem:[%s7678_s1 + $0x728] sm:$0xff]  ;;  %v5074_v47 = vcombine.low %v1038_v35, %v1042_v36  ;;  %v5083_v49 = vcombine.high %v1046_v43, %v1050_v44  ;;  %v841_v35 = vld [vmem:[%s7678_s1 + $0x98] sm:$0xff] }
  0xec   : > { %v5085_v50 = vcombine.high %v1047_v45, %v1051_v46  ;;  %v5084_v56 = vcombine.low %v1047_v45, %v1051_v46  ;;  %v845_v36 = vld [vmem:[%s7678_s1 + $0xb8] sm:$0xff] }
  0xed   : > { %v4880_v46 = vcombine.low %v841_v35, %v845_v36 }
  0xee   : > { %2452 = vmatpush1.bf16.msra.mxu0 %v5018_v52  ;;  %2538 = vmatpush1.bf16.msra.mxu1 %v5020_v53  ;;  %v1058_v52 = vld [vmem:[%s7678_s1 + $0x760] sm:$0xff]  ;;  %v1055_v53 = vld [vmem:[%s7678_s1 + $0x748] sm:$0xff] }
  0xef   : > { %2453 = vmatprep.subr.bf16.mxu0 %v5027_v54  ;;  %2539 = vmatprep.subr.bf16.mxu1 %v5029_v55  ;;  %v1059_v54 = vld [vmem:[%s7678_s1 + $0x768] sm:$0xff]  ;;  %v5082_v55 = vcombine.low %v1046_v43, %v1050_v44  ;;  %v5091_v57 = vcombine.high %v1054_v51, %v1058_v52  ;;  %v849_v43 = vld [vmem:[%s7678_s1 + $0xd8] sm:$0xff] }
  0xf0   : > { %v5093_v59 = vcombine.high %v1055_v53, %v1059_v54  ;;  %v5092_v1 = vcombine.low %v1055_v53, %v1059_v54  ;;  %v853_v44 = vld [vmem:[%s7678_s1 + $0xf8] sm:$0xff] }
  0xf1   : > { %v4888_v53 = vcombine.low %v849_v43, %v853_v44 }
  0xf2   : > { %2454 = vmatpush1.bf16.msra.mxu0 %v5026_v61  ;;  %2540 = vmatpush1.bf16.msra.mxu1 %v5028_v62  ;;  %v1066_v61 = vld [vmem:[%s7678_s1 + $0x7a0] sm:$0xff]  ;;  %v1063_v62 = vld [vmem:[%s7678_s1 + $0x788] sm:$0xff] }
  0xf3   : > { %2455 = vmatprep.subr.bf16.mxu0 %v5035_v63  ;;  %2541 = vmatprep.subr.bf16.mxu1 %v5037_v0  ;;  %v1067_v63 = vld [vmem:[%s7678_s1 + $0x7a8] sm:$0xff]  ;;  %v5090_v0 = vcombine.low %v1054_v51, %v1058_v52  ;;  %v5099_v2 = vcombine.high %v1062_v60, %v1066_v61  ;;  %v861_v51 = vld [vmem:[%s7678_s1 + $0x138] sm:$0xff] }
  0xf4   : > { %v5101_v3 = vcombine.high %v1063_v62, %v1067_v63  ;;  %v5100_v9 = vcombine.low %v1063_v62, %v1067_v63 }
  0xf6   : > { %2456 = vmatpush1.bf16.msra.mxu0 %v5034_v5  ;;  %2542 = vmatpush1.bf16.msra.mxu1 %v5036_v6  ;;  %v1074_v5 = vld [vmem:[%s7678_s1 + $0x7e0] sm:$0xff]  ;;  %v1071_v6 = vld [vmem:[%s7678_s1 + $0x7c8] sm:$0xff] }
  0xf7   : > { %2457 = vmatprep.subr.bf16.mxu0 %v5043_v7  ;;  %2543 = vmatprep.subr.bf16.mxu1 %v5045_v8  ;;  %v1075_v7 = vld [vmem:[%s7678_s1 + $0x7e8] sm:$0xff]  ;;  %v5098_v8 = vcombine.low %v1062_v60, %v1066_v61  ;;  %v5107_v10 = vcombine.high %v1070_v4, %v1074_v5  ;;  %v869_v60 = vld [vmem:[%s7678_s1 + $0x178] sm:$0xff] }
  0xf8   : > { %v5109_v11 = vcombine.high %v1071_v6, %v1075_v7  ;;  %v5108_v20 = vcombine.low %v1071_v6, %v1075_v7 }
  0xfa   : > { %2458 = vmatpush1.bf16.msra.mxu0 %v5042_v13  ;;  %2544 = vmatpush1.bf16.msra.mxu1 %v5044_v14  ;;  %v828_v13 = vld [vmem:[%s7678_s1 + $0x30] sm:$0xff]  ;;  %v825_v14 = vld [vmem:[%s7678_s1 + $0x18] sm:$0xff] }
  0xfb   : > { %2459 = vmatprep.subr.bf16.mxu0 %v5051_v16  ;;  %2545 = vmatprep.subr.bf16.mxu1 %v5053_v17  ;;  %v829_v16 = vld [vmem:[%s7678_s1 + $0x38] sm:$0xff]  ;;  %v5106_v17 = vcombine.low %v1070_v4, %v1074_v5  ;;  %v4863_v21 = vcombine.high %v824_v12, %v828_v13  ;;  %v4862_v29 = vcombine.low %v824_v12, %v828_v13 }
  0xfc   : > { %v4864_v30 = vcombine.low %v825_v14, %v829_v16  ;;  %v877_v4 = vld [vmem:[%s7678_s1 + $0x1b8] sm:$0xff] }
  0xfd   : > { %v885_v12 = vld [vmem:[%s7678_s1 + $0x1f8] sm:$0xff] }
  0xfe   : > { %2460 = vmatpush1.bf16.msra.mxu0 %v5050_v22  ;;  %2546 = vmatpush1.bf16.msra.mxu1 %v5052_v23  ;;  %v4865_v22 = vcombine.high %v825_v14, %v829_v16  ;;  %v832_v23 = vld [vmem:[%s7678_s1 + $0x50] sm:$0xff] }
  0xff   : > { %2461 = vmatprep.subr.bf16.mxu0 %v5059_v24  ;;  %2547 = vmatprep.subr.bf16.mxu1 %v5061_v26  ;;  %v836_v24 = vld [vmem:[%s7678_s1 + $0x70] sm:$0xff]  ;;  %v6939_v26 = vpack.c.bf16 %v816_v19, %v812_v18  ;;  %v889_v19 = vld [vmem:[%s7678_s1 + $0x218] sm:$0xff] }
 0x100   : > { %v4870_v37 = vcombine.low %v832_v23, %v836_v24  ;;  %v892_v18 = vld [vmem:[%s7678_s1 + $0x230] sm:$0xff] }
 0x102   : > { %2462 = vmatpush1.bf16.msra.mxu0 %v5058_v31  ;;  %2548 = vmatpush1.bf16.msra.mxu1 %v5060_v32  ;;  %v4871_v31 = vcombine.high %v832_v23, %v836_v24  ;;  %v4873_v32 = vcombine.high %v833_v27, %v837_v28  ;;  %v896_v27 = vld [vmem:[%s7678_s1 + $0x250] sm:$0xff] }
 0x103   : > { %2463 = vmatprep.subr.bf16.mxu0 %v5067_v33  ;;  %2549 = vmatprep.subr.bf16.mxu1 %v5069_v34  ;;  %v840_v33 = vld [vmem:[%s7678_s1 + $0x90] sm:$0xff] }
 0x104   : > { %v844_v34 = vld [vmem:[%s7678_s1 + $0xb0] sm:$0xff] }
 0x105   : > { %v4878_v45 = vcombine.low %v840_v33, %v844_v34  ;;  %v900_v28 = vld [vmem:[%s7678_s1 + $0x270] sm:$0xff] }
 0x106   : > { %2464 = vmatpush1.bf16.msra.mxu0 %v5066_v39  ;;  %2550 = vmatpush1.bf16.msra.mxu1 %v5068_v40  ;;  %v4879_v39 = vcombine.high %v840_v33, %v844_v34  ;;  %v4881_v40 = vcombine.high %v841_v35, %v845_v36  ;;  %v4935_v34 = vcombine.high %v896_v27, %v900_v28  ;;  %v904_v35 = vld [vmem:[%s7678_s1 + $0x290] sm:$0xff] }
 0x107   : > { %2465 = vmatprep.subr.bf16.mxu0 %v5075_v41  ;;  %2551 = vmatprep.subr.bf16.mxu1 %v5077_v42  ;;  %v848_v41 = vld [vmem:[%s7678_s1 + $0xd0] sm:$0xff] }
 0x108   : > { %v852_v42 = vld [vmem:[%s7678_s1 + $0xf0] sm:$0xff] }
 0x109   : > { %v4886_v52 = vcombine.low %v848_v41, %v852_v42  ;;  %v908_v36 = vld [vmem:[%s7678_s1 + $0x2b0] sm:$0xff] }
 0x10a   : > { %2466 = vmatpush1.bf16.msra.mxu0 %v5074_v47  ;;  %2552 = vmatpush1.bf16.msra.mxu1 %v5076_v48  ;;  %v4887_v47 = vcombine.high %v848_v41, %v852_v42  ;;  %v856_v48 = vld [vmem:[%s7678_s1 + $0x110] sm:$0xff]  ;;  %v4943_v42 = vcombine.high %v904_v35, %v908_v36 }
 0x10b   : > { %2467 = vmatprep.subr.bf16.mxu0 %v5083_v49  ;;  %2553 = vmatprep.subr.bf16.mxu1 %v5085_v50  ;;  %v4889_v49 = vcombine.high %v849_v43, %v853_v44  ;;  %v860_v50 = vld [vmem:[%s7678_s1 + $0x130] sm:$0xff] }
 0x10c   : > { %v4895_v54 = vcombine.high %v856_v48, %v860_v50  ;;  %v4894_v61 = vcombine.low %v856_v48, %v860_v50  ;;  %v912_v43 = vld [vmem:[%s7678_s1 + $0x2d0] sm:$0xff]  ;;  %v4942_v48 = vcombine.low %v904_v35, %v908_v36 }
 0x10d   : > { %v916_v44 = vld [vmem:[%s7678_s1 + $0x2f0] sm:$0xff] }
 0x10e   : > { %2468 = vmatpush1.bf16.msra.mxu0 %v5082_v55  ;;  %2554 = vmatpush1.bf16.msra.mxu1 %v5084_v56  ;;  %v864_v55 = vld [vmem:[%s7678_s1 + $0x150] sm:$0xff]  ;;  %v4951_v50 = vcombine.high %v912_v43, %v916_v44 }
 0x10f   : > { %2469 = vmatprep.subr.bf16.mxu0 %v5091_v57  ;;  %2555 = vmatprep.subr.bf16.mxu1 %v5093_v59  ;;  %v868_v57 = vld [vmem:[%s7678_s1 + $0x170] sm:$0xff]  ;;  %v865_v59 = vld [vmem:[%s7678_s1 + $0x158] sm:$0xff] }
 0x110   : > { %v4903_v63 = vcombine.high %v864_v55, %v868_v57  ;;  %v4902_v5 = vcombine.low %v864_v55, %v868_v57  ;;  %v4904_v6 = vcombine.low %v865_v59, %v869_v60  ;;  %v4950_v55 = vcombine.low %v912_v43, %v916_v44  ;;  %v968_v36 = vld [vmem:[%s7678_s1 + $0x490] sm:$0xff] }
 0x111   : > { %v976_v44 = vld [vmem:[%s7678_s1 + $0x4d0] sm:$0xff] }
 0x112   : > { %2470 = vmatpush1.bf16.msra.mxu0 %v5090_v0  ;;  %2556 = vmatpush1.bf16.msra.mxu1 %v5092_v1  ;;  %v872_v0 = vld [vmem:[%s7678_s1 + $0x190] sm:$0xff]  ;;  %v4905_v1 = vcombine.high %v865_v59, %v869_v60 }
 0x113   : > { %2471 = vmatprep.subr.bf16.mxu0 %v5099_v2  ;;  %2557 = vmatprep.subr.bf16.mxu1 %v5101_v3  ;;  %v876_v2 = vld [vmem:[%s7678_s1 + $0x1b0] sm:$0xff]  ;;  %v873_v3 = vld [vmem:[%s7678_s1 + $0x198] sm:$0xff] }
 0x114   : > { %v4911_v7 = vcombine.high %v872_v0, %v876_v2  ;;  %v4910_v13 = vcombine.low %v872_v0, %v876_v2  ;;  %v4912_v14 = vcombine.low %v873_v3, %v877_v4  ;;  %v928_v59 = vld [vmem:[%s7678_s1 + $0x350] sm:$0xff] }
 0x115   : > { %v932_v60 = vld [vmem:[%s7678_s1 + $0x370] sm:$0xff] }
 0x116   : > { %2472 = vmatpush1.bf16.msra.mxu0 %v5098_v8  ;;  %2558 = vmatpush1.bf16.msra.mxu1 %v5100_v9  ;;  %v880_v8 = vld [vmem:[%s7678_s1 + $0x1d0] sm:$0xff]  ;;  %v4967_v2 = vcombine.high %v928_v59, %v932_v60 }
 0x117   : > { %2473 = vmatprep.subr.bf16.mxu0 %v5107_v10  ;;  %2559 = vmatprep.subr.bf16.mxu1 %v5109_v11  ;;  %v884_v9 = vld [vmem:[%s7678_s1 + $0x1f0] sm:$0xff]  ;;  %v4913_v10 = vcombine.high %v873_v3, %v877_v4  ;;  %v881_v11 = vld [vmem:[%s7678_s1 + $0x1d8] sm:$0xff] }
 0x118   : > { %v4919_v16 = vcombine.high %v880_v8, %v884_v9  ;;  %v4920_v23 = vcombine.low %v881_v11, %v885_v12  ;;  %v936_v3 = vld [vmem:[%s7678_s1 + $0x390] sm:$0xff] }
 0x119   : > { %v940_v4 = vld [vmem:[%s7678_s1 + $0x3b0] sm:$0xff] }
 0x11a   : > { %2474 = vmatpush1.bf16.msra.mxu0 %v5106_v17  ;;  %2560 = vmatpush1.bf16.msra.mxu1 %v5108_v20  ;;  %v888_v17 = vld [vmem:[%s7678_s1 + $0x210] sm:$0xff]  ;;  %v4921_v20 = vcombine.high %v881_v11, %v885_v12 }
 0x11b   : > { %2572 = vmatprep.subr.bf16.mxu0 %v4863_v21  ;;  %2658 = vmatprep.subr.bf16.mxu1 %v4865_v22  ;;  %v893_v21 = vld [vmem:[%s7678_s1 + $0x238] sm:$0xff]  ;;  %v4918_v22 = vcombine.low %v880_v8, %v884_v9  ;;  %v4927_v24 = vcombine.high %v888_v17, %v892_v18  ;;  %v4966_v8 = vcombine.low %v928_v59, %v932_v60  ;;  %v944_v11 = vld [vmem:[%s7678_s1 + $0x3d0] sm:$0xff] }
 0x11c   : > { %v4928_v33 = vcombine.low %v889_v19, %v893_v21  ;;  %v948_v12 = vld [vmem:[%s7678_s1 + $0x3f0] sm:$0xff] }
 0x11d   : > { %2476 = vmatmul.mubr.bf16.vlgmr.msra.gmra.mrb[0].mxu0 %v6939_v26  ;;  %2562 = vmatmul.mubr.bf16.vlgmr.msra.gmra.mrb[0].mxu1 %v6939_v26  ;;  %v996_v59 = vld [vmem:[%s7678_s1 + $0x570] sm:$0xff] }
 0x11e   : > { %2573 = vmatpush1.bf16.msra.mxu0 %v4862_v29  ;;  %2659 = vmatpush1.bf16.msra.mxu1 %v4864_v30  ;;  %v897_v29 = vld [vmem:[%s7678_s1 + $0x258] sm:$0xff]  ;;  %v4929_v30 = vcombine.high %v889_v19, %v893_v21  ;;  %v956_v19 = vld [vmem:[%s7678_s1 + $0x430] sm:$0xff]  ;;  %v4983_v21 = vcombine.high %v944_v11, %v948_v12 }
 0x11f   : > { %2574 = vmatprep.subr.bf16.mxu0 %v4871_v31  ;;  %2660 = vmatprep.subr.bf16.mxu1 %v4873_v32  ;;  %v901_v31 = vld [vmem:[%s7678_s1 + $0x278] sm:$0xff]  ;;  %v4926_v32 = vcombine.low %v888_v17, %v892_v18  ;;  %v4974_v17 = vcombine.low %v936_v3, %v940_v4  ;;  %v952_v18 = vld [vmem:[%s7678_s1 + $0x410] sm:$0xff] }
 0x120   : > { %2604 = vmatprep.mubr.bf16.mxu0 %v6597_v58  ;;  %2690 = vmatprep.mubr.bf16.mxu1 %v6597_v58  ;;  %v857_v58 = vld [vmem:[%s7678_s1 + $0x118] sm:$0xff]  ;;  %v4936_v41 = vcombine.low %v897_v29, %v901_v31  ;;  %v4990_v35 = vcombine.low %v952_v18, %v956_v19 }
 0x121   : > { %v4897_v56 = vcombine.high %v857_v58, %v861_v51  ;;  %v4896_v62 = vcombine.low %v857_v58, %v861_v51  ;;  %v920_v58 = vld [vmem:[%s7678_s1 + $0x310] sm:$0xff] }
 0x122   : > { %2575 = vmatpush1.bf16.msra.mxu0 %v4870_v37  ;;  %2661 = vmatpush1.bf16.msra.mxu1 %v4872_v38  ;;  %v905_v37 = vld [vmem:[%s7678_s1 + $0x298] sm:$0xff]  ;;  %v4937_v38 = vcombine.high %v897_v29, %v901_v31  ;;  %v924_v51 = vld [vmem:[%s7678_s1 + $0x330] sm:$0xff]  ;;  %v4991_v31 = vcombine.high %v952_v18, %v956_v19 }
 0x123   : > { %2576 = vmatprep.subr.bf16.mxu0 %v4879_v39  ;;  %2662 = vmatprep.subr.bf16.mxu1 %v4881_v40  ;;  %v909_v39 = vld [vmem:[%s7678_s1 + $0x2b8] sm:$0xff]  ;;  %v4934_v40 = vcombine.low %v896_v27, %v900_v28  ;;  %v4959_v57 = vcombine.high %v920_v58, %v924_v51  ;;  %v4958_v0 = vcombine.low %v920_v58, %v924_v51  ;;  %v960_v28 = vld [vmem:[%s7678_s1 + $0x450] sm:$0xff] }
 0x124   : > { %v4982_v27 = vcombine.low %v944_v11, %v948_v12  ;;  %v964_v29 = vld [vmem:[%s7678_s1 + $0x470] sm:$0xff] }
 0x125   : > { %v4998_v43 = vcombine.low %v960_v28, %v964_v29  ;;  %v984_v58 = vld [vmem:[%s7678_s1 + $0x510] sm:$0xff] }
 0x126   : > { %2577 = vmatpush1.bf16.msra.mxu0 %v4878_v45  ;;  %2663 = vmatpush1.bf16.msra.mxu1 %v4880_v46  ;;  %v913_v45 = vld [vmem:[%s7678_s1 + $0x2d8] sm:$0xff]  ;;  %v4945_v46 = vcombine.high %v905_v37, %v909_v39  ;;  %v988_v51 = vld [vmem:[%s7678_s1 + $0x530] sm:$0xff] }
 0x127   : > { %2578 = vmatprep.subr.bf16.mxu0 %v4887_v47  ;;  %2664 = vmatprep.subr.bf16.mxu1 %v4889_v49  ;;  %v917_v47 = vld [vmem:[%s7678_s1 + $0x2f8] sm:$0xff]  ;;  %v4944_v49 = vcombine.low %v905_v37, %v909_v39  ;;  %v972_v37 = vld [vmem:[%s7678_s1 + $0x4b0] sm:$0xff]  ;;  %v4999_v39 = vcombine.high %v960_v28, %v964_v29 }
 0x128   : > { %v1012_v11 = vld [vmem:[%s7678_s1 + $0x5f0] sm:$0xff] }
 0x12a   : > { %2579 = vmatpush1.bf16.msra.mxu0 %v4886_v52  ;;  %2665 = vmatpush1.bf16.msra.mxu1 %v4888_v53  ;;  %v921_v52 = vld [vmem:[%s7678_s1 + $0x318] sm:$0xff]  ;;  %v4953_v53 = vcombine.high %v913_v45, %v917_v47 }
 0x12b   : > { %2580 = vmatprep.subr.bf16.mxu0 %v4895_v54  ;;  %2666 = vmatprep.subr.bf16.mxu1 %v4897_v56  ;;  %v925_v54 = vld [vmem:[%s7678_s1 + $0x338] sm:$0xff]  ;;  %v4952_v56 = vcombine.low %v913_v45, %v917_v47  ;;  %v980_v45 = vld [vmem:[%s7678_s1 + $0x4f0] sm:$0xff]  ;;  %v5007_v47 = vcombine.high %v968_v36, %v972_v37 }
 0x12e   : > { %2581 = vmatpush1.bf16.msra.mxu0 %v4894_v61  ;;  %2667 = vmatpush1.bf16.msra.mxu1 %v4896_v62  ;;  %v929_v61 = vld [vmem:[%s7678_s1 + $0x358] sm:$0xff]  ;;  %v4961_v62 = vcombine.high %v921_v52, %v925_v54 }
 0x12f   : > { %2582 = vmatprep.subr.bf16.mxu0 %v4903_v63  ;;  %2668 = vmatprep.subr.bf16.mxu1 %v4905_v1  ;;  %v933_v63 = vld [vmem:[%s7678_s1 + $0x378] sm:$0xff]  ;;  %v4960_v1 = vcombine.low %v921_v52, %v925_v54 }
 0x130   : > { %v4968_v9 = vcombine.low %v929_v61, %v933_v63  ;;  %v985_v54 = vld [vmem:[%s7678_s1 + $0x518] sm:$0xff] }
 0x132   : > { %2583 = vmatpush1.bf16.msra.mxu0 %v4902_v5  ;;  %2669 = vmatpush1.bf16.msra.mxu1 %v4904_v6  ;;  %v937_v5 = vld [vmem:[%s7678_s1 + $0x398] sm:$0xff]  ;;  %v4969_v6 = vcombine.high %v929_v61, %v933_v63  ;;  %v5023_v61 = vcombine.high %v984_v58, %v988_v51 }
 0x133   : > { %2584 = vmatprep.subr.bf16.mxu0 %v4911_v7  ;;  %2670 = vmatprep.subr.bf16.mxu1 %v4913_v10  ;;  %v941_v7 = vld [vmem:[%s7678_s1 + $0x3b8] sm:$0xff]  ;;  %v4975_v10 = vcombine.high %v936_v3, %v940_v4  ;;  %v1004_v3 = vld [vmem:[%s7678_s1 + $0x5b0] sm:$0xff] }
 0x134   : > { %v997_v63 = vld [vmem:[%s7678_s1 + $0x578] sm:$0xff] }
 0x136   : > { %2585 = vmatpush1.bf16.msra.mxu0 %v4910_v13  ;;  %2671 = vmatpush1.bf16.msra.mxu1 %v4912_v14  ;;  %v4977_v13 = vcombine.high %v937_v5, %v941_v7  ;;  %v945_v14 = vld [vmem:[%s7678_s1 + $0x3d8] sm:$0xff] }
 0x137   : > { %2586 = vmatprep.subr.bf16.mxu0 %v4919_v16  ;;  %2672 = vmatprep.subr.bf16.mxu1 %v4921_v20  ;;  %v949_v16 = vld [vmem:[%s7678_s1 + $0x3f8] sm:$0xff]  ;;  %v4976_v20 = vcombine.low %v937_v5, %v941_v7 }
 0x138   : > { %v1005_v7 = vld [vmem:[%s7678_s1 + $0x5b8] sm:$0xff] }
 0x13a   : > { %2587 = vmatpush1.bf16.msra.mxu0 %v4918_v22  ;;  %2673 = vmatpush1.bf16.msra.mxu1 %v4920_v23  ;;  %v953_v22 = vld [vmem:[%s7678_s1 + $0x418] sm:$0xff] }
 0x13b   : > { %2588 = vmatprep.subr.bf16.mxu0 %v4927_v24  ;;  %2674 = vmatprep.subr.bf16.mxu1 %v4929_v30  ;;  %v957_v23 = vld [vmem:[%s7678_s1 + $0x438] sm:$0xff]  ;;  %v4985_v24 = vcombine.high %v945_v14, %v949_v16  ;;  %v4984_v30 = vcombine.low %v945_v14, %v949_v16 }
 0x13c   : > { %v1009_v14 = vld [vmem:[%s7678_s1 + $0x5d8] sm:$0xff] }
 0x13d   : > { %v1013_v16 = vld [vmem:[%s7678_s1 + $0x5f8] sm:$0xff] }
 0x13e   : > { %2589 = vmatpush1.bf16.msra.mxu0 %v4926_v32  ;;  %2675 = vmatpush1.bf16.msra.mxu1 %v4928_v33  ;;  %v961_v32 = vld [vmem:[%s7678_s1 + $0x458] sm:$0xff]  ;;  %v5048_v29 = vcombine.low %v1009_v14, %v1013_v16 }
 0x13f   : > { %2590 = vmatprep.subr.bf16.mxu0 %v4935_v34  ;;  %2676 = vmatprep.subr.bf16.mxu1 %v4937_v38  ;;  %v965_v33 = vld [vmem:[%s7678_s1 + $0x478] sm:$0xff]  ;;  %v4993_v34 = vcombine.high %v953_v22, %v957_v23  ;;  %v4992_v38 = vcombine.low %v953_v22, %v957_v23  ;;  %v1016_v22 = vld [vmem:[%s7678_s1 + $0x610] sm:$0xff] }
 0x140   : > { %v1020_v23 = vld [vmem:[%s7678_s1 + $0x630] sm:$0xff] }
 0x142   : > { %2591 = vmatpush1.bf16.msra.mxu0 %v4934_v40  ;;  %2677 = vmatpush1.bf16.msra.mxu1 %v4936_v41  ;;  %v969_v40 = vld [vmem:[%s7678_s1 + $0x498] sm:$0xff] }
 0x143   : > { %2592 = vmatprep.subr.bf16.mxu0 %v4943_v42  ;;  %2678 = vmatprep.subr.bf16.mxu1 %v4945_v46  ;;  %v973_v41 = vld [vmem:[%s7678_s1 + $0x4b8] sm:$0xff]  ;;  %v5001_v42 = vcombine.high %v961_v32, %v965_v33  ;;  %v5000_v46 = vcombine.low %v961_v32, %v965_v33  ;;  %v1024_v32 = vld [vmem:[%s7678_s1 + $0x650] sm:$0xff] }
 0x144   : > { %v5008_v52 = vcombine.low %v969_v40, %v973_v41  ;;  %v1028_v33 = vld [vmem:[%s7678_s1 + $0x670] sm:$0xff] }
 0x146   : > { %2593 = vmatpush1.bf16.msra.mxu0 %v4942_v48  ;;  %2679 = vmatpush1.bf16.msra.mxu1 %v4944_v49  ;;  %v977_v48 = vld [vmem:[%s7678_s1 + $0x4d8] sm:$0xff]  ;;  %v5009_v49 = vcombine.high %v969_v40, %v973_v41  ;;  %v1032_v40 = vld [vmem:[%s7678_s1 + $0x690] sm:$0xff] }
 0x147   : > { %2594 = vmatprep.subr.bf16.mxu0 %v4951_v50  ;;  %2680 = vmatprep.subr.bf16.mxu1 %v4953_v53  ;;  %v5006_v50 = vcombine.low %v968_v36, %v972_v37  ;;  %v5015_v53 = vcombine.high %v976_v44, %v980_v45  ;;  %v5054_v36 = vcombine.low %v1016_v22, %v1020_v23  ;;  %v1036_v41 = vld [vmem:[%s7678_s1 + $0x6b0] sm:$0xff] }
 0x14a   : > { %2595 = vmatpush1.bf16.msra.mxu0 %v4950_v55  ;;  %2681 = vmatpush1.bf16.msra.mxu1 %v4952_v56  ;;  %v5014_v56 = vcombine.low %v976_v44, %v980_v45  ;;  %v5062_v44 = vcombine.low %v1024_v32, %v1028_v33  ;;  %v1040_v45 = vld [vmem:[%s7678_s1 + $0x6d0] sm:$0xff] }
 0x14b   : > { %2596 = vmatprep.subr.bf16.mxu0 %v4959_v57  ;;  %2682 = vmatprep.subr.bf16.mxu1 %v4961_v62  ;;  %v992_v57 = vld [vmem:[%s7678_s1 + $0x550] sm:$0xff]  ;;  %v993_v62 = vld [vmem:[%s7678_s1 + $0x558] sm:$0xff] }
 0x14c   : > { %v5031_v5 = vcombine.high %v992_v57, %v996_v59  ;;  %v5032_v12 = vcombine.low %v993_v62, %v997_v63 }
 0x14e   : > { %2597 = vmatpush1.bf16.msra.mxu0 %v4958_v0  ;;  %2683 = vmatpush1.bf16.msra.mxu1 %v4960_v1  ;;  %v5022_v1 = vcombine.low %v984_v58, %v988_v51  ;;  %v5070_v58 = vcombine.low %v1032_v40, %v1036_v41 }
 0x14f   : > { %2598 = vmatprep.subr.bf16.mxu0 %v4967_v2  ;;  %2684 = vmatprep.subr.bf16.mxu1 %v4969_v6  ;;  %v1000_v2 = vld [vmem:[%s7678_s1 + $0x590] sm:$0xff]  ;;  %v1001_v6 = vld [vmem:[%s7678_s1 + $0x598] sm:$0xff] }
 0x150   : > { %v5038_v18 = vcombine.low %v1000_v2, %v1004_v3  ;;  %v5040_v19 = vcombine.low %v1001_v6, %v1005_v7 }
 0x152   : > { %2599 = vmatpush1.bf16.msra.mxu0 %v4966_v8  ;;  %2685 = vmatpush1.bf16.msra.mxu1 %v4968_v9  ;;  %v5033_v8 = vcombine.high %v993_v62, %v997_v63  ;;  %v5030_v9 = vcombine.low %v992_v57, %v996_v59  ;;  %v1056_v62 = vld [vmem:[%s7678_s1 + $0x750] sm:$0xff] }
 0x153   : > { %2600 = vmatprep.subr.bf16.mxu0 %v4975_v10  ;;  %2686 = vmatprep.subr.bf16.mxu1 %v4977_v13  ;;  %v1008_v10 = vld [vmem:[%s7678_s1 + $0x5d0] sm:$0xff]  ;;  %v5039_v13 = vcombine.high %v1000_v2, %v1004_v3 }
 0x154   : > { %v5046_v28 = vcombine.low %v1008_v10, %v1012_v11  ;;  %v1060_v63 = vld [vmem:[%s7678_s1 + $0x770] sm:$0xff] }
 0x156   : > { %2601 = vmatpush1.bf16.msra.mxu0 %v4974_v17  ;;  %2687 = vmatpush1.bf16.msra.mxu1 %v4976_v20  ;;  %v5041_v17 = vcombine.high %v1001_v6, %v1005_v7  ;;  %v5047_v20 = vcombine.high %v1008_v10, %v1012_v11  ;;  %v1064_v6 = vld [vmem:[%s7678_s1 + $0x790] sm:$0xff]  ;;  %v5094_v10 = vcombine.low %v1056_v62, %v1060_v63 }
 0x157   : > { %2602 = vmatprep.subr.bf16.mxu0 %v4983_v21  ;;  %2688 = vmatprep.subr.bf16.mxu1 %v4985_v24  ;;  %v5049_v21 = vcombine.high %v1009_v14, %v1013_v16  ;;  %v1017_v24 = vld [vmem:[%s7678_s1 + $0x618] sm:$0xff]  ;;  %v1068_v7 = vld [vmem:[%s7678_s1 + $0x7b0] sm:$0xff] }
 0x158   : > { %v1072_v14 = vld [vmem:[%s7678_s1 + $0x7d0] sm:$0xff] }
 0x159   : > { %v1076_v16 = vld [vmem:[%s7678_s1 + $0x7f0] sm:$0xff] }
 0x15a   : > { %2603 = vmatpush1.bf16.msra.mxu0 %v4982_v27  ;;  %2689 = vmatpush1.bf16.msra.mxu1 %v4984_v30  ;;  %v1021_v27 = vld [vmem:[%s7678_s1 + $0x638] sm:$0xff]  ;;  %v5055_v30 = vcombine.high %v1016_v22, %v1020_v23  ;;  %v5110_v23 = vcombine.low %v1072_v14, %v1076_v16 }
 0x15b   : > { %2615 = vmatprep.subr.bf16.mxu0 %v4991_v31  ;;  %2701 = vmatprep.subr.bf16.mxu1 %v4993_v34  ;;  %v5057_v31 = vcombine.high %v1017_v24, %v1021_v27  ;;  %v1025_v34 = vld [vmem:[%s7678_s1 + $0x658] sm:$0xff]  ;;  %v5056_v37 = vcombine.low %v1017_v24, %v1021_v27  ;;  %v5483_v27 = vld [vmem:[%s6978_s11 + $0x4] ss:$16 sps:$4 sm:$0xff]  }
 0x15d   : > { %2605 = vmatmul.mubr.bf16.vlgmr.msra.gmra.mrb[4].mxu0 %v6730_v15  ;;  %2691 = vmatmul.mubr.bf16.vlgmr.msra.gmra.mrb[4].mxu1 %v6730_v15  ;;  %v981_v15 = vld [vmem:[%s7678_s1 + $0x4f8] sm:$0xff] }
 0x15e   : > { %2616 = vmatpush1.bf16.msra.mxu0 %v4990_v35  ;;  %2702 = vmatpush1.bf16.msra.mxu1 %v4992_v38  ;;  %v5017_v55 = vcombine.high %v977_v48, %v981_v15  ;;  %v5016_v60 = vcombine.low %v977_v48, %v981_v15  ;;  %v1029_v35 = vld [vmem:[%s7678_s1 + $0x678] sm:$0xff]  ;;  %v5063_v38 = vcombine.high %v1024_v32, %v1028_v33  ;;  %v5487_v33 = vld [vmem:[%s6978_s11 + $0x20] ss:$16 sps:$4 sm:$0xff]  }
 0x15f   : > { %2617 = vmatprep.subr.bf16.mxu0 %v4999_v39  ;;  %2703 = vmatprep.subr.bf16.mxu1 %v5001_v42  ;;  %v5065_v39 = vcombine.high %v1025_v34, %v1029_v35  ;;  %v1033_v42 = vld [vmem:[%s7678_s1 + $0x698] sm:$0xff]  ;;  %v5071_v48 = vcombine.high %v1032_v40, %v1036_v41  ;;  %v5499_v40 = vld [vmem:[%s6978_s11 + $0x60] ss:$16 sps:$4 sm:$0xff]  }
 0x160   : > { %2647 = vmatprep.mubr.bf16.mxu0 %v6747_v25  ;;  %2733 = vmatprep.mubr.bf16.mxu1 %v6747_v25  ;;  %v989_v25 = vld [vmem:[%s7678_s1 + $0x538] sm:$0xff] }
 0x161   : > { %v5025_v0 = vcombine.high %v985_v54, %v989_v25  ;;  %v5024_v4 = vcombine.low %v985_v54, %v989_v25  ;;  %v1048_v54 = vld [vmem:[%s7678_s1 + $0x710] sm:$0xff]  ;;  %v5492_v32 = vld [vmem:[%s6978_s11 + $0x2c] ss:$16 sps:$4 sm:$0xff]   ;;  %v5502_v41 = vld [vmem:[%s6978_s11 + $0x68] ss:$16 sps:$4 sm:$0xff]  }
 0x162   : > { %2618 = vmatpush1.bf16.msra.mxu0 %v4998_v43  ;;  %2704 = vmatpush1.bf16.msra.mxu1 %v5000_v46  ;;  %v1037_v43 = vld [vmem:[%s7678_s1 + $0x6b8] sm:$0xff]  ;;  %v1044_v46 = vld [vmem:[%s7678_s1 + $0x6f0] sm:$0xff] }
 0x163   : > { %2619 = vmatprep.subr.bf16.mxu0 %v5007_v47  ;;  %2705 = vmatprep.subr.bf16.mxu1 %v5009_v49  ;;  %v5064_v47 = vcombine.low %v1025_v34, %v1029_v35  ;;  %v5073_v15 = vcombine.high %v1033_v42, %v1037_v43  ;;  %v1041_v49 = vld [vmem:[%s7678_s1 + $0x6d8] sm:$0xff]  ;;  %v5072_v51 = vcombine.low %v1033_v42, %v1037_v43  ;;  %v1052_v25 = vld [vmem:[%s7678_s1 + $0x730] sm:$0xff] }
 0x164   : > { %v5078_v57 = vcombine.low %v1040_v45, %v1044_v46  ;;  %v5086_v2 = vcombine.low %v1048_v54, %v1052_v25  ;;  %v5490_v34 = vld [vmem:[%s6978_s11 + $0x28] ss:$16 sps:$4 sm:$0xff]   ;;  %v5495_v35 = vld [vmem:[%s6978_s11 + $0x44] ss:$16 sps:$4 sm:$0xff]   ;;  %v5510_v43 = vld [vmem:[%s6978_s11 + $0x8c] ss:$16 sps:$4 sm:$0xff]  }
 0x165   : > { %v5507_v42 = vld [vmem:[%s6978_s11 + $0x84] ss:$16 sps:$4 sm:$0xff]  }
 0x166   : > { %2620 = vmatpush1.bf16.msra.mxu0 %v5006_v50  ;;  %2706 = vmatpush1.bf16.msra.mxu1 %v5008_v52  ;;  %v1045_v50 = vld [vmem:[%s7678_s1 + $0x6f8] sm:$0xff]  ;;  %v5079_v52 = vcombine.high %v1040_v45, %v1044_v46  ;;  %v5513_v46 = vld [vmem:[%s6978_s11 + $0xa4] ss:$16 sps:$4 sm:$0xff]  }
 0x167   : > { %2621 = vmatprep.subr.bf16.mxu0 %v5015_v53  ;;  %2707 = vmatprep.subr.bf16.mxu1 %v5017_v55  ;;  %v5081_v53 = vcombine.high %v1041_v49, %v1045_v50  ;;  %v1049_v55 = vld [vmem:[%s7678_s1 + $0x718] sm:$0xff]  ;;  %v5080_v59 = vcombine.low %v1041_v49, %v1045_v50  ;;  %v5519_v49 = vld [vmem:[%s6978_s11 + $0xc4] ss:$16 sps:$4 sm:$0xff]  }
 0x168   : > { %v5508_v45 = vld [vmem:[%s6978_s11 + $0x88] ss:$16 sps:$4 sm:$0xff]   ;;  %v5522_v50 = vld [vmem:[%s6978_s11 + $0xcc] ss:$16 sps:$4 sm:$0xff]  }
 0x16a   : > { %2622 = vmatpush1.bf16.msra.mxu0 %v5014_v56  ;;  %2708 = vmatpush1.bf16.msra.mxu1 %v5016_v60  ;;  %v1053_v56 = vld [vmem:[%s7678_s1 + $0x738] sm:$0xff]  ;;  %v5087_v60 = vcombine.high %v1048_v54, %v1052_v25  ;;  %v5523_v54 = vld [vmem:[%s6978_s11 + $0xe0] ss:$16 sps:$4 sm:$0xff]  }
 0x16b   : > { %2623 = vmatprep.subr.bf16.mxu0 %v5023_v61  ;;  %2709 = vmatprep.subr.bf16.mxu1 %v5025_v0  ;;  %v5089_v61 = vcombine.high %v1049_v55, %v1053_v56  ;;  %v1057_v0 = vld [vmem:[%s7678_s1 + $0x758] sm:$0xff]  ;;  %v5088_v3 = vcombine.low %v1049_v55, %v1053_v56  ;;  %v5531_v55 = vld [vmem:[%s6978_s11 + $0x104] ss:$16 sps:$4 sm:$0xff]  }
 0x16c   : > { %v5526_v25 = vld [vmem:[%s6978_s11 + $0xe8] ss:$16 sps:$4 sm:$0xff]   ;;  %v5534_v56 = vld [vmem:[%s6978_s11 + $0x10c] ss:$16 sps:$4 sm:$0xff]  }
 0x16e   : > { %2624 = vmatpush1.bf16.msra.mxu0 %v5022_v1  ;;  %2710 = vmatpush1.bf16.msra.mxu1 %v5024_v4  ;;  %v1061_v1 = vld [vmem:[%s7678_s1 + $0x778] sm:$0xff]  ;;  %v5095_v4 = vcombine.high %v1056_v62, %v1060_v63  ;;  %v5535_v62 = vld [vmem:[%s6978_s11 + $0x120] ss:$16 sps:$4 sm:$0xff]  }
 0x16f   : > { %2625 = vmatprep.subr.bf16.mxu0 %v5031_v5  ;;  %2711 = vmatprep.subr.bf16.mxu1 %v5033_v8  ;;  %v5097_v5 = vcombine.high %v1057_v0, %v1061_v1  ;;  %v1065_v8 = vld [vmem:[%s7678_s1 + $0x798] sm:$0xff]  ;;  %v5096_v11 = vcombine.low %v1057_v0, %v1061_v1  ;;  %v5543_v0 = vld [vmem:[%s6978_s11 + $0x144] ss:$16 sps:$4 sm:$0xff]  }
 0x170   : > { %v5538_v63 = vld [vmem:[%s6978_s11 + $0x128] ss:$16 sps:$4 sm:$0xff]   ;;  %v5546_v1 = vld [vmem:[%s6978_s11 + $0x14c] ss:$16 sps:$4 sm:$0xff]  }
 0x172   : > { %2626 = vmatpush1.bf16.msra.mxu0 %v5030_v9  ;;  %2712 = vmatpush1.bf16.msra.mxu1 %v5032_v12  ;;  %v1069_v9 = vld [vmem:[%s7678_s1 + $0x7b8] sm:$0xff]  ;;  %v5103_v12 = vcombine.high %v1064_v6, %v1068_v7 }
 0x173   : > { %2627 = vmatprep.subr.bf16.mxu0 %v5039_v13  ;;  %2713 = vmatprep.subr.bf16.mxu1 %v5041_v17  ;;  %v5105_v13 = vcombine.high %v1065_v8, %v1069_v9  ;;  %v1073_v17 = vld [vmem:[%s7678_s1 + $0x7d8] sm:$0xff] }
 0x176   : > { %2628 = vmatpush1.bf16.msra.mxu0 %v5038_v18  ;;  %2714 = vmatpush1.bf16.msra.mxu1 %v5040_v19  ;;  %v1077_v18 = vld [vmem:[%s7678_s1 + $0x7f8] sm:$0xff]  ;;  %v5102_v19 = vcombine.low %v1064_v6, %v1068_v7  ;;  %v5547_v6 = vld [vmem:[%s6978_s11 + $0x160] ss:$16 sps:$4 sm:$0xff]  }
 0x177   : > { %2629 = vmatprep.subr.bf16.mxu0 %v5047_v20  ;;  %2715 = vmatprep.subr.bf16.mxu1 %v5049_v21  ;;  %v5104_v20 = vcombine.low %v1065_v8, %v1069_v9  ;;  %v5111_v21 = vcombine.high %v1072_v14, %v1076_v16  ;;  %v5113_v22 = vcombine.high %v1073_v17, %v1077_v18  ;;  %v5550_v7 = vld [vmem:[%s6978_s11 + $0x168] ss:$16 sps:$4 sm:$0xff]   ;;  %v5555_v8 = vld [vmem:[%s6978_s11 + $0x184] ss:$16 sps:$4 sm:$0xff]   ;;  %v5558_v9 = vld [vmem:[%s6978_s11 + $0x18c] ss:$16 sps:$4 sm:$0xff]  }
 0x178   : > { %v5112_v24 = vcombine.low %v1073_v17, %v1077_v18  ;;  %v5559_v14 = vld [vmem:[%s6978_s11 + $0x1a0] ss:$16 sps:$4 sm:$0xff]   ;;  %v5562_v16 = vld [vmem:[%s6978_s11 + $0x1a8] ss:$16 sps:$4 sm:$0xff]   ;;  %v5567_v17 = vld [vmem:[%s6978_s11 + $0x1c4] ss:$16 sps:$4 sm:$0xff]  }
 0x179   : > { %v5570_v18 = vld [vmem:[%s6978_s11 + $0x1cc] ss:$16 sps:$4 sm:$0xff]  }
 0x17a   : > { %2630 = vmatpush1.bf16.msra.mxu0 %v5046_v28  ;;  %2716 = vmatpush1.bf16.msra.mxu1 %v5048_v29  ;;  %v5486_v28 = vld [vmem:[%s6978_s11 + $0xc] ss:$16 sps:$4 sm:$0xff]   ;;  %v5481_v29 = vld [vmem:[%s6978_s11] ss:$16 sps:$4 sm:$0xff]  }
 0x17b   : > { %2631 = vmatprep.subr.bf16.mxu0 %v5055_v30  ;;  %2717 = vmatprep.subr.bf16.mxu1 %v5057_v31  ;;  %v5484_v30 = vld [vmem:[%s6978_s11 + $0x8] ss:$16 sps:$4 sm:$0xff]   ;;  %v5489_v31 = vld [vmem:[%s6978_s11 + $0x24] ss:$16 sps:$4 sm:$0xff]  }
 0x17e   : > { %2632 = vmatpush1.bf16.msra.mxu0 %v5054_v36  ;;  %2718 = vmatpush1.bf16.msra.mxu1 %v5056_v37  ;;  %v5498_v36 = vld [vmem:[%s6978_s11 + $0x4c] ss:$16 sps:$4 sm:$0xff]   ;;  %v5493_v37 = vld [vmem:[%s6978_s11 + $0x40] ss:$16 sps:$4 sm:$0xff]  }
 0x17f   : > { %2633 = vmatprep.subr.bf16.mxu0 %v5063_v38  ;;  %2719 = vmatprep.subr.bf16.mxu1 %v5065_v39  ;;  %v5496_v38 = vld [vmem:[%s6978_s11 + $0x48] ss:$16 sps:$4 sm:$0xff]   ;;  %v5504_v39 = vld [vmem:[%s6978_s11 + $0x6c] ss:$16 sps:$4 sm:$0xff]  }
 0x182   : > { %2634 = vmatpush1.bf16.msra.mxu0 %v5062_v44  ;;  %2720 = vmatpush1.bf16.msra.mxu1 %v5064_v47  ;;  %v5505_v44 = vld [vmem:[%s6978_s11 + $0x80] ss:$16 sps:$4 sm:$0xff]   ;;  %v5516_v47 = vld [vmem:[%s6978_s11 + $0xac] ss:$16 sps:$4 sm:$0xff]  }
 0x183   : > { %2635 = vmatprep.subr.bf16.mxu0 %v5071_v48  ;;  %2721 = vmatprep.subr.bf16.mxu1 %v5073_v15  ;;  %v5511_v48 = vld [vmem:[%s6978_s11 + $0xa0] ss:$16 sps:$4 sm:$0xff]   ;;  %v5514_v15 = vld [vmem:[%s6978_s11 + $0xa8] ss:$16 sps:$4 sm:$0xff]  }
 0x186   : > { %2636 = vmatpush1.bf16.msra.mxu0 %v5070_v58  ;;  %2722 = vmatpush1.bf16.msra.mxu1 %v5072_v51  ;;  %v5517_v58 = vld [vmem:[%s6978_s11 + $0xc0] ss:$16 sps:$4 sm:$0xff]   ;;  %v5520_v51 = vld [vmem:[%s6978_s11 + $0xc8] ss:$16 sps:$4 sm:$0xff]  }
 0x187   : > { %2637 = vmatprep.subr.bf16.mxu0 %v5079_v52  ;;  %2723 = vmatprep.subr.bf16.mxu1 %v5081_v53  ;;  %v5525_v52 = vld [vmem:[%s6978_s11 + $0xe4] ss:$16 sps:$4 sm:$0xff]   ;;  %v5528_v53 = vld [vmem:[%s6978_s11 + $0xec] ss:$16 sps:$4 sm:$0xff]  }
 0x18a   : > { %2638 = vmatpush1.bf16.msra.mxu0 %v5078_v57  ;;  %2724 = vmatpush1.bf16.msra.mxu1 %v5080_v59  ;;  %v5529_v57 = vld [vmem:[%s6978_s11 + $0x100] ss:$16 sps:$4 sm:$0xff]   ;;  %v5532_v59 = vld [vmem:[%s6978_s11 + $0x108] ss:$16 sps:$4 sm:$0xff]  }
 0x18b   : > { %2639 = vmatprep.subr.bf16.mxu0 %v5087_v60  ;;  %2725 = vmatprep.subr.bf16.mxu1 %v5089_v61  ;;  %v5537_v60 = vld [vmem:[%s6978_s11 + $0x124] ss:$16 sps:$4 sm:$0xff]   ;;  %v5540_v61 = vld [vmem:[%s6978_s11 + $0x12c] ss:$16 sps:$4 sm:$0xff]  }
 0x18e   : > { %2640 = vmatpush1.bf16.msra.mxu0 %v5086_v2  ;;  %2726 = vmatpush1.bf16.msra.mxu1 %v5088_v3  ;;  %v5541_v2 = vld [vmem:[%s6978_s11 + $0x140] ss:$16 sps:$4 sm:$0xff]   ;;  %v5544_v3 = vld [vmem:[%s6978_s11 + $0x148] ss:$16 sps:$4 sm:$0xff]  }
 0x18f   : > { %2641 = vmatprep.subr.bf16.mxu0 %v5095_v4  ;;  %2727 = vmatprep.subr.bf16.mxu1 %v5097_v5  ;;  %v5549_v4 = vld [vmem:[%s6978_s11 + $0x164] ss:$16 sps:$4 sm:$0xff]   ;;  %v5552_v5 = vld [vmem:[%s6978_s11 + $0x16c] ss:$16 sps:$4 sm:$0xff]  }
 0x192   : > { %2642 = vmatpush1.bf16.msra.mxu0 %v5094_v10  ;;  %2728 = vmatpush1.bf16.msra.mxu1 %v5096_v11  ;;  %v5553_v10 = vld [vmem:[%s6978_s11 + $0x180] ss:$16 sps:$4 sm:$0xff]   ;;  %v5556_v11 = vld [vmem:[%s6978_s11 + $0x188] ss:$16 sps:$4 sm:$0xff]  }
 0x193   : > { %2643 = vmatprep.subr.bf16.mxu0 %v5103_v12  ;;  %2729 = vmatprep.subr.bf16.mxu1 %v5105_v13  ;;  %v5561_v12 = vld [vmem:[%s6978_s11 + $0x1a4] ss:$16 sps:$4 sm:$0xff]   ;;  %v5564_v13 = vld [vmem:[%s6978_s11 + $0x1ac] ss:$16 sps:$4 sm:$0xff]  }
 0x196   : > { %2644 = vmatpush1.bf16.msra.mxu0 %v5102_v19  ;;  %2730 = vmatpush1.bf16.msra.mxu1 %v5104_v20  ;;  %v5565_v19 = vld [vmem:[%s6978_s11 + $0x1c0] ss:$16 sps:$4 sm:$0xff]   ;;  %v5568_v20 = vld [vmem:[%s6978_s11 + $0x1c8] ss:$16 sps:$4 sm:$0xff]  }
 0x197   : > { %2645 = vmatprep.subr.bf16.mxu0 %v5111_v21  ;;  %2731 = vmatprep.subr.bf16.mxu1 %v5113_v22  ;;  %v5573_v21 = vld [vmem:[%s6978_s11 + $0x1e4] ss:$16 sps:$4 sm:$0xff]   ;;  %v5576_v22 = vld [vmem:[%s6978_s11 + $0x1ec] ss:$16 sps:$4 sm:$0xff]  }
 0x19a   : > { %2646 = vmatpush1.bf16.msra.mxu0 %v5110_v23  ;;  %2732 = vmatpush1.bf16.msra.mxu1 %v5112_v24  ;;  %v5571_v23 = vld [vmem:[%s6978_s11 + $0x1e0] ss:$16 sps:$4 sm:$0xff]   ;;  %v5574_v24 = vld [vmem:[%s6978_s11 + $0x1e8] ss:$16 sps:$4 sm:$0xff]  }
 0x19b   : > { %4358 = vmatprep.subr.bf16.mxu0 %v5483_v27  ;;  %4530 = vmatprep.subr.bf16.mxu1 %v5486_v28  ;;  %v5579_v27 = vld [vmem:[%s6978_s11 + $0x204] ss:$16 sps:$4 sm:$0xff]   ;;  %v5582_v28 = vld [vmem:[%s6978_s11 + $0x20c] ss:$16 sps:$4 sm:$0xff]  }
 0x19d   : > { %2648 = vmatmul.mubr.bf16.vlgmr.msra.gmra.mrb[4].mxu0 %v6939_v26  ;;  %2734 = vmatmul.mubr.bf16.vlgmr.msra.gmra.mrb[4].mxu1 %v6939_v26  ;;  %v5501_v26 = vld [vmem:[%s6978_s11 + $0x64] ss:$16 sps:$4 sm:$0xff]  }
 0x19e   : > { %4359 = vmatpush1.bf16.msra.mxu0 %v5481_v29  ;;  %4531 = vmatpush1.bf16.msra.mxu1 %v5484_v30  ;;  %v1080_v29 = vlaneseq }
 0x19f   : > { %4360 = vmatprep.subr.bf16.mxu0 %v5489_v31  ;;  %4532 = vmatprep.subr.bf16.mxu1 %v5492_v32  ;;  %v7394_v32 = vld [vmem:[%s7679_s2] sm:$0xff] }
 0x1a0   : > { %v7388_v30 = vshrl.u32 %v1080_v29, 7  ;;  %v5604_v29 = vld [vmem:[%s6978_s11 + $0x288] ss:$16 sps:$4 sm:$0xff]  }
 0x1a2   : > { %4361 = vmatpush1.bf16.msra.mxu0 %v5487_v33  ;;  %4533 = vmatpush1.bf16.msra.mxu1 %v5490_v34  ;;  %v1082_v31 = vsub.s32 0, %v7388_v30  ;;  %v1090_v33 = vsub.s32 2, %v7388_v30  ;;  %v1086_v34 = vsub.s32 1, %v7388_v30 }
 0x1a3   : > { %4362 = vmatprep.subr.bf16.mxu0 %v5495_v35  ;;  %4534 = vmatprep.subr.bf16.mxu1 %v5498_v36  ;;  %v1094_v35 = vsub.s32 3, %v7388_v30 }
 0x1a4   : > { %v1083_v36 = vrot.slane %v7394_v32, %v1082_v31 }
 0x1a6   : > { %4363 = vmatpush1.bf16.msra.mxu0 %v5493_v37  ;;  %4535 = vmatpush1.bf16.msra.mxu1 %v5496_v38  ;;  %v1091_v37 = vrot.slane %v7394_v32, %v1090_v33  ;;  %v1087_v38 = vrot.slane %v7394_v32, %v1086_v34 }
 0x1a7   : > { %4364 = vmatprep.subr.bf16.mxu0 %v5501_v26  ;;  %4536 = vmatprep.subr.bf16.mxu1 %v5504_v39  ;;  %v1095_v26 = vrot.slane %v7394_v32, %v1094_v35 }
 0x1aa   : > { %4365 = vmatpush1.bf16.msra.mxu0 %v5499_v40  ;;  %4537 = vmatpush1.bf16.msra.mxu1 %v5502_v41 }
 0x1ab   : > { %4366 = vmatprep.subr.bf16.mxu0 %v5507_v42  ;;  %4538 = vmatprep.subr.bf16.mxu1 %v5510_v43 }
 0x1ae   : > { %4367 = vmatpush1.bf16.msra.mxu0 %v5505_v44  ;;  %4539 = vmatpush1.bf16.msra.mxu1 %v5508_v45 }
 0x1af   : > { %4368 = vmatprep.subr.bf16.mxu0 %v5513_v46  ;;  %4540 = vmatprep.subr.bf16.mxu1 %v5516_v47 }
 0x1b2   : > { %4369 = vmatpush1.bf16.msra.mxu0 %v5511_v48  ;;  %4541 = vmatpush1.bf16.msra.mxu1 %v5514_v15 }
 0x1b3   : > { %4370 = vmatprep.subr.bf16.mxu0 %v5519_v49  ;;  %4542 = vmatprep.subr.bf16.mxu1 %v5522_v50 }
 0x1b6   : > { %4371 = vmatpush1.bf16.msra.mxu0 %v5517_v58  ;;  %4543 = vmatpush1.bf16.msra.mxu1 %v5520_v51 }
 0x1b7   : > { %4372 = vmatprep.subr.bf16.mxu0 %v5525_v52  ;;  %4544 = vmatprep.subr.bf16.mxu1 %v5528_v53 }
 0x1ba   : > { %4373 = vmatpush1.bf16.msra.mxu0 %v5523_v54  ;;  %4545 = vmatpush1.bf16.msra.mxu1 %v5526_v25 }
 0x1bb   : > { %4374 = vmatprep.subr.bf16.mxu0 %v5531_v55  ;;  %4546 = vmatprep.subr.bf16.mxu1 %v5534_v56 }
 0x1be   : > { %4375 = vmatpush1.bf16.msra.mxu0 %v5529_v57  ;;  %4547 = vmatpush1.bf16.msra.mxu1 %v5532_v59 }
 0x1bf   : > { %4376 = vmatprep.subr.bf16.mxu0 %v5537_v60  ;;  %4548 = vmatprep.subr.bf16.mxu1 %v5540_v61 }
 0x1c2   : > { %4377 = vmatpush1.bf16.msra.mxu0 %v5535_v62  ;;  %4549 = vmatpush1.bf16.msra.mxu1 %v5538_v63 }
 0x1c3   : > { %4378 = vmatprep.subr.bf16.mxu0 %v5543_v0  ;;  %4550 = vmatprep.subr.bf16.mxu1 %v5546_v1 }
 0x1c6   : > { %4379 = vmatpush1.bf16.msra.mxu0 %v5541_v2  ;;  %4551 = vmatpush1.bf16.msra.mxu1 %v5544_v3 }
 0x1c7   : > { %4380 = vmatprep.subr.bf16.mxu0 %v5549_v4  ;;  %4552 = vmatprep.subr.bf16.mxu1 %v5552_v5 }
 0x1ca   : > { %4381 = vmatpush1.bf16.msra.mxu0 %v5547_v6  ;;  %4553 = vmatpush1.bf16.msra.mxu1 %v5550_v7 }
 0x1cb   : > { %4382 = vmatprep.subr.bf16.mxu0 %v5555_v8  ;;  %4554 = vmatprep.subr.bf16.mxu1 %v5558_v9  ;;  %v5577_v8 = vld [vmem:[%s6978_s11 + $0x200] ss:$16 sps:$4 sm:$0xff]   ;;  %v5580_v9 = vld [vmem:[%s6978_s11 + $0x208] ss:$16 sps:$4 sm:$0xff]  }
 0x1ce   : > { %4383 = vmatpush1.bf16.msra.mxu0 %v5553_v10  ;;  %4555 = vmatpush1.bf16.msra.mxu1 %v5556_v11  ;;  %v5585_v11 = vld [vmem:[%s6978_s11 + $0x224] ss:$16 sps:$4 sm:$0xff]  }
 0x1cf   : > { %4384 = vmatprep.subr.bf16.mxu0 %v5561_v12  ;;  %4556 = vmatprep.subr.bf16.mxu1 %v5564_v13  ;;  %v5588_v12 = vld [vmem:[%s6978_s11 + $0x22c] ss:$16 sps:$4 sm:$0xff]   ;;  %v5583_v13 = vld [vmem:[%s6978_s11 + $0x220] ss:$16 sps:$4 sm:$0xff]  }
 0x1d2   : > { %4385 = vmatpush1.bf16.msra.mxu0 %v5559_v14  ;;  %4557 = vmatpush1.bf16.msra.mxu1 %v5562_v16  ;;  %v5586_v14 = vld [vmem:[%s6978_s11 + $0x228] ss:$16 sps:$4 sm:$0xff]   ;;  %v5591_v16 = vld [vmem:[%s6978_s11 + $0x244] ss:$16 sps:$4 sm:$0xff]  }
 0x1d3   : > { %4386 = vmatprep.subr.bf16.mxu0 %v5567_v17  ;;  %4558 = vmatprep.subr.bf16.mxu1 %v5570_v18  ;;  %v5594_v17 = vld [vmem:[%s6978_s11 + $0x24c] ss:$16 sps:$4 sm:$0xff]   ;;  %v5589_v18 = vld [vmem:[%s6978_s11 + $0x240] ss:$16 sps:$4 sm:$0xff]  }
 0x1d6   : > { %4387 = vmatpush1.bf16.msra.mxu0 %v5565_v19  ;;  %4559 = vmatpush1.bf16.msra.mxu1 %v5568_v20  ;;  %v5592_v19 = vld [vmem:[%s6978_s11 + $0x248] ss:$16 sps:$4 sm:$0xff]   ;;  %v5597_v20 = vld [vmem:[%s6978_s11 + $0x264] ss:$16 sps:$4 sm:$0xff]  }
 0x1d7   : > { %4388 = vmatprep.subr.bf16.mxu0 %v5573_v21  ;;  %4560 = vmatprep.subr.bf16.mxu1 %v5576_v22  ;;  %v5600_v21 = vld [vmem:[%s6978_s11 + $0x26c] ss:$16 sps:$4 sm:$0xff]   ;;  %v5595_v22 = vld [vmem:[%s6978_s11 + $0x260] ss:$16 sps:$4 sm:$0xff]  }
 0x1da   : > { %4389 = vmatpush1.bf16.msra.mxu0 %v5571_v23  ;;  %4561 = vmatpush1.bf16.msra.mxu1 %v5574_v24  ;;  %v5598_v23 = vld [vmem:[%s6978_s11 + $0x268] ss:$16 sps:$4 sm:$0xff]   ;;  %v5603_v24 = vld [vmem:[%s6978_s11 + $0x284] ss:$16 sps:$4 sm:$0xff]  }
 0x1db   : > { %4401 = vmatprep.subr.bf16.mxu0 %v5579_v27  ;;  %4573 = vmatprep.subr.bf16.mxu1 %v5582_v28  ;;  %v5606_v27 = vld [vmem:[%s6978_s11 + $0x28c] ss:$16 sps:$4 sm:$0xff]   ;;  %v5601_v28 = vld [vmem:[%s6978_s11 + $0x280] ss:$16 sps:$4 sm:$0xff]  }
 0x1f0   : > { %v2477_v39 = vpop.f32.mrb[0].mxu0  ;;  %v2563_v41 = vpop.f32.mrb[0].mxu1 }
 0x1f1   : > { %v5377_v40 = vadd.f32 %v2477_v39, %v1083_v36  ;;  %v2479_v42 = vpop.f32.mrb[1].mxu0  ;;  %v5381_v43 = vadd.f32 %v2563_v41, %v1091_v37  ;;  %v2565_v45 = vpop.f32.mrb[1].mxu1  ;;  %v5615_v39 = vld [vmem:[%s6978_s11 + $0x2c4] ss:$16 sps:$4 sm:$0xff]   ;;  %v5613_v41 = vld [vmem:[%s6978_s11 + $0x2c0] ss:$16 sps:$4 sm:$0xff]  }
 0x1f2   : > { %v5378_v44 = vadd.f32 %v2479_v42, %v1087_v38  ;;  %v2481_v46 = vpop.f32.mrb[2].mxu0  ;;  %v5382_v48 = vadd.f32 %v2565_v45, %v1095_v26  ;;  %v2567_v49 = vpop.f32.mrb[2].mxu1  ;;  %v5616_v42 = vld [vmem:[%s6978_s11 + $0x2c8] ss:$16 sps:$4 sm:$0xff]   ;;  %v5619_v45 = vld [vmem:[%s6978_s11 + $0x2e0] ss:$16 sps:$4 sm:$0xff]  }
 0x1f3   : > { %v2760_v47 = vmul.f32 0.1, %v5377_v40  ;;  %v5379_v15 = vadd.f32 %v2481_v46, %v1083_v36  ;;  %v2483_v50 = vpop.f32.mrb[3].mxu0  ;;  %vm2744_vm0 = vcmp.gt.f32.partialorder %v5377_v40, 0.0  ;;  %vm2746_vm1 = vcmp.gt.f32.partialorder %v5381_v43, 0.0  ;;  %v2569_v51 = vpop.f32.mrb[3].mxu1 }
 0x1f4   : > { %v2762_v58 = vmul.f32 0.1, %v5381_v43  ;;  %vm2745_vm2 = vcmp.gt.f32.partialorder %v5378_v44, 0.0  ;;  %v2761_v52 = vmul.f32 0.1, %v5378_v44  ;;  %v5383_v54 = vadd.f32 %v2567_v49, %v1091_v37 }
 0x1f5   : > { %vm2752_vm3 = vcmp.gt.f32.partialorder %v5379_v15, 0.0  ;;  %v2768_v53 = vmul.f32 0.1, %v5379_v15  ;;  %v5380_v25 = vadd.f32 %v2483_v50, %v1087_v38  ;;  %v2776_v55 = vsel %vm2744_vm0, %v5377_v40, %v2760_v47  ;;  %v5609_v36 = vld [vmem:[%s6978_s11 + $0x2a4] ss:$16 sps:$4 sm:$0xff]  }
 0x1f6   : > { %vm2747_vm4 = vcmp.gt.f32.partialorder %v5382_v48, 0.0  ;;  %v2763_v56 = vmul.f32 0.1, %v5382_v48  ;;  %v5384_v57 = vadd.f32 %v2569_v51, %v1095_v26  ;;  %vm2754_vm5 = vcmp.gt.f32.partialorder %v5383_v54, 0.0  ;;  %v5612_v37 = vld [vmem:[%s6978_s11 + $0x2ac] ss:$16 sps:$4 sm:$0xff]  }
 0x1f7   : > { %v2784_v59 = vsel %vm2752_vm3, %v5379_v15, %v2768_v53  ;;  %v2770_v60 = vmul.f32 0.1, %v5383_v54  ;;  %vm2753_vm6 = vcmp.gt.f32.partialorder %v5380_v25, 0.0  ;;  %v2769_v62 = vmul.f32 0.1, %v5380_v25 }
 0x1f8   : > { %v2792_v61 = vpack.c.bf16 %v2784_v59, %v2776_v55  ;;  %vm2755_vm7 = vcmp.gt.f32.partialorder %v5384_v57, 0.0  ;;  %v2771_v63 = vmul.f32 0.1, %v5384_v57  ;;  %v2778_v0 = vsel %vm2746_vm1, %v5381_v43, %v2762_v58  ;;  %v5607_v38 = vld [vmem:[%s6978_s11 + $0x2a0] ss:$16 sps:$4 sm:$0xff]  }
 0x1f9   : > { %v2786_v1 = vsel %vm2754_vm5, %v5383_v54, %v2770_v60  ;;  %v2777_v2 = vsel %vm2745_vm2, %v5378_v44, %v2761_v52  ;;  %v2785_v4 = vsel %vm2753_vm6, %v5380_v25, %v2769_v62  ;;  %v2779_v5 = vsel %vm2747_vm4, %v5382_v48, %v2763_v56  ;;  %v5610_v26 = vld [vmem:[%s6978_s11 + $0x2a8] ss:$16 sps:$4 sm:$0xff]   ;;  %v5618_v40 = vld [vmem:[%s6978_s11 + $0x2cc] ss:$16 sps:$4 sm:$0xff]   ;;  %v5621_v43 = vld [vmem:[%s6978_s11 + $0x2e4] ss:$16 sps:$4 sm:$0xff]  }
 0x1fa   : > { %v7413_v3 = vpack.c.bf16 %v2786_v1, %v2778_v0  ;;  %v2787_v6 = vsel %vm2755_vm7, %v5384_v57, %v2771_v63  ;;  %v2793_v7 = vpack.c.bf16 %v2785_v4, %v2777_v2  ;;  %v5624_v44 = vld [vmem:[%s6978_s11 + $0x2ec] ss:$16 sps:$4 sm:$0xff]   ;;  %v5622_v46 = vld [vmem:[%s6978_s11 + $0x2e8] ss:$16 sps:$4 sm:$0xff]   ;;  %v5627_v47 = vld [vmem:[%s6978_s11 + $0x304] ss:$16 sps:$4 sm:$0xff]  }
 0x1fb   : > { %v2795_v10 = vpack.c.bf16 %v2787_v6, %v2779_v5  ;;  %v5630_v48 = vld [vmem:[%s6978_s11 + $0x30c] ss:$16 sps:$4 sm:$0xff]   ;;  %v5625_v15 = vld [vmem:[%s6978_s11 + $0x300] ss:$16 sps:$4 sm:$0xff]   ;;  %v5628_v49 = vld [vmem:[%s6978_s11 + $0x308] ss:$16 sps:$4 sm:$0xff]  }
 0x1fc   : > { %4390 = vmatprep.mubr.bf16.mxu0 %v2793_v7  ;;  %4562 = vmatprep.mubr.bf16.mxu1 %v2793_v7  ;;  %v5633_v50 = vld [vmem:[%s6978_s11 + $0x324] ss:$16 sps:$4 sm:$0xff]   ;;  %v5636_v58 = vld [vmem:[%s6978_s11 + $0x32c] ss:$16 sps:$4 sm:$0xff]   ;;  %v5631_v51 = vld [vmem:[%s6978_s11 + $0x320] ss:$16 sps:$4 sm:$0xff]  }
 0x1fd   : > { %4391 = vmatmul.mubr.bf16.vlgmr.msra.gmra.mrb[8].mxu0 %v2792_v61  ;;  %4563 = vmatmul.mubr.bf16.vlgmr.msra.gmra.mrb[8].mxu1 %v2792_v61  ;;  %v5634_v52 = vld [vmem:[%s6978_s11 + $0x328] ss:$16 sps:$4 sm:$0xff]   ;;  %v5639_v53 = vld [vmem:[%s6978_s11 + $0x344] ss:$16 sps:$4 sm:$0xff]   ;;  %v5642_v54 = vld [vmem:[%s6978_s11 + $0x34c] ss:$16 sps:$4 sm:$0xff]  }
 0x1fe   : > { %4402 = vmatpush1.bf16.msra.mxu0 %v5577_v8  ;;  %4574 = vmatpush1.bf16.msra.mxu1 %v5580_v9  ;;  %v5637_v25 = vld [vmem:[%s6978_s11 + $0x340] ss:$16 sps:$4 sm:$0xff]   ;;  %v5640_v55 = vld [vmem:[%s6978_s11 + $0x348] ss:$16 sps:$4 sm:$0xff]   ;;  %v5645_v56 = vld [vmem:[%s6978_s11 + $0x364] ss:$16 sps:$4 sm:$0xff]  }
 0x1ff   : > { %4433 = vmatprep.mubr.bf16.mxu0 %v2795_v10  ;;  %4605 = vmatprep.mubr.bf16.mxu1 %v2795_v10  ;;  %v5648_v57 = vld [vmem:[%s6978_s11 + $0x36c] ss:$16 sps:$4 sm:$0xff]   ;;  %v5643_v59 = vld [vmem:[%s6978_s11 + $0x360] ss:$16 sps:$4 sm:$0xff]   ;;  %v5646_v60 = vld [vmem:[%s6978_s11 + $0x368] ss:$16 sps:$4 sm:$0xff]  }
 0x200   : > { %4403 = vmatprep.subr.bf16.mxu0 %v5585_v11  ;;  %4575 = vmatprep.subr.bf16.mxu1 %v5588_v12  ;;  %v5651_v61 = vld [vmem:[%s6978_s11 + $0x384] ss:$16 sps:$4 sm:$0xff]   ;;  %v5654_v62 = vld [vmem:[%s6978_s11 + $0x38c] ss:$16 sps:$4 sm:$0xff]   ;;  %v5649_v63 = vld [vmem:[%s6978_s11 + $0x380] ss:$16 sps:$4 sm:$0xff]  }
 0x201   : > { %v5652_v0 = vld [vmem:[%s6978_s11 + $0x388] ss:$16 sps:$4 sm:$0xff]   ;;  %v5657_v1 = vld [vmem:[%s6978_s11 + $0x3a4] ss:$16 sps:$4 sm:$0xff]   ;;  %v5660_v2 = vld [vmem:[%s6978_s11 + $0x3ac] ss:$16 sps:$4 sm:$0xff]  }
 0x202   : > { %4404 = vmatpush1.bf16.msra.mxu0 %v5583_v13  ;;  %4576 = vmatpush1.bf16.msra.mxu1 %v5586_v14  ;;  %v5655_v4 = vld [vmem:[%s6978_s11 + $0x3a0] ss:$16 sps:$4 sm:$0xff]   ;;  %v5658_v5 = vld [vmem:[%s6978_s11 + $0x3a8] ss:$16 sps:$4 sm:$0xff]   ;;  %v5663_v6 = vld [vmem:[%s6978_s11 + $0x3c4] ss:$16 sps:$4 sm:$0xff]  }
 0x203   : > { %4405 = vmatprep.subr.bf16.mxu0 %v5591_v16  ;;  %4577 = vmatprep.subr.bf16.mxu1 %v5594_v17  ;;  %v5666_v7 = vld [vmem:[%s6978_s11 + $0x3cc] ss:$16 sps:$4 sm:$0xff]   ;;  %v5661_v8 = vld [vmem:[%s6978_s11 + $0x3c0] ss:$16 sps:$4 sm:$0xff]   ;;  %v5664_v9 = vld [vmem:[%s6978_s11 + $0x3c8] ss:$16 sps:$4 sm:$0xff]  }
 0x204   : > { %v5669_v10 = vld [vmem:[%s6978_s11 + $0x3e4] ss:$16 sps:$4 sm:$0xff]   ;;  %v5672_v11 = vld [vmem:[%s6978_s11 + $0x3ec] ss:$16 sps:$4 sm:$0xff]   ;;  %v5667_v12 = vld [vmem:[%s6978_s11 + $0x3e0] ss:$16 sps:$4 sm:$0xff]  }
 0x205   : > { %v5670_v13 = vld [vmem:[%s6978_s11 + $0x3e8] ss:$16 sps:$4 sm:$0xff]   ;;  %v5675_v14 = vld [vmem:[%s6978_s11 + $0x404] ss:$16 sps:$4 sm:$0xff]   ;;  %v5678_v16 = vld [vmem:[%s6978_s11 + $0x40c] ss:$16 sps:$4 sm:$0xff]  }
 0x206   : > { %4406 = vmatpush1.bf16.msra.mxu0 %v5589_v18  ;;  %4578 = vmatpush1.bf16.msra.mxu1 %v5592_v19  ;;  %v5673_v17 = vld [vmem:[%s6978_s11 + $0x400] ss:$16 sps:$4 sm:$0xff]   ;;  %v5676_v18 = vld [vmem:[%s6978_s11 + $0x408] ss:$16 sps:$4 sm:$0xff]   ;;  %v5681_v19 = vld [vmem:[%s6978_s11 + $0x424] ss:$16 sps:$4 sm:$0xff]  }
 0x207   : > { %4407 = vmatprep.subr.bf16.mxu0 %v5597_v20  ;;  %4579 = vmatprep.subr.bf16.mxu1 %v5600_v21  ;;  %v5684_v20 = vld [vmem:[%s6978_s11 + $0x42c] ss:$16 sps:$4 sm:$0xff]   ;;  %v5679_v21 = vld [vmem:[%s6978_s11 + $0x420] ss:$16 sps:$4 sm:$0xff]  }
 0x20a   : > { %4408 = vmatpush1.bf16.msra.mxu0 %v5595_v22  ;;  %4580 = vmatpush1.bf16.msra.mxu1 %v5598_v23  ;;  %v5682_v22 = vld [vmem:[%s6978_s11 + $0x428] ss:$16 sps:$4 sm:$0xff]   ;;  %v5687_v23 = vld [vmem:[%s6978_s11 + $0x444] ss:$16 sps:$4 sm:$0xff]  }
 0x20b   : > { %4409 = vmatprep.subr.bf16.mxu0 %v5603_v24  ;;  %4581 = vmatprep.subr.bf16.mxu1 %v5606_v27  ;;  %v5690_v24 = vld [vmem:[%s6978_s11 + $0x44c] ss:$16 sps:$4 sm:$0xff]   ;;  %v5685_v27 = vld [vmem:[%s6978_s11 + $0x440] ss:$16 sps:$4 sm:$0xff]  }
 0x20e   : > { %4410 = vmatpush1.bf16.msra.mxu0 %v5601_v28  ;;  %4582 = vmatpush1.bf16.msra.mxu1 %v5604_v29  ;;  %v5688_v28 = vld [vmem:[%s6978_s11 + $0x448] ss:$16 sps:$4 sm:$0xff]   ;;  %v5696_v29 = vld [vmem:[%s6978_s11 + $0x46c] ss:$16 sps:$4 sm:$0xff]  }
 0x20f   : > { %4411 = vmatprep.subr.bf16.mxu0 %v5609_v36  ;;  %4583 = vmatprep.subr.bf16.mxu1 %v5612_v37  ;;  %v5691_v36 = vld [vmem:[%s6978_s11 + $0x460] ss:$16 sps:$4 sm:$0xff]   ;;  %v5694_v37 = vld [vmem:[%s6978_s11 + $0x468] ss:$16 sps:$4 sm:$0xff]  }
 0x212   : > { %4412 = vmatpush1.bf16.msra.mxu0 %v5607_v38  ;;  %4584 = vmatpush1.bf16.msra.mxu1 %v5610_v26  ;;  %v5699_v38 = vld [vmem:[%s6978_s11 + $0x484] ss:$16 sps:$4 sm:$0xff]   ;;  %v5702_v26 = vld [vmem:[%s6978_s11 + $0x48c] ss:$16 sps:$4 sm:$0xff]  }
 0x213   : > { %4413 = vmatprep.subr.bf16.mxu0 %v5615_v39  ;;  %4585 = vmatprep.subr.bf16.mxu1 %v5618_v40  ;;  %v5697_v39 = vld [vmem:[%s6978_s11 + $0x480] ss:$16 sps:$4 sm:$0xff]   ;;  %v5700_v40 = vld [vmem:[%s6978_s11 + $0x488] ss:$16 sps:$4 sm:$0xff]  }
 0x216   : > { %4414 = vmatpush1.bf16.msra.mxu0 %v5613_v41  ;;  %4586 = vmatpush1.bf16.msra.mxu1 %v5616_v42  ;;  %v5705_v41 = vld [vmem:[%s6978_s11 + $0x4a4] ss:$16 sps:$4 sm:$0xff]   ;;  %v5708_v42 = vld [vmem:[%s6978_s11 + $0x4ac] ss:$16 sps:$4 sm:$0xff]  }
 0x217   : > { %4415 = vmatprep.subr.bf16.mxu0 %v5621_v43  ;;  %4587 = vmatprep.subr.bf16.mxu1 %v5624_v44  ;;  %v5703_v43 = vld [vmem:[%s6978_s11 + $0x4a0] ss:$16 sps:$4 sm:$0xff]   ;;  %v5706_v44 = vld [vmem:[%s6978_s11 + $0x4a8] ss:$16 sps:$4 sm:$0xff]  }
 0x21a   : > { %4416 = vmatpush1.bf16.msra.mxu0 %v5619_v45  ;;  %4588 = vmatpush1.bf16.msra.mxu1 %v5622_v46  ;;  %v5711_v45 = vld [vmem:[%s6978_s11 + $0x4c4] ss:$16 sps:$4 sm:$0xff]   ;;  %v5714_v46 = vld [vmem:[%s6978_s11 + $0x4cc] ss:$16 sps:$4 sm:$0xff]  }
 0x21b   : > { %4417 = vmatprep.subr.bf16.mxu0 %v5627_v47  ;;  %4589 = vmatprep.subr.bf16.mxu1 %v5630_v48  ;;  %v5709_v47 = vld [vmem:[%s6978_s11 + $0x4c0] ss:$16 sps:$4 sm:$0xff]   ;;  %v5712_v48 = vld [vmem:[%s6978_s11 + $0x4c8] ss:$16 sps:$4 sm:$0xff]  }
 0x21e   : > { %4418 = vmatpush1.bf16.msra.mxu0 %v5625_v15  ;;  %4590 = vmatpush1.bf16.msra.mxu1 %v5628_v49  ;;  %v5717_v15 = vld [vmem:[%s6978_s11 + $0x4e4] ss:$16 sps:$4 sm:$0xff]   ;;  %v5720_v49 = vld [vmem:[%s6978_s11 + $0x4ec] ss:$16 sps:$4 sm:$0xff]  }
 0x21f   : > { %4419 = vmatprep.subr.bf16.mxu0 %v5633_v50  ;;  %4591 = vmatprep.subr.bf16.mxu1 %v5636_v58  ;;  %v5715_v50 = vld [vmem:[%s6978_s11 + $0x4e0] ss:$16 sps:$4 sm:$0xff]   ;;  %v5718_v58 = vld [vmem:[%s6978_s11 + $0x4e8] ss:$16 sps:$4 sm:$0xff]  }
 0x222   : > { %4420 = vmatpush1.bf16.msra.mxu0 %v5631_v51  ;;  %4592 = vmatpush1.bf16.msra.mxu1 %v5634_v52  ;;  %v5723_v51 = vld [vmem:[%s6978_s11 + $0x504] ss:$16 sps:$4 sm:$0xff]   ;;  %v5726_v52 = vld [vmem:[%s6978_s11 + $0x50c] ss:$16 sps:$4 sm:$0xff]  }
 0x223   : > { %4421 = vmatprep.subr.bf16.mxu0 %v5639_v53  ;;  %4593 = vmatprep.subr.bf16.mxu1 %v5642_v54  ;;  %v5721_v53 = vld [vmem:[%s6978_s11 + $0x500] ss:$16 sps:$4 sm:$0xff]   ;;  %v5724_v54 = vld [vmem:[%s6978_s11 + $0x508] ss:$16 sps:$4 sm:$0xff]  }
 0x226   : > { %4422 = vmatpush1.bf16.msra.mxu0 %v5637_v25  ;;  %4594 = vmatpush1.bf16.msra.mxu1 %v5640_v55  ;;  %v5729_v25 = vld [vmem:[%s6978_s11 + $0x524] ss:$16 sps:$4 sm:$0xff]   ;;  %v5732_v55 = vld [vmem:[%s6978_s11 + $0x52c] ss:$16 sps:$4 sm:$0xff]  }
 0x227   : > { %4423 = vmatprep.subr.bf16.mxu0 %v5645_v56  ;;  %4595 = vmatprep.subr.bf16.mxu1 %v5648_v57  ;;  %v5727_v56 = vld [vmem:[%s6978_s11 + $0x520] ss:$16 sps:$4 sm:$0xff]   ;;  %v5730_v57 = vld [vmem:[%s6978_s11 + $0x528] ss:$16 sps:$4 sm:$0xff]  }
 0x22a   : > { %4424 = vmatpush1.bf16.msra.mxu0 %v5643_v59  ;;  %4596 = vmatpush1.bf16.msra.mxu1 %v5646_v60  ;;  %v5735_v59 = vld [vmem:[%s6978_s11 + $0x544] ss:$16 sps:$4 sm:$0xff]   ;;  %v5738_v60 = vld [vmem:[%s6978_s11 + $0x54c] ss:$16 sps:$4 sm:$0xff]  }
 0x22b   : > { %4425 = vmatprep.subr.bf16.mxu0 %v5651_v61  ;;  %4597 = vmatprep.subr.bf16.mxu1 %v5654_v62  ;;  %v5733_v61 = vld [vmem:[%s6978_s11 + $0x540] ss:$16 sps:$4 sm:$0xff]   ;;  %v5736_v62 = vld [vmem:[%s6978_s11 + $0x548] ss:$16 sps:$4 sm:$0xff]  }
 0x22e   : > { %4426 = vmatpush1.bf16.msra.mxu0 %v5649_v63  ;;  %4598 = vmatpush1.bf16.msra.mxu1 %v5652_v0  ;;  %v5741_v63 = vld [vmem:[%s6978_s11 + $0x564] ss:$16 sps:$4 sm:$0xff]   ;;  %v5744_v0 = vld [vmem:[%s6978_s11 + $0x56c] ss:$16 sps:$4 sm:$0xff]  }
 0x22f   : > { %4427 = vmatprep.subr.bf16.mxu0 %v5657_v1  ;;  %4599 = vmatprep.subr.bf16.mxu1 %v5660_v2  ;;  %v5739_v1 = vld [vmem:[%s6978_s11 + $0x560] ss:$16 sps:$4 sm:$0xff]   ;;  %v5742_v2 = vld [vmem:[%s6978_s11 + $0x568] ss:$16 sps:$4 sm:$0xff]  }
 0x232   : > { %4428 = vmatpush1.bf16.msra.mxu0 %v5655_v4  ;;  %4600 = vmatpush1.bf16.msra.mxu1 %v5658_v5  ;;  %v5747_v4 = vld [vmem:[%s6978_s11 + $0x584] ss:$16 sps:$4 sm:$0xff]   ;;  %v5750_v5 = vld [vmem:[%s6978_s11 + $0x58c] ss:$16 sps:$4 sm:$0xff]  }
 0x233   : > { %4429 = vmatprep.subr.bf16.mxu0 %v5663_v6  ;;  %4601 = vmatprep.subr.bf16.mxu1 %v5666_v7  ;;  %v1098_v6 = vsub.s32 4, %v7388_v30  ;;  %v1106_v7 = vsub.s32 6, %v7388_v30 }
 0x236   : > { %4430 = vmatpush1.bf16.msra.mxu0 %v5661_v8  ;;  %4602 = vmatpush1.bf16.msra.mxu1 %v5664_v9  ;;  %v1102_v8 = vsub.s32 5, %v7388_v30  ;;  %v1110_v9 = vsub.s32 7, %v7388_v30 }
 0x237   : > { %4431 = vmatprep.subr.bf16.mxu0 %v5669_v10  ;;  %4603 = vmatprep.subr.bf16.mxu1 %v5672_v11  ;;  %v5745_v10 = vld [vmem:[%s6978_s11 + $0x580] ss:$16 sps:$4 sm:$0xff]   ;;  %v5748_v11 = vld [vmem:[%s6978_s11 + $0x588] ss:$16 sps:$4 sm:$0xff]  }
 0x23a   : > { %4432 = vmatpush1.bf16.msra.mxu0 %v5667_v12  ;;  %4604 = vmatpush1.bf16.msra.mxu1 %v5670_v13  ;;  %v5753_v12 = vld [vmem:[%s6978_s11 + $0x5a4] ss:$16 sps:$4 sm:$0xff]   ;;  %v5756_v13 = vld [vmem:[%s6978_s11 + $0x5ac] ss:$16 sps:$4 sm:$0xff]  }
 0x23b   : > { %4444 = vmatprep.subr.bf16.mxu0 %v5675_v14  ;;  %4616 = vmatprep.subr.bf16.mxu1 %v5678_v16  ;;  %v1099_v14 = vrot.slane %v7394_v32, %v1098_v6  ;;  %v1107_v16 = vrot.slane %v7394_v32, %v1106_v7  ;;  %v5769_v6 = vld [vmem:[%s6978_s11 + $0x600] ss:$16 sps:$4 sm:$0xff]   ;;  %v5772_v7 = vld [vmem:[%s6978_s11 + $0x608] ss:$16 sps:$4 sm:$0xff]  }
 0x23d   : > { %4434 = vmatmul.mubr.bf16.vlgmr.msra.gmra.mrb[8].mxu0 %v7413_v3  ;;  %4606 = vmatmul.mubr.bf16.vlgmr.msra.gmra.mrb[8].mxu1 %v7413_v3  ;;  %v5693_v3 = vld [vmem:[%s6978_s11 + $0x464] ss:$16 sps:$4 sm:$0xff]  }
 0x23e   : > { %4445 = vmatpush1.bf16.msra.mxu0 %v5673_v17  ;;  %4617 = vmatpush1.bf16.msra.mxu1 %v5676_v18  ;;  %v1103_v17 = vrot.slane %v7394_v32, %v1102_v8  ;;  %v1111_v18 = vrot.slane %v7394_v32, %v1110_v9  ;;  %v5777_v9 = vld [vmem:[%s6978_s11 + $0x624] ss:$16 sps:$4 sm:$0xff]  }
 0x23f   : > { %4446 = vmatprep.subr.bf16.mxu0 %v5681_v19  ;;  %4618 = vmatprep.subr.bf16.mxu1 %v5684_v20  ;;  %v5751_v19 = vld [vmem:[%s6978_s11 + $0x5a0] ss:$16 sps:$4 sm:$0xff]   ;;  %v5754_v20 = vld [vmem:[%s6978_s11 + $0x5a8] ss:$16 sps:$4 sm:$0xff]  }
 0x242   : > { %4447 = vmatpush1.bf16.msra.mxu0 %v5679_v21  ;;  %4619 = vmatpush1.bf16.msra.mxu1 %v5682_v22 }
 0x243   : > { %4448 = vmatprep.subr.bf16.mxu0 %v5687_v23  ;;  %4620 = vmatprep.subr.bf16.mxu1 %v5690_v24 }
 0x246   : > { %4449 = vmatpush1.bf16.msra.mxu0 %v5685_v27  ;;  %4621 = vmatpush1.bf16.msra.mxu1 %v5688_v28  ;;  %v5759_v27 = vld [vmem:[%s6978_s11 + $0x5c4] ss:$16 sps:$4 sm:$0xff]   ;;  %v5762_v28 = vld [vmem:[%s6978_s11 + $0x5cc] ss:$16 sps:$4 sm:$0xff]  }
 0x247   : > { %4450 = vmatprep.subr.bf16.mxu0 %v5693_v3  ;;  %4622 = vmatprep.subr.bf16.mxu1 %v5696_v29 }
 0x24a   : > { %4451 = vmatpush1.bf16.msra.mxu0 %v5691_v36  ;;  %4623 = vmatpush1.bf16.msra.mxu1 %v5694_v37  ;;  %v5757_v37 = vld [vmem:[%s6978_s11 + $0x5c0] ss:$16 sps:$4 sm:$0xff]  }
 0x24b   : > { %4452 = vmatprep.subr.bf16.mxu0 %v5699_v38  ;;  %4624 = vmatprep.subr.bf16.mxu1 %v5702_v26 }
 0x24e   : > { %4453 = vmatpush1.bf16.msra.mxu0 %v5697_v39  ;;  %4625 = vmatpush1.bf16.msra.mxu1 %v5700_v40 }
 0x24f   : > { %4454 = vmatprep.subr.bf16.mxu0 %v5705_v41  ;;  %4626 = vmatprep.subr.bf16.mxu1 %v5708_v42  ;;  %v5760_v42 = vld [vmem:[%s6978_s11 + $0x5c8] ss:$16 sps:$4 sm:$0xff]  }
 0x252   : > { %4455 = vmatpush1.bf16.msra.mxu0 %v5703_v43  ;;  %4627 = vmatpush1.bf16.msra.mxu1 %v5706_v44  ;;  %v5765_v43 = vld [vmem:[%s6978_s11 + $0x5e4] ss:$16 sps:$4 sm:$0xff]   ;;  %v5768_v44 = vld [vmem:[%s6978_s11 + $0x5ec] ss:$16 sps:$4 sm:$0xff]  }
 0x253   : > { %4456 = vmatprep.subr.bf16.mxu0 %v5711_v45  ;;  %4628 = vmatprep.subr.bf16.mxu1 %v5714_v46 }
 0x256   : > { %4457 = vmatpush1.bf16.msra.mxu0 %v5709_v47  ;;  %4629 = vmatpush1.bf16.msra.mxu1 %v5712_v48 }
 0x257   : > { %4458 = vmatprep.subr.bf16.mxu0 %v5717_v15  ;;  %4630 = vmatprep.subr.bf16.mxu1 %v5720_v49 }
 0x25a   : > { %4459 = vmatpush1.bf16.msra.mxu0 %v5715_v50  ;;  %4631 = vmatpush1.bf16.msra.mxu1 %v5718_v58  ;;  %v5763_v50 = vld [vmem:[%s6978_s11 + $0x5e0] ss:$16 sps:$4 sm:$0xff]   ;;  %v5766_v58 = vld [vmem:[%s6978_s11 + $0x5e8] ss:$16 sps:$4 sm:$0xff]  }
 0x25b   : > { %4460 = vmatprep.subr.bf16.mxu0 %v5723_v51  ;;  %4632 = vmatprep.subr.bf16.mxu1 %v5726_v52 }
 0x25e   : > { %4461 = vmatpush1.bf16.msra.mxu0 %v5721_v53  ;;  %4633 = vmatpush1.bf16.msra.mxu1 %v5724_v54  ;;  %v5771_v54 = vld [vmem:[%s6978_s11 + $0x604] ss:$16 sps:$4 sm:$0xff]  }
 0x25f   : > { %4462 = vmatprep.subr.bf16.mxu0 %v5729_v25  ;;  %4634 = vmatprep.subr.bf16.mxu1 %v5732_v55 }
 0x262   : > { %4463 = vmatpush1.bf16.msra.mxu0 %v5727_v56  ;;  %4635 = vmatpush1.bf16.msra.mxu1 %v5730_v57  ;;  %v5774_v56 = vld [vmem:[%s6978_s11 + $0x60c] ss:$16 sps:$4 sm:$0xff]  }
 0x263   : > { %4464 = vmatprep.subr.bf16.mxu0 %v5735_v59  ;;  %4636 = vmatprep.subr.bf16.mxu1 %v5738_v60 }
 0x266   : > { %4465 = vmatpush1.bf16.msra.mxu0 %v5733_v61  ;;  %4637 = vmatpush1.bf16.msra.mxu1 %v5736_v62 }
 0x267   : > { %4466 = vmatprep.subr.bf16.mxu0 %v5741_v63  ;;  %4638 = vmatprep.subr.bf16.mxu1 %v5744_v0 }
 0x26a   : > { %4467 = vmatpush1.bf16.msra.mxu0 %v5739_v1  ;;  %4639 = vmatpush1.bf16.msra.mxu1 %v5742_v2 }
 0x26b   : > { %4468 = vmatprep.subr.bf16.mxu0 %v5747_v4  ;;  %4640 = vmatprep.subr.bf16.mxu1 %v5750_v5 }
 0x26e   : > { %4469 = vmatpush1.bf16.msra.mxu0 %v5745_v10  ;;  %4641 = vmatpush1.bf16.msra.mxu1 %v5748_v11  ;;  %v5780_v10 = vld [vmem:[%s6978_s11 + $0x62c] ss:$16 sps:$4 sm:$0xff]   ;;  %v5775_v11 = vld [vmem:[%s6978_s11 + $0x620] ss:$16 sps:$4 sm:$0xff]  }
 0x26f   : > { %4470 = vmatprep.subr.bf16.mxu0 %v5753_v12  ;;  %4642 = vmatprep.subr.bf16.mxu1 %v5756_v13  ;;  %v5778_v12 = vld [vmem:[%s6978_s11 + $0x628] ss:$16 sps:$4 sm:$0xff]   ;;  %v5783_v13 = vld [vmem:[%s6978_s11 + $0x644] ss:$16 sps:$4 sm:$0xff]  }
 0x270   : > { %v2649_v21 = vpop.f32.mrb[4].mxu0  ;;  %v2735_v23 = vpop.f32.mrb[4].mxu1 }
 0x271   : > { %v5385_v22 = vadd.f32 %v2649_v21, %v1099_v14  ;;  %v2651_v24 = vpop.f32.mrb[5].mxu0  ;;  %v5389_v3 = vadd.f32 %v2735_v23, %v1107_v16  ;;  %v2737_v36 = vpop.f32.mrb[5].mxu1  ;;  %v5790_v21 = vld [vmem:[%s6978_s11 + $0x668] ss:$16 sps:$4 sm:$0xff]   ;;  %v5798_v23 = vld [vmem:[%s6978_s11 + $0x68c] ss:$16 sps:$4 sm:$0xff]  }
 0x272   : > { %v5386_v29 = vadd.f32 %v2651_v24, %v1103_v17  ;;  %v2653_v32 = vpop.f32.mrb[6].mxu0  ;;  %v5390_v26 = vadd.f32 %v2737_v36, %v1111_v18  ;;  %v2739_v40 = vpop.f32.mrb[6].mxu1  ;;  %4471 = vmatpush1.bf16.msra.mxu0 %v5751_v19  ;;  %4643 = vmatpush1.bf16.msra.mxu1 %v5754_v20  ;;  %v5792_v19 = vld [vmem:[%s6978_s11 + $0x66c] ss:$16 sps:$4 sm:$0xff]   ;;  %v5787_v20 = vld [vmem:[%s6978_s11 + $0x660] ss:$16 sps:$4 sm:$0xff]  }
 0x273   : > { %v2764_v38 = vmul.f32 0.1, %v5385_v22  ;;  %v5387_v39 = vadd.f32 %v2653_v32, %v1099_v14  ;;  %v2655_v41 = vpop.f32.mrb[7].mxu0  ;;  %vm2748_vm8 = vcmp.gt.f32.partialorder %v5385_v22, 0.0  ;;  %vm2750_vm9 = vcmp.gt.f32.partialorder %v5389_v3, 0.0  ;;  %v2741_v46 = vpop.f32.mrb[7].mxu1  ;;  %4472 = vmatprep.subr.bf16.mxu0 %v5759_v27  ;;  %4644 = vmatprep.subr.bf16.mxu1 %v5762_v28 }
 0x274   : > { %v2766_v45 = vmul.f32 0.1, %v5389_v3  ;;  %vm2749_vm10 = vcmp.gt.f32.partialorder %v5386_v29, 0.0  ;;  %v2765_v47 = vmul.f32 0.1, %v5386_v29  ;;  %v5391_v15 = vadd.f32 %v2739_v40, %v1107_v16 }
 0x275   : > { %vm2756_vm11 = vcmp.gt.f32.partialorder %v5387_v39, 0.0  ;;  %v2772_v48 = vmul.f32 0.1, %v5387_v39  ;;  %v5388_v49 = vadd.f32 %v2655_v41, %v1103_v17  ;;  %v2780_v51 = vsel %vm2748_vm8, %v5385_v22, %v2764_v38  ;;  %v5786_v14 = vld [vmem:[%s6978_s11 + $0x64c] ss:$16 sps:$4 sm:$0xff]  }
 0x276   : > { %vm2751_vm12 = vcmp.gt.f32.partialorder %v5390_v26, 0.0  ;;  %v2767_v52 = vmul.f32 0.1, %v5390_v26  ;;  %v5392_v53 = vadd.f32 %v2741_v46, %v1111_v18  ;;  %vm2758_vm13 = vcmp.gt.f32.partialorder %v5391_v15, 0.0  ;;  %4473 = vmatpush1.bf16.msra.mxu0 %v5757_v37  ;;  %4645 = vmatpush1.bf16.msra.mxu1 %v5760_v42  ;;  %v5781_v16 = vld [vmem:[%s6978_s11 + $0x640] ss:$16 sps:$4 sm:$0xff]  }
 0x277   : > { %v2788_v25 = vsel %vm2756_vm11, %v5387_v39, %v2772_v48  ;;  %v2774_v55 = vmul.f32 0.1, %v5391_v15  ;;  %vm2757_vm14 = vcmp.gt.f32.partialorder %v5388_v49, 0.0  ;;  %v2773_v59 = vmul.f32 0.1, %v5388_v49  ;;  %4474 = vmatprep.subr.bf16.mxu0 %v5765_v43  ;;  %4646 = vmatprep.subr.bf16.mxu1 %v5768_v44 }
 0x278   : > { %v2796_v57 = vpack.c.bf16 %v2788_v25, %v2780_v51  ;;  %vm2759_vm15 = vcmp.gt.f32.partialorder %v5392_v53, 0.0  ;;  %v2775_v60 = vmul.f32 0.1, %v5392_v53  ;;  %v2782_v61 = vsel %vm2750_vm9, %v5389_v3, %v2766_v45  ;;  %v5784_v17 = vld [vmem:[%s6978_s11 + $0x648] ss:$16 sps:$4 sm:$0xff]  }
 0x279   : > { %v2790_v62 = vsel %vm2758_vm13, %v5391_v15, %v2774_v55  ;;  %v2781_v63 = vsel %vm2749_vm10, %v5386_v29, %v2765_v47  ;;  %v2789_v1 = vsel %vm2757_vm14, %v5388_v49, %v2773_v59  ;;  %v2783_v2 = vsel %vm2751_vm12, %v5390_v26, %v2767_v52  ;;  %v5789_v18 = vld [vmem:[%s6978_s11 + $0x664] ss:$16 sps:$4 sm:$0xff]   ;;  %v5793_v24 = vld [vmem:[%s6978_s11 + $0x680] ss:$16 sps:$4 sm:$0xff]   ;;  %v5796_v27 = vld [vmem:[%s6978_s11 + $0x688] ss:$16 sps:$4 sm:$0xff]  }
 0x27a   : > { %v7557_v0 = vpack.c.bf16 %v2790_v62, %v2782_v61  ;;  %v2791_v4 = vsel %vm2759_vm15, %v5392_v53, %v2775_v60  ;;  %4475 = vmatpush1.bf16.msra.mxu0 %v5763_v50  ;;  %4647 = vmatpush1.bf16.msra.mxu1 %v5766_v58  ;;  %v2797_v5 = vpack.c.bf16 %v2789_v1, %v2781_v63  ;;  %v5795_v22 = vld [vmem:[%s6978_s11 + $0x684] ss:$16 sps:$4 sm:$0xff]   ;;  %v5804_v3 = vld [vmem:[%s6978_s11 + $0x6ac] ss:$16 sps:$4 sm:$0xff]   ;;  %v5799_v29 = vld [vmem:[%s6978_s11 + $0x6a0] ss:$16 sps:$4 sm:$0xff]  }
 0x27b   : > { %v2799_v8 = vpack.c.bf16 %v2791_v4, %v2783_v2  ;;  %4487 = vmatprep.subr.bf16.mxu0 %v5771_v54  ;;  %4659 = vmatprep.subr.bf16.mxu1 %v5774_v56  ;;  %v5801_v28 = vld [vmem:[%s6978_s11 + $0x6a4] ss:$16 sps:$4 sm:$0xff]   ;;  %v5802_v36 = vld [vmem:[%s6978_s11 + $0x6a8] ss:$16 sps:$4 sm:$0xff]   ;;  %v5810_v37 = vld [vmem:[%s6978_s11 + $0x6cc] ss:$16 sps:$4 sm:$0xff]  }
 0x27c   : > { %4476 = vmatprep.mubr.bf16.mxu0 %v2797_v5  ;;  %4648 = vmatprep.mubr.bf16.mxu1 %v2797_v5  ;;  %v5807_v32 = vld [vmem:[%s6978_s11 + $0x6c4] ss:$16 sps:$4 sm:$0xff]   ;;  %v5805_v38 = vld [vmem:[%s6978_s11 + $0x6c0] ss:$16 sps:$4 sm:$0xff]   ;;  %v5808_v26 = vld [vmem:[%s6978_s11 + $0x6c8] ss:$16 sps:$4 sm:$0xff]  }
 0x27d   : > { %4477 = vmatmul.mubr.bf16.vlgmr.msra.gmra.mrb[8].mxu0 %v2796_v57  ;;  %4649 = vmatmul.mubr.bf16.vlgmr.msra.gmra.mrb[8].mxu1 %v2796_v57  ;;  %v5813_v39 = vld [vmem:[%s6978_s11 + $0x6e4] ss:$16 sps:$4 sm:$0xff]   ;;  %v5816_v40 = vld [vmem:[%s6978_s11 + $0x6ec] ss:$16 sps:$4 sm:$0xff]   ;;  %v5811_v41 = vld [vmem:[%s6978_s11 + $0x6e0] ss:$16 sps:$4 sm:$0xff]  }
 0x27e   : > { %4488 = vmatpush1.bf16.msra.mxu0 %v5769_v6  ;;  %4660 = vmatpush1.bf16.msra.mxu1 %v5772_v7  ;;  %v5814_v42 = vld [vmem:[%s6978_s11 + $0x6e8] ss:$16 sps:$4 sm:$0xff]   ;;  %v5819_v43 = vld [vmem:[%s6978_s11 + $0x704] ss:$16 sps:$4 sm:$0xff]   ;;  %v5822_v44 = vld [vmem:[%s6978_s11 + $0x70c] ss:$16 sps:$4 sm:$0xff]  }
 0x27f   : > { %4519 = vmatprep.mubr.bf16.mxu0 %v2799_v8  ;;  %4691 = vmatprep.mubr.bf16.mxu1 %v2799_v8  ;;  %v5817_v45 = vld [vmem:[%s6978_s11 + $0x700] ss:$16 sps:$4 sm:$0xff]   ;;  %v5820_v46 = vld [vmem:[%s6978_s11 + $0x708] ss:$16 sps:$4 sm:$0xff]   ;;  %v5825_v47 = vld [vmem:[%s6978_s11 + $0x724] ss:$16 sps:$4 sm:$0xff]  }
 0x280   : > { %4489 = vmatprep.subr.bf16.mxu0 %v5777_v9  ;;  %4661 = vmatprep.subr.bf16.mxu1 %v5780_v10  ;;  %v5828_v48 = vld [vmem:[%s6978_s11 + $0x72c] ss:$16 sps:$4 sm:$0xff]   ;;  %v5823_v15 = vld [vmem:[%s6978_s11 + $0x720] ss:$16 sps:$4 sm:$0xff]   ;;  %v5826_v49 = vld [vmem:[%s6978_s11 + $0x728] ss:$16 sps:$4 sm:$0xff]  }
 0x281   : > { %v5831_v50 = vld [vmem:[%s6978_s11 + $0x744] ss:$16 sps:$4 sm:$0xff]   ;;  %v5834_v58 = vld [vmem:[%s6978_s11 + $0x74c] ss:$16 sps:$4 sm:$0xff]   ;;  %v5829_v51 = vld [vmem:[%s6978_s11 + $0x740] ss:$16 sps:$4 sm:$0xff]  }
 0x282   : > { %4490 = vmatpush1.bf16.msra.mxu0 %v5775_v11  ;;  %4662 = vmatpush1.bf16.msra.mxu1 %v5778_v12  ;;  %v5832_v52 = vld [vmem:[%s6978_s11 + $0x748] ss:$16 sps:$4 sm:$0xff]   ;;  %v5837_v53 = vld [vmem:[%s6978_s11 + $0x764] ss:$16 sps:$4 sm:$0xff]   ;;  %v5840_v54 = vld [vmem:[%s6978_s11 + $0x76c] ss:$16 sps:$4 sm:$0xff]  }
 0x283   : > { %4491 = vmatprep.subr.bf16.mxu0 %v5783_v13  ;;  %4663 = vmatprep.subr.bf16.mxu1 %v5786_v14  ;;  %v5835_v25 = vld [vmem:[%s6978_s11 + $0x760] ss:$16 sps:$4 sm:$0xff]   ;;  %v5838_v55 = vld [vmem:[%s6978_s11 + $0x768] ss:$16 sps:$4 sm:$0xff]   ;;  %v5843_v56 = vld [vmem:[%s6978_s11 + $0x784] ss:$16 sps:$4 sm:$0xff]  }
 0x284   : > { %v5846_v57 = vld [vmem:[%s6978_s11 + $0x78c] ss:$16 sps:$4 sm:$0xff]   ;;  %v5841_v59 = vld [vmem:[%s6978_s11 + $0x780] ss:$16 sps:$4 sm:$0xff]   ;;  %v5844_v60 = vld [vmem:[%s6978_s11 + $0x788] ss:$16 sps:$4 sm:$0xff]  }
 0x285   : > { %v5849_v61 = vld [vmem:[%s6978_s11 + $0x7a4] ss:$16 sps:$4 sm:$0xff]   ;;  %v5852_v62 = vld [vmem:[%s6978_s11 + $0x7ac] ss:$16 sps:$4 sm:$0xff]   ;;  %v5847_v63 = vld [vmem:[%s6978_s11 + $0x7a0] ss:$16 sps:$4 sm:$0xff]  }
 0x286   : > { %4492 = vmatpush1.bf16.msra.mxu0 %v5781_v16  ;;  %4664 = vmatpush1.bf16.msra.mxu1 %v5784_v17  ;;  %v5850_v1 = vld [vmem:[%s6978_s11 + $0x7a8] ss:$16 sps:$4 sm:$0xff]   ;;  %v5855_v2 = vld [vmem:[%s6978_s11 + $0x7c4] ss:$16 sps:$4 sm:$0xff]   ;;  %v5858_v4 = vld [vmem:[%s6978_s11 + $0x7cc] ss:$16 sps:$4 sm:$0xff]  }
 0x287   : > { %4493 = vmatprep.subr.bf16.mxu0 %v5789_v18  ;;  %4665 = vmatprep.subr.bf16.mxu1 %v5792_v19  ;;  %v5853_v5 = vld [vmem:[%s6978_s11 + $0x7c0] ss:$16 sps:$4 sm:$0xff]   ;;  %v5856_v6 = vld [vmem:[%s6978_s11 + $0x7c8] ss:$16 sps:$4 sm:$0xff]   ;;  %v5861_v7 = vld [vmem:[%s6978_s11 + $0x7e4] ss:$16 sps:$4 sm:$0xff]  }
 0x288   : > { %v5864_v8 = vld [vmem:[%s6978_s11 + $0x7ec] ss:$16 sps:$4 sm:$0xff]   ;;  %v5859_v9 = vld [vmem:[%s6978_s11 + $0x7e0] ss:$16 sps:$4 sm:$0xff]   ;;  %v5862_v10 = vld [vmem:[%s6978_s11 + $0x7e8] ss:$16 sps:$4 sm:$0xff]  }
 0x289   : > { %v3056_v11 = vld [vmem:[%s806_s16] sm:$0xf] }
 0x28a   : > { %4494 = vmatpush1.bf16.msra.mxu0 %v5787_v20  ;;  %4666 = vmatpush1.bf16.msra.mxu1 %v5790_v21  ;;  %v3061_v12 = vrot.slane %v3056_v11, %v1082_v31  ;;  %v3069_v13 = vrot.slane %v3056_v11, %v1090_v33  ;;  %v3065_v14 = vrot.slane %v3056_v11, %v1086_v34 }
 0x28b   : > { %4495 = vmatprep.subr.bf16.mxu0 %v5795_v22  ;;  %4667 = vmatprep.subr.bf16.mxu1 %v5798_v23 }
 0x28e   : > { %4496 = vmatpush1.bf16.msra.mxu0 %v5793_v24  ;;  %4668 = vmatpush1.bf16.msra.mxu1 %v5796_v27 }
 0x28f   : > { %4497 = vmatprep.subr.bf16.mxu0 %v5801_v28  ;;  %4669 = vmatprep.subr.bf16.mxu1 %v5804_v3 }
 0x292   : > { %4498 = vmatpush1.bf16.msra.mxu0 %v5799_v29  ;;  %4670 = vmatpush1.bf16.msra.mxu1 %v5802_v36 }
 0x293   : > { %4499 = vmatprep.subr.bf16.mxu0 %v5807_v32  ;;  %4671 = vmatprep.subr.bf16.mxu1 %v5810_v37 }
 0x296   : > { %4500 = vmatpush1.bf16.msra.mxu0 %v5805_v38  ;;  %4672 = vmatpush1.bf16.msra.mxu1 %v5808_v26 }
 0x297   : > { %4501 = vmatprep.subr.bf16.mxu0 %v5813_v39  ;;  %4673 = vmatprep.subr.bf16.mxu1 %v5816_v40 }
 0x29a   : > { %4502 = vmatpush1.bf16.msra.mxu0 %v5811_v41  ;;  %4674 = vmatpush1.bf16.msra.mxu1 %v5814_v42 }
 0x29b   : > { %4503 = vmatprep.subr.bf16.mxu0 %v5819_v43  ;;  %4675 = vmatprep.subr.bf16.mxu1 %v5822_v44 }
 0x29e   : > { %4504 = vmatpush1.bf16.msra.mxu0 %v5817_v45  ;;  %4676 = vmatpush1.bf16.msra.mxu1 %v5820_v46 }
 0x29f   : > { %4505 = vmatprep.subr.bf16.mxu0 %v5825_v47  ;;  %4677 = vmatprep.subr.bf16.mxu1 %v5828_v48 }
 0x2a2   : > { %4506 = vmatpush1.bf16.msra.mxu0 %v5823_v15  ;;  %4678 = vmatpush1.bf16.msra.mxu1 %v5826_v49 }
 0x2a3   : > { %4507 = vmatprep.subr.bf16.mxu0 %v5831_v50  ;;  %4679 = vmatprep.subr.bf16.mxu1 %v5834_v58 }
 0x2a6   : > { %4508 = vmatpush1.bf16.msra.mxu0 %v5829_v51  ;;  %4680 = vmatpush1.bf16.msra.mxu1 %v5832_v52 }
 0x2a7   : > { %4509 = vmatprep.subr.bf16.mxu0 %v5837_v53  ;;  %4681 = vmatprep.subr.bf16.mxu1 %v5840_v54 }
 0x2aa   : > { %4510 = vmatpush1.bf16.msra.mxu0 %v5835_v25  ;;  %4682 = vmatpush1.bf16.msra.mxu1 %v5838_v55 }
 0x2ab   : > { %4511 = vmatprep.subr.bf16.mxu0 %v5843_v56  ;;  %4683 = vmatprep.subr.bf16.mxu1 %v5846_v57 }
 0x2ae   : > { %4512 = vmatpush1.bf16.msra.mxu0 %v5841_v59  ;;  %4684 = vmatpush1.bf16.msra.mxu1 %v5844_v60 }
 0x2af   : > { %4513 = vmatprep.subr.bf16.mxu0 %v5849_v61  ;;  %4685 = vmatprep.subr.bf16.mxu1 %v5852_v62 }
 0x2b2   : > { %4514 = vmatpush1.bf16.msra.mxu0 %v5847_v63  ;;  %4686 = vmatpush1.bf16.msra.mxu1 %v5850_v1 }
 0x2b3   : > { %4515 = vmatprep.subr.bf16.mxu0 %v5855_v2  ;;  %4687 = vmatprep.subr.bf16.mxu1 %v5858_v4 }
 0x2b6   : > { %4516 = vmatpush1.bf16.msra.mxu0 %v5853_v5  ;;  %4688 = vmatpush1.bf16.msra.mxu1 %v5856_v6 }
 0x2b7   : > { %4517 = vmatprep.subr.bf16.mxu0 %v5861_v7  ;;  %4689 = vmatprep.subr.bf16.mxu1 %v5864_v8 }
 0x2ba   : > { %4518 = vmatpush1.bf16.msra.mxu0 %v5859_v9  ;;  %4690 = vmatpush1.bf16.msra.mxu1 %v5862_v10 }
 0x2bd   : > { %4520 = vmatmul.mubr.bf16.vlgmr.msra.gmra.mrb[8].mxu0 %v7557_v0  ;;  %4692 = vmatmul.mubr.bf16.vlgmr.msra.gmra.mrb[8].mxu1 %v7557_v0  ;;  %v3073_v0 = vrot.slane %v3056_v11, %v1094_v35 }
 0x390   : > { %v4521_v16 = vpop.f32.mrb[8].mxu0  ;;  %v4693_v17 = vpop.f32.mrb[8].mxu1  ;;  %4716 = sbr.rel (!%p5970_p6) target bundleno = 927 (0x39f), region = 67 }
 0x391   : > { %v5393_v18 = vadd.f32 %v4521_v16, %v3061_v12  ;;  %v5397_v19 = vadd.f32 %v4693_v17, %v3069_v13  ;;  %v4523_v20 = vpop.f32.mrb[9].mxu0  ;;  %v4695_v21 = vpop.f32.mrb[9].mxu1 }
 0x392   : > { %v5394_v22 = vadd.f32 %v4523_v20, %v3065_v14  ;;  %v5398_v23 = vadd.f32 %v4695_v21, %v3073_v0  ;;  %v4525_v24 = vpop.f32.mrb[10].mxu0  ;;  %v4697_v27 = vpop.f32.mrb[10].mxu1 }
 0x393   : > { %4702 = vst [vmem:[%s7638_s18] sm:$0xff] %v5393_v18  ;;  %4704 = vst [vmem:[%s7638_s18 + $0x10] sm:$0xff] %v5397_v19  ;;  %v5395_v30 = vadd.f32 %v4525_v24, %v3061_v12  ;;  %v5399_v31 = vadd.f32 %v4697_v27, %v3069_v13  ;;  %v4527_v33 = vpop.f32.mrb[11].mxu0  ;;  %v4699_v34 = vpop.f32.mrb[11].mxu1 }
 0x394   : > { %4703 = vst [vmem:[%s7638_s18 + $0x8] sm:$0xff] %v5394_v22  ;;  %4705 = vst [vmem:[%s7638_s18 + $0x18] sm:$0xff] %v5398_v23  ;;  %v5396_v35 = vadd.f32 %v4527_v33, %v3065_v14  ;;  %v5400_v28 = vadd.f32 %v4699_v34, %v3073_v0 }
 0x395   : > { %4706 = vst [vmem:[%s7638_s18 + $0x20] sm:$0xff] %v5395_v30  ;;  %4708 = vst [vmem:[%s7638_s18 + $0x30] sm:$0xff] %v5399_v31 }
 0x396   : > { %4707 = vst [vmem:[%s7638_s18 + $0x28] sm:$0xff] %v5396_v35  ;;  %4709 = vst [vmem:[%s7638_s18 + $0x38] sm:$0xff] %v5400_v28 }
 0x39a   : > { %v4735_v3 = vld [vmem:[%s7638_s18] sm:$0xff]  ;;  %v4739_v36 = vld [vmem:[%s7638_s18 + $0x10] sm:$0xff] }
 0x39b   : > { %v4737_v29 = vld [vmem:[%s7638_s18 + $0x8] sm:$0xff]  ;;  %v4741_v32 = vld [vmem:[%s7638_s18 + $0x18] sm:$0xff]  ;;  %4736 = vst [vmem:[%s4722_s26] sm:$0xff] %v4735_v3  ;;  %4740 = vst [vmem:[%s4722_s26 + $0x10] sm:$0xff] %v4739_v36 }
 0x39c   : > { %v4743_v37 = vld [vmem:[%s7638_s18 + $0x20] sm:$0xff]  ;;  %4738 = vst [vmem:[%s4722_s26 + $0x8] sm:$0xff] %v4737_v29  ;;  %4742 = vst [vmem:[%s4722_s26 + $0x18] sm:$0xff] %v4741_v32  ;;  %v4747_v26 = vld [vmem:[%s7638_s18 + $0x30] sm:$0xff] }
 0x39d   : > { %v4745_v38 = vld [vmem:[%s7638_s18 + $0x28] sm:$0xff]  ;;  %4744 = vst [vmem:[%s4722_s26 + $0x40] sm:$0xff] %v4743_v37  ;;  %v4749_v39 = vld [vmem:[%s7638_s18 + $0x38] sm:$0xff]  ;;  %4748 = vst [vmem:[%s4722_s26 + $0x50] sm:$0xff] %v4747_v26 }
 0x39e   : > { %4746 = vst [vmem:[%s4722_s26 + $0x48] sm:$0xff] %v4745_v38  ;;  %4750 = vst [vmem:[%s4722_s26 + $0x58] sm:$0xff] %v4749_v39 }
 0x39f PF: > { %s15_s22 = sadd.s32 1, %s5903_s22   ;;  %s7684_s18 = smov %s5891_s19 }
 0x3a0   : > { %p12_p12 = scmp.ge.s32.totalorder %s15_s22, 4   ;;  %s7685_s19 = smov %s5975_s28 }
 0x3a1   : > { %s7686_s20 = smov %s5899_s21  ;;  %s7687_s21 = smov %s7689_s23 }
 0x3a2   :  { %14 = sbr.rel (!%p12_p12) target bundleno = 3 (0x3), region = 127 }

</bundles_post_ra>
